<compile_context>
chip_gen: v7x
topology: tpu7x:2x2x1
jax: 0.10.0
libtpu: 0.0.40
codegen_flags: <defaults>
</compile_context>

<pallas_src>
import numpy as np
import jax
import jax.numpy as jnp
from jax.experimental import pallas as pl
from jax.experimental.pallas import tpu as pltpu


# ----------------------------------------------------------------------------
# Kernel factory: closes over the static problem sizes.
# ----------------------------------------------------------------------------
def make_bilstm_kernel(BP, T, V, H1, H2):
    f32 = jnp.float32

    def sigmoid(z):
        # EUP tanh form: exact, single transcendental, no divide.
        return 0.5 * jnp.tanh(0.5 * z) + 0.5

    def lstm_cell(gates, c, H):
        # PyTorch gate order: i, f, g, o
        i = sigmoid(gates[:, 0:H])
        f = sigmoid(gates[:, H:2 * H])
        g = jnp.tanh(gates[:, 2 * H:3 * H])
        o = sigmoid(gates[:, 3 * H:4 * H])
        c_new = f * c + i * g
        h_new = o * jnp.tanh(c_new)
        return h_new, c_new

    def run_bidir_layer(xp, whh_bd, H):
        """Fused fwd+bwd recurrence.

        xp:     (T*BP, 8*H)  time-major input projections, cols [fwd 4H | bwd 4H]
        whh_bd: (2*H, 8*H)   block-diag [Whh_f -> cols 0:4H ; Whh_b -> cols 4H:8H]
        Returns lists hf[t], hb[t] of the per-timestep hidden states (BP, H).
        """
        h_cat = jnp.zeros((BP, 2 * H), f32)     # [h_f | h_b]
        c_f = jnp.zeros((BP, H), f32)
        c_b = jnp.zeros((BP, H), f32)
        hf = [None] * T
        hb = [None] * T
        for s in range(T):                       # statically unrolled
            tf = s
            tb = T - 1 - s
            # One recurrence matmul for BOTH directions (width 8*H).
            g_hh = jnp.dot(h_cat, whh_bd, preferred_element_type=f32)   # (BP, 8H)
            g_f = xp[tf * BP:(tf + 1) * BP, 0:4 * H] + g_hh[:, 0:4 * H]
            g_b = xp[tb * BP:(tb + 1) * BP, 4 * H:8 * H] + g_hh[:, 4 * H:8 * H]
            h_f, c_f = lstm_cell(g_f, c_f, H)
            h_b, c_b = lstm_cell(g_b, c_b, H)
            hf[tf] = h_f
            hb[tb] = h_b
            h_cat = jnp.concatenate([h_f, h_b], axis=1)
        return hf, hb

    def kernel(ids_ref, emb_ref, wih1_ref, b1_ref, whh1_ref,
               wih2_ref, b2_ref, whh2_ref, out_ref):
        # ---- Embedding: exact gather as one-hot matmul on the MXU -----------
        ids = ids_ref[...]                                               # (T*BP, 1) int32
        onehot = (jax.lax.broadcasted_iota(jnp.int32, (T * BP, V), 1) == ids).astype(f32)
        emd = jnp.dot(onehot, emb_ref[...], preferred_element_type=f32)  # (T*BP, E)

        # ---- LSTM1: one fused input-projection matmul for all t, both dirs --
        xp1 = jnp.dot(emd, wih1_ref[...], preferred_element_type=f32) + b1_ref[...]
        hf1, hb1 = run_bidir_layer(xp1, whh1_ref[...], H1)

        # LSTM1 output sequence, held in registers (no VMEM scratch round-trip).
        # dropout1 is eval-mode identity.
        seq1 = jnp.concatenate(
            [jnp.concatenate([hf1[t], hb1[t]], axis=1) for t in range(T)],
            axis=0)                                                      # (T*BP, 2*H1)

        # ---- LSTM2: one fused input-projection matmul for all t, both dirs --
        xp2 = jnp.dot(seq1, wih2_ref[...], preferred_element_type=f32) + b2_ref[...]
        hf2, hb2 = run_bidir_layer(xp2, whh2_ref[...], H2)

        # ---- torch.mean over time; dropout2 identity; single dense store ----
        acc_f = hf2[0]
        acc_b = hb2[0]
        for t in range(1, T):
            acc_f = acc_f + hf2[t]
            acc_b = acc_b + hb2[t]
        inv_t = 1.0 / T
        out_ref[...] = (jnp.concatenate([acc_f, acc_b], axis=1) * inv_t
                        ).astype(out_ref.dtype)

    return kernel


# ----------------------------------------------------------------------------
# Wrapper: layout plumbing (batch padding, time-major ids) + pallas_call.
# ----------------------------------------------------------------------------
def bilstm_encoder_forward(x_ids, params):
    B, T = x_ids.shape
    V, E = params["emb"].shape
    H1 = params["whh1_bd"].shape[0] // 2
    H2 = params["whh2_bd"].shape[0] // 2

    # Pad batch to a sublane multiple so per-timestep slabs are (8,*)-aligned.
    BP = max(8, ((B + 7) // 8) * 8)
    x_pad = jnp.zeros((BP, T), jnp.int32).at[:B, :].set(x_ids.astype(jnp.int32))
    # Time-major flat ids: timestep t occupies rows [t*BP, (t+1)*BP).
    ids_tb = x_pad.T.reshape(T * BP, 1)

    kernel = make_bilstm_kernel(BP, T, V, H1, H2)

    out2d = pl.pallas_call(
        kernel,
        out_shape=jax.ShapeDtypeStruct((BP, 2 * H2), jnp.float32),
        grid=(1,),
        in_specs=[
            pl.BlockSpec((T * BP, 1), lambda i: (0, 0)),          # token ids (time-major)
            pl.BlockSpec((V, E), lambda i: (0, 0)),               # embedding table
            pl.BlockSpec((E, 8 * H1), lambda i: (0, 0)),          # lstm1 W_ih (fwd|bwd)
            pl.BlockSpec((1, 8 * H1), lambda i: (0, 0)),          # lstm1 b_ih+b_hh (fwd|bwd)
            pl.BlockSpec((2 * H1, 8 * H1), lambda i: (0, 0)),     # lstm1 W_hh block-diag
            pl.BlockSpec((2 * H1, 8 * H2), lambda i: (0, 0)),     # lstm2 W_ih (fwd|bwd)
            pl.BlockSpec((1, 8 * H2), lambda i: (0, 0)),          # lstm2 b_ih+b_hh (fwd|bwd)
            pl.BlockSpec((2 * H2, 8 * H2), lambda i: (0, 0)),     # lstm2 W_hh block-diag
        ],
        out_specs=pl.BlockSpec((BP, 2 * H2), lambda i: (0, 0)),
        compiler_params=pltpu.CompilerParams(dimension_semantics=("arbitrary",)),
    )(ids_tb, params["emb"], params["wih1"], params["b1"], params["whh1_bd"],
      params["wih2"], params["b2"], params["whh2_bd"])

    # Drop batch padding; torch.mean(..., axis=1, keepdim=True) -> (B, 1, 2*out_dim).
    return out2d[:B, None, :]


# ----------------------------------------------------------------------------
# Deterministic parameter construction (PyTorch layouts -> kernel layouts).
# ----------------------------------------------------------------------------
def make_params(key, vocab_size, embedding_dim, hidden_dim, out_dim):
    H1 = hidden_dim * 2      # lstm1 hidden size
    H2 = out_dim             # lstm2 hidden size
    E = embedding_dim
    ks = jax.random.split(key, 17)

    def rn(k, shape, scale=0.1):
        return scale * jax.random.normal(k, shape, jnp.float32)

    emb = rn(ks[0], (vocab_size, E), 1.0)
    # PyTorch nn.LSTM parameter layouts (gate order i, f, g, o).
    w_ih1f = rn(ks[1], (4 * H1, E));       w_hh1f = rn(ks[2], (4 * H1, H1))
    b_ih1f = rn(ks[3], (4 * H1,));         b_hh1f = rn(ks[4], (4 * H1,))
    w_ih1b = rn(ks[5], (4 * H1, E));       w_hh1b = rn(ks[6], (4 * H1, H1))
    b_ih1b = rn(ks[7], (4 * H1,));         b_hh1b = rn(ks[8], (4 * H1,))
    w_ih2f = rn(ks[9], (4 * H2, 2 * H1));  w_hh2f = rn(ks[10], (4 * H2, H2))
    b_ih2f = rn(ks[11], (4 * H2,));        b_hh2f = rn(ks[12], (4 * H2,))
    w_ih2b = rn(ks[13], (4 * H2, 2 * H1)); w_hh2b = rn(ks[14], (4 * H2, H2))
    b_ih2b = rn(ks[15], (4 * H2,));        b_hh2b = rn(ks[16], (4 * H2,))

    torch_params = dict(
        emb=emb,
        lstm1_f=(w_ih1f, w_hh1f, b_ih1f, b_hh1f),
        lstm1_b=(w_ih1b, w_hh1b, b_ih1b, b_hh1b),
        lstm2_f=(w_ih2f, w_hh2f, b_ih2f, b_hh2f),
        lstm2_b=(w_ih2b, w_hh2b, b_ih2b, b_hh2b),
    )

    def blockdiag(whf, whb, H):
        # [h_f | h_b] @ blockdiag -> cols [0:4H] fwd gates, [4H:8H] bwd gates.
        m = jnp.zeros((2 * H, 8 * H), jnp.float32)
        m = m.at[0:H, 0:4 * H].set(whf.T)
        m = m.at[H:2 * H, 4 * H:8 * H].set(whb.T)
        return m

    params = dict(
        emb=emb,
        # Fused input projections: columns [0:4H] = forward dir, [4H:8H] = backward dir.
        wih1=jnp.concatenate([w_ih1f.T, w_ih1b.T], axis=1),                        # (E, 8*H1)
        b1=jnp.concatenate([b_ih1f + b_hh1f, b_ih1b + b_hh1b]).reshape(1, 8 * H1),
        whh1_bd=blockdiag(w_hh1f, w_hh1b, H1),                                     # (2*H1, 8*H1)
        wih2=jnp.concatenate([w_ih2f.T, w_ih2b.T], axis=1),                        # (2*H1, 8*H2)
        b2=jnp.concatenate([b_ih2f + b_hh2f, b_ih2b + b_hh2b]).reshape(1, 8 * H2),
        whh2_bd=blockdiag(w_hh2f, w_hh2b, H2),                                     # (2*H2, 8*H2)
    )
    return params, torch_params


# ----------------------------------------------------------------------------
# Pure-JAX reference (mirrors PyTorch eval-mode BiLSTMEncoder.forward).
# ----------------------------------------------------------------------------
def _lstm_dir_ref(xs, p, reverse):
    w_ih, w_hh, b_ih, b_hh = p
    H = w_hh.shape[1]
    B, T, _ = xs.shape
    h = jnp.zeros((B, H), jnp.float32)
    c = jnp.zeros((B, H), jnp.float32)
    outs = [None] * T
    order = range(T - 1, -1, -1) if reverse else range(T)
    for t in order:
        g = xs[:, t, :] @ w_ih.T + b_ih + h @ w_hh.T + b_hh
        i = 1.0 / (1.0 + jnp.exp(-g[:, 0:H]))
        f = 1.0 / (1.0 + jnp.exp(-g[:, H:2 * H]))
        gg = jnp.tanh(g[:, 2 * H:3 * H])
        o = 1.0 / (1.0 + jnp.exp(-g[:, 3 * H:4 * H]))
        c = f * c + i * gg
        h = o * jnp.tanh(c)
        outs[t] = h
    return jnp.stack(outs, axis=1)


def _bidir_lstm_ref(xs, pf, pb):
    return jnp.concatenate([_lstm_dir_ref(xs, pf, False),
                            _lstm_dir_ref(xs, pb, True)], axis=-1)


def reference_forward(x_ids, tp):
    emd = tp["emb"][x_ids]                                      # embedding gather (B,T,E)
    out1 = _bidir_lstm_ref(emd, tp["lstm1_f"], tp["lstm1_b"])   # dropout1 = identity (eval)
    out2 = _bidir_lstm_ref(out1, tp["lstm2_f"], tp["lstm2_b"])  # dropout2 = identity (eval)
    return jnp.mean(out2, axis=1, keepdims=True)                # (B, 1, 2*out_dim)


if __name__ == "__main__":
    # Small shapes consistent with the module: batch=2, seq=8, vocab=16,
    # embedding_dim=8, hidden_dim=16 (-> H1=32), out_dim=16 (-> output 2*16=32),
    # n_layers=1, bidirectional=True, dropout in eval mode.
    B, T = 2, 8
    vocab_size, embedding_dim, hidden_dim, out_dim = 16, 8, 16, 16

    key = jax.random.PRNGKey(0)
    kx, kp = jax.random.split(key)
    x_ids = jax.random.randint(kx, (B, T), 0, vocab_size, dtype=jnp.int32)

    params, torch_params = make_params(kp, vocab_size, embedding_dim, hidden_dim, out_dim)

    y = jax.block_until_ready(bilstm_encoder_forward(x_ids, params))
    y_ref = jax.block_until_ready(reference_forward(x_ids, torch_params))

    assert y.shape == (B, 1, 2 * out_dim), y.shape
    np.testing.assert_allclose(np.asarray(y), np.asarray(y_ref), rtol=2e-3, atol=2e-3)

    print("KERNEL_OK")
</pallas_src>

<mosaic_0001>
module attributes {stable_mosaic.version = 11 : i64} {
  func.func @kernel(%arg0: i32, %arg1: memref<64x1xi32, #tpu.memory_space<vmem>>, %arg2: memref<16x8xf32, #tpu.memory_space<vmem>>, %arg3: memref<8x256xf32, #tpu.memory_space<vmem>>, %arg4: memref<1x256xf32, #tpu.memory_space<vmem>>, %arg5: memref<64x256xf32, #tpu.memory_space<vmem>>, %arg6: memref<64x128xf32, #tpu.memory_space<vmem>>, %arg7: memref<1x128xf32, #tpu.memory_space<vmem>>, %arg8: memref<32x128xf32, #tpu.memory_space<vmem>>, %arg9: memref<8x32xf32, #tpu.memory_space<vmem>>) attributes {dimension_semantics = [#tpu.dimension_semantics<arbitrary>], iteration_bounds = array<i64: 1>, scalar_prefetch = 0 : i64, scratch_operands = 0 : i64, tpu.core_type = #tpu.core_type<tc>, window_params = [{pipeline_mode = #tpu.pipeline_mode<synchronous>, transform_indices = @transform_0, window_bounds = array<i64: 64, 1>}, {pipeline_mode = #tpu.pipeline_mode<synchronous>, transform_indices = @transform_1, window_bounds = array<i64: 16, 8>}, {pipeline_mode = #tpu.pipeline_mode<synchronous>, transform_indices = @transform_2, window_bounds = array<i64: 8, 256>}, {pipeline_mode = #tpu.pipeline_mode<synchronous>, transform_indices = @transform_3, window_bounds = array<i64: 1, 256>}, {pipeline_mode = #tpu.pipeline_mode<synchronous>, transform_indices = @transform_4, window_bounds = array<i64: 64, 256>}, {pipeline_mode = #tpu.pipeline_mode<synchronous>, transform_indices = @transform_5, window_bounds = array<i64: 64, 128>}, {pipeline_mode = #tpu.pipeline_mode<synchronous>, transform_indices = @transform_6, window_bounds = array<i64: 1, 128>}, {pipeline_mode = #tpu.pipeline_mode<synchronous>, transform_indices = @transform_7, window_bounds = array<i64: 32, 128>}, {pipeline_mode = #tpu.pipeline_mode<synchronous>, transform_indices = @transform_8, window_bounds = array<i64: 8, 32>}]} {
    %c0 = arith.constant 0 : index
    %c0_0 = arith.constant 0 : index
    %0 = vector.load %arg1[%c0, %c0_0] : memref<64x1xi32, #tpu.memory_space<vmem>>, vector<64x1xi32>
    %1 = tpu.iota {dimensions = array<i32: 1>} : vector<64x16xi32>
    %2 = vector.broadcast %0 : vector<64x1xi32> to vector<64x16xi32>
    %3 = arith.cmpi eq, %1, %2 : vector<64x16xi32>
    %4 = arith.extui %3 : vector<64x16xi1> to vector<64x16xi32>
    %5 = arith.sitofp %4 : vector<64x16xi32> to vector<64x16xf32>
    %c0_1 = arith.constant 0 : index
    %c0_2 = arith.constant 0 : index
    %6 = vector.load %arg2[%c0_1, %c0_2] : memref<16x8xf32, #tpu.memory_space<vmem>>, vector<16x8xf32>
    %cst = arith.constant dense<0.000000e+00> : vector<64x8xf32>
    %7 = tpu.matmul %5, %6, %cst {dimension_numbers = #tpu.dot_dimension_numbers<[1], [0], [0], [1], [0, 0, 1, 1], [], []>} : vector<64x16xf32>, vector<16x8xf32>, vector<64x8xf32> -> vector<64x8xf32>
    %c0_3 = arith.constant 0 : index
    %c0_4 = arith.constant 0 : index
    %8 = vector.load %arg3[%c0_3, %c0_4] : memref<8x256xf32, #tpu.memory_space<vmem>>, vector<8x256xf32>
    %cst_5 = arith.constant dense<0.000000e+00> : vector<64x256xf32>
    %9 = tpu.matmul %7, %8, %cst_5 {dimension_numbers = #tpu.dot_dimension_numbers<[1], [0], [0], [1], [0, 0, 1, 1], [], []>} : vector<64x8xf32>, vector<8x256xf32>, vector<64x256xf32> -> vector<64x256xf32>
    %c0_6 = arith.constant 0 : index
    %c0_7 = arith.constant 0 : index
    %10 = vector.load %arg4[%c0_6, %c0_7] : memref<1x256xf32, #tpu.memory_space<vmem>>, vector<1x256xf32>
    %11 = vector.broadcast %10 : vector<1x256xf32> to vector<64x256xf32>
    %12 = arith.addf %9, %11 : vector<64x256xf32>
    %c0_8 = arith.constant 0 : index
    %c0_9 = arith.constant 0 : index
    %13 = vector.load %arg5[%c0_8, %c0_9] : memref<64x256xf32, #tpu.memory_space<vmem>>, vector<64x256xf32>
    %cst_10 = arith.constant 0.000000e+00 : f32
    %14 = vector.broadcast %cst_10 : f32 to vector<8x64xf32>
    %cst_11 = arith.constant 0.000000e+00 : f32
    %15 = vector.broadcast %cst_11 : f32 to vector<8x32xf32>
    %cst_12 = arith.constant 0.000000e+00 : f32
    %16 = vector.broadcast %cst_12 : f32 to vector<8x32xf32>
    %cst_13 = arith.constant dense<0.000000e+00> : vector<8x256xf32>
    %17 = tpu.matmul %14, %13, %cst_13 {dimension_numbers = #tpu.dot_dimension_numbers<[1], [0], [0], [1], [0, 0, 1, 1], [], []>} : vector<8x64xf32>, vector<64x256xf32>, vector<8x256xf32> -> vector<8x256xf32>
    %18 = vector.extract_strided_slice %12 {offsets = [0, 0], sizes = [8, 128], strides = [1, 1]} : vector<64x256xf32> to vector<8x128xf32>
    %19 = vector.extract_strided_slice %17 {offsets = [0, 0], sizes = [8, 128], strides = [1, 1]} : vector<8x256xf32> to vector<8x128xf32>
    %20 = arith.addf %18, %19 : vector<8x128xf32>
    %21 = vector.extract_strided_slice %12 {offsets = [56, 128], sizes = [8, 128], strides = [1, 1]} : vector<64x256xf32> to vector<8x128xf32>
    %22 = vector.extract_strided_slice %17 {offsets = [0, 128], sizes = [8, 128], strides = [1, 1]} : vector<8x256xf32> to vector<8x128xf32>
    %23 = arith.addf %21, %22 : vector<8x128xf32>
    %24 = vector.extract_strided_slice %20 {offsets = [0, 0], sizes = [8, 32], strides = [1, 1]} : vector<8x128xf32> to vector<8x32xf32>
    %cst_14 = arith.constant 5.000000e-01 : f32
    %25 = vector.broadcast %cst_14 : f32 to vector<8x32xf32>
    %26 = arith.mulf %25, %24 : vector<8x32xf32>
    %27 = math.tanh %26 : vector<8x32xf32>
    %cst_15 = arith.constant 5.000000e-01 : f32
    %28 = vector.broadcast %cst_15 : f32 to vector<8x32xf32>
    %29 = arith.mulf %28, %27 : vector<8x32xf32>
    %cst_16 = arith.constant 5.000000e-01 : f32
    %30 = vector.broadcast %cst_16 : f32 to vector<8x32xf32>
    %31 = arith.addf %29, %30 : vector<8x32xf32>
    %32 = vector.extract_strided_slice %20 {offsets = [0, 32], sizes = [8, 32], strides = [1, 1]} : vector<8x128xf32> to vector<8x32xf32>
    %cst_17 = arith.constant 5.000000e-01 : f32
    %33 = vector.broadcast %cst_17 : f32 to vector<8x32xf32>
    %34 = arith.mulf %33, %32 : vector<8x32xf32>
    %35 = math.tanh %34 : vector<8x32xf32>
    %cst_18 = arith.constant 5.000000e-01 : f32
    %36 = vector.broadcast %cst_18 : f32 to vector<8x32xf32>
    %37 = arith.mulf %36, %35 : vector<8x32xf32>
    %cst_19 = arith.constant 5.000000e-01 : f32
    %38 = vector.broadcast %cst_19 : f32 to vector<8x32xf32>
    %39 = arith.addf %37, %38 : vector<8x32xf32>
    %40 = vector.extract_strided_slice %20 {offsets = [0, 64], sizes = [8, 32], strides = [1, 1]} : vector<8x128xf32> to vector<8x32xf32>
    %41 = math.tanh %40 : vector<8x32xf32>
    %42 = vector.extract_strided_slice %20 {offsets = [0, 96], sizes = [8, 32], strides = [1, 1]} : vector<8x128xf32> to vector<8x32xf32>
    %cst_20 = arith.constant 5.000000e-01 : f32
    %43 = vector.broadcast %cst_20 : f32 to vector<8x32xf32>
    %44 = arith.mulf %43, %42 : vector<8x32xf32>
    %45 = math.tanh %44 : vector<8x32xf32>
    %cst_21 = arith.constant 5.000000e-01 : f32
    %46 = vector.broadcast %cst_21 : f32 to vector<8x32xf32>
    %47 = arith.mulf %46, %45 : vector<8x32xf32>
    %cst_22 = arith.constant 5.000000e-01 : f32
    %48 = vector.broadcast %cst_22 : f32 to vector<8x32xf32>
    %49 = arith.addf %47, %48 : vector<8x32xf32>
    %50 = arith.mulf %39, %15 : vector<8x32xf32>
    %51 = arith.mulf %31, %41 : vector<8x32xf32>
    %52 = arith.addf %50, %51 : vector<8x32xf32>
    %53 = math.tanh %52 : vector<8x32xf32>
    %54 = arith.mulf %49, %53 : vector<8x32xf32>
    %55 = vector.extract_strided_slice %23 {offsets = [0, 0], sizes = [8, 32], strides = [1, 1]} : vector<8x128xf32> to vector<8x32xf32>
    %cst_23 = arith.constant 5.000000e-01 : f32
    %56 = vector.broadcast %cst_23 : f32 to vector<8x32xf32>
    %57 = arith.mulf %56, %55 : vector<8x32xf32>
    %58 = math.tanh %57 : vector<8x32xf32>
    %cst_24 = arith.constant 5.000000e-01 : f32
    %59 = vector.broadcast %cst_24 : f32 to vector<8x32xf32>
    %60 = arith.mulf %59, %58 : vector<8x32xf32>
    %cst_25 = arith.constant 5.000000e-01 : f32
    %61 = vector.broadcast %cst_25 : f32 to vector<8x32xf32>
    %62 = arith.addf %60, %61 : vector<8x32xf32>
    %63 = vector.extract_strided_slice %23 {offsets = [0, 32], sizes = [8, 32], strides = [1, 1]} : vector<8x128xf32> to vector<8x32xf32>
    %cst_26 = arith.constant 5.000000e-01 : f32
    %64 = vector.broadcast %cst_26 : f32 to vector<8x32xf32>
    %65 = arith.mulf %64, %63 : vector<8x32xf32>
    %66 = math.tanh %65 : vector<8x32xf32>
    %cst_27 = arith.constant 5.000000e-01 : f32
    %67 = vector.broadcast %cst_27 : f32 to vector<8x32xf32>
    %68 = arith.mulf %67, %66 : vector<8x32xf32>
    %cst_28 = arith.constant 5.000000e-01 : f32
    %69 = vector.broadcast %cst_28 : f32 to vector<8x32xf32>
    %70 = arith.addf %68, %69 : vector<8x32xf32>
    %71 = vector.extract_strided_slice %23 {offsets = [0, 64], sizes = [8, 32], strides = [1, 1]} : vector<8x128xf32> to vector<8x32xf32>
    %72 = math.tanh %71 : vector<8x32xf32>
    %73 = vector.extract_strided_slice %23 {offsets = [0, 96], sizes = [8, 32], strides = [1, 1]} : vector<8x128xf32> to vector<8x32xf32>
    %cst_29 = arith.constant 5.000000e-01 : f32
    %74 = vector.broadcast %cst_29 : f32 to vector<8x32xf32>
    %75 = arith.mulf %74, %73 : vector<8x32xf32>
    %76 = math.tanh %75 : vector<8x32xf32>
    %cst_30 = arith.constant 5.000000e-01 : f32
    %77 = vector.broadcast %cst_30 : f32 to vector<8x32xf32>
    %78 = arith.mulf %77, %76 : vector<8x32xf32>
    %cst_31 = arith.constant 5.000000e-01 : f32
    %79 = vector.broadcast %cst_31 : f32 to vector<8x32xf32>
    %80 = arith.addf %78, %79 : vector<8x32xf32>
    %81 = arith.mulf %70, %16 : vector<8x32xf32>
    %82 = arith.mulf %62, %72 : vector<8x32xf32>
    %83 = arith.addf %81, %82 : vector<8x32xf32>
    %84 = math.tanh %83 : vector<8x32xf32>
    %85 = arith.mulf %80, %84 : vector<8x32xf32>
    %86 = tpu.concatenate %54, %85 in 1 : vector<8x32xf32>, vector<8x32xf32> -> vector<8x64xf32>
    %cst_32 = arith.constant dense<0.000000e+00> : vector<8x256xf32>
    %87 = tpu.matmul %86, %13, %cst_32 {dimension_numbers = #tpu.dot_dimension_numbers<[1], [0], [0], [1], [0, 0, 1, 1], [], []>} : vector<8x64xf32>, vector<64x256xf32>, vector<8x256xf32> -> vector<8x256xf32>
    %88 = vector.extract_strided_slice %12 {offsets = [8, 0], sizes = [8, 128], strides = [1, 1]} : vector<64x256xf32> to vector<8x128xf32>
    %89 = vector.extract_strided_slice %87 {offsets = [0, 0], sizes = [8, 128], strides = [1, 1]} : vector<8x256xf32> to vector<8x128xf32>
    %90 = arith.addf %88, %89 : vector<8x128xf32>
    %91 = vector.extract_strided_slice %12 {offsets = [48, 128], sizes = [8, 128], strides = [1, 1]} : vector<64x256xf32> to vector<8x128xf32>
    %92 = vector.extract_strided_slice %87 {offsets = [0, 128], sizes = [8, 128], strides = [1, 1]} : vector<8x256xf32> to vector<8x128xf32>
    %93 = arith.addf %91, %92 : vector<8x128xf32>
    %94 = vector.extract_strided_slice %90 {offsets = [0, 0], sizes = [8, 32], strides = [1, 1]} : vector<8x128xf32> to vector<8x32xf32>
    %cst_33 = arith.constant 5.000000e-01 : f32
    %95 = vector.broadcast %cst_33 : f32 to vector<8x32xf32>
    %96 = arith.mulf %95, %94 : vector<8x32xf32>
    %97 = math.tanh %96 : vector<8x32xf32>
    %cst_34 = arith.constant 5.000000e-01 : f32
    %98 = vector.broadcast %cst_34 : f32 to vector<8x32xf32>
    %99 = arith.mulf %98, %97 : vector<8x32xf32>
    %cst_35 = arith.constant 5.000000e-01 : f32
    %100 = vector.broadcast %cst_35 : f32 to vector<8x32xf32>
    %101 = arith.addf %99, %100 : vector<8x32xf32>
    %102 = vector.extract_strided_slice %90 {offsets = [0, 32], sizes = [8, 32], strides = [1, 1]} : vector<8x128xf32> to vector<8x32xf32>
    %cst_36 = arith.constant 5.000000e-01 : f32
    %103 = vector.broadcast %cst_36 : f32 to vector<8x32xf32>
    %104 = arith.mulf %103, %102 : vector<8x32xf32>
    %105 = math.tanh %104 : vector<8x32xf32>
    %cst_37 = arith.constant 5.000000e-01 : f32
    %106 = vector.broadcast %cst_37 : f32 to vector<8x32xf32>
    %107 = arith.mulf %106, %105 : vector<8x32xf32>
    %cst_38 = arith.constant 5.000000e-01 : f32
    %108 = vector.broadcast %cst_38 : f32 to vector<8x32xf32>
    %109 = arith.addf %107, %108 : vector<8x32xf32>
    %110 = vector.extract_strided_slice %90 {offsets = [0, 64], sizes = [8, 32], strides = [1, 1]} : vector<8x128xf32> to vector<8x32xf32>
    %111 = math.tanh %110 : vector<8x32xf32>
    %112 = vector.extract_strided_slice %90 {offsets = [0, 96], sizes = [8, 32], strides = [1, 1]} : vector<8x128xf32> to vector<8x32xf32>
    %cst_39 = arith.constant 5.000000e-01 : f32
    %113 = vector.broadcast %cst_39 : f32 to vector<8x32xf32>
    %114 = arith.mulf %113, %112 : vector<8x32xf32>
    %115 = math.tanh %114 : vector<8x32xf32>
    %cst_40 = arith.constant 5.000000e-01 : f32
    %116 = vector.broadcast %cst_40 : f32 to vector<8x32xf32>
    %117 = arith.mulf %116, %115 : vector<8x32xf32>
    %cst_41 = arith.constant 5.000000e-01 : f32
    %118 = vector.broadcast %cst_41 : f32 to vector<8x32xf32>
    %119 = arith.addf %117, %118 : vector<8x32xf32>
    %120 = arith.mulf %109, %52 : vector<8x32xf32>
    %121 = arith.mulf %101, %111 : vector<8x32xf32>
    %122 = arith.addf %120, %121 : vector<8x32xf32>
    %123 = math.tanh %122 : vector<8x32xf32>
    %124 = arith.mulf %119, %123 : vector<8x32xf32>
    %125 = vector.extract_strided_slice %93 {offsets = [0, 0], sizes = [8, 32], strides = [1, 1]} : vector<8x128xf32> to vector<8x32xf32>
    %cst_42 = arith.constant 5.000000e-01 : f32
    %126 = vector.broadcast %cst_42 : f32 to vector<8x32xf32>
    %127 = arith.mulf %126, %125 : vector<8x32xf32>
    %128 = math.tanh %127 : vector<8x32xf32>
    %cst_43 = arith.constant 5.000000e-01 : f32
    %129 = vector.broadcast %cst_43 : f32 to vector<8x32xf32>
    %130 = arith.mulf %129, %128 : vector<8x32xf32>
    %cst_44 = arith.constant 5.000000e-01 : f32
    %131 = vector.broadcast %cst_44 : f32 to vector<8x32xf32>
    %132 = arith.addf %130, %131 : vector<8x32xf32>
    %133 = vector.extract_strided_slice %93 {offsets = [0, 32], sizes = [8, 32], strides = [1, 1]} : vector<8x128xf32> to vector<8x32xf32>
    %cst_45 = arith.constant 5.000000e-01 : f32
    %134 = vector.broadcast %cst_45 : f32 to vector<8x32xf32>
    %135 = arith.mulf %134, %133 : vector<8x32xf32>
    %136 = math.tanh %135 : vector<8x32xf32>
    %cst_46 = arith.constant 5.000000e-01 : f32
    %137 = vector.broadcast %cst_46 : f32 to vector<8x32xf32>
    %138 = arith.mulf %137, %136 : vector<8x32xf32>
    %cst_47 = arith.constant 5.000000e-01 : f32
    %139 = vector.broadcast %cst_47 : f32 to vector<8x32xf32>
    %140 = arith.addf %138, %139 : vector<8x32xf32>
    %141 = vector.extract_strided_slice %93 {offsets = [0, 64], sizes = [8, 32], strides = [1, 1]} : vector<8x128xf32> to vector<8x32xf32>
    %142 = math.tanh %141 : vector<8x32xf32>
    %143 = vector.extract_strided_slice %93 {offsets = [0, 96], sizes = [8, 32], strides = [1, 1]} : vector<8x128xf32> to vector<8x32xf32>
    %cst_48 = arith.constant 5.000000e-01 : f32
    %144 = vector.broadcast %cst_48 : f32 to vector<8x32xf32>
    %145 = arith.mulf %144, %143 : vector<8x32xf32>
    %146 = math.tanh %145 : vector<8x32xf32>
    %cst_49 = arith.constant 5.000000e-01 : f32
    %147 = vector.broadcast %cst_49 : f32 to vector<8x32xf32>
    %148 = arith.mulf %147, %146 : vector<8x32xf32>
    %cst_50 = arith.constant 5.000000e-01 : f32
    %149 = vector.broadcast %cst_50 : f32 to vector<8x32xf32>
    %150 = arith.addf %148, %149 : vector<8x32xf32>
    %151 = arith.mulf %140, %83 : vector<8x32xf32>
    %152 = arith.mulf %132, %142 : vector<8x32xf32>
    %153 = arith.addf %151, %152 : vector<8x32xf32>
    %154 = math.tanh %153 : vector<8x32xf32>
    %155 = arith.mulf %150, %154 : vector<8x32xf32>
    %156 = tpu.concatenate %124, %155 in 1 : vector<8x32xf32>, vector<8x32xf32> -> vector<8x64xf32>
    %cst_51 = arith.constant dense<0.000000e+00> : vector<8x256xf32>
    %157 = tpu.matmul %156, %13, %cst_51 {dimension_numbers = #tpu.dot_dimension_numbers<[1], [0], [0], [1], [0, 0, 1, 1], [], []>} : vector<8x64xf32>, vector<64x256xf32>, vector<8x256xf32> -> vector<8x256xf32>
    %158 = vector.extract_strided_slice %12 {offsets = [16, 0], sizes = [8, 128], strides = [1, 1]} : vector<64x256xf32> to vector<8x128xf32>
    %159 = vector.extract_strided_slice %157 {offsets = [0, 0], sizes = [8, 128], strides = [1, 1]} : vector<8x256xf32> to vector<8x128xf32>
    %160 = arith.addf %158, %159 : vector<8x128xf32>
    %161 = vector.extract_strided_slice %12 {offsets = [40, 128], sizes = [8, 128], strides = [1, 1]} : vector<64x256xf32> to vector<8x128xf32>
    %162 = vector.extract_strided_slice %157 {offsets = [0, 128], sizes = [8, 128], strides = [1, 1]} : vector<8x256xf32> to vector<8x128xf32>
    %163 = arith.addf %161, %162 : vector<8x128xf32>
    %164 = vector.extract_strided_slice %160 {offsets = [0, 0], sizes = [8, 32], strides = [1, 1]} : vector<8x128xf32> to vector<8x32xf32>
    %cst_52 = arith.constant 5.000000e-01 : f32
    %165 = vector.broadcast %cst_52 : f32 to vector<8x32xf32>
    %166 = arith.mulf %165, %164 : vector<8x32xf32>
    %167 = math.tanh %166 : vector<8x32xf32>
    %cst_53 = arith.constant 5.000000e-01 : f32
    %168 = vector.broadcast %cst_53 : f32 to vector<8x32xf32>
    %169 = arith.mulf %168, %167 : vector<8x32xf32>
    %cst_54 = arith.constant 5.000000e-01 : f32
    %170 = vector.broadcast %cst_54 : f32 to vector<8x32xf32>
    %171 = arith.addf %169, %170 : vector<8x32xf32>
    %172 = vector.extract_strided_slice %160 {offsets = [0, 32], sizes = [8, 32], strides = [1, 1]} : vector<8x128xf32> to vector<8x32xf32>
    %cst_55 = arith.constant 5.000000e-01 : f32
    %173 = vector.broadcast %cst_55 : f32 to vector<8x32xf32>
    %174 = arith.mulf %173, %172 : vector<8x32xf32>
    %175 = math.tanh %174 : vector<8x32xf32>
    %cst_56 = arith.constant 5.000000e-01 : f32
    %176 = vector.broadcast %cst_56 : f32 to vector<8x32xf32>
    %177 = arith.mulf %176, %175 : vector<8x32xf32>
    %cst_57 = arith.constant 5.000000e-01 : f32
    %178 = vector.broadcast %cst_57 : f32 to vector<8x32xf32>
    %179 = arith.addf %177, %178 : vector<8x32xf32>
    %180 = vector.extract_strided_slice %160 {offsets = [0, 64], sizes = [8, 32], strides = [1, 1]} : vector<8x128xf32> to vector<8x32xf32>
    %181 = math.tanh %180 : vector<8x32xf32>
    %182 = vector.extract_strided_slice %160 {offsets = [0, 96], sizes = [8, 32], strides = [1, 1]} : vector<8x128xf32> to vector<8x32xf32>
    %cst_58 = arith.constant 5.000000e-01 : f32
    %183 = vector.broadcast %cst_58 : f32 to vector<8x32xf32>
    %184 = arith.mulf %183, %182 : vector<8x32xf32>
    %185 = math.tanh %184 : vector<8x32xf32>
    %cst_59 = arith.constant 5.000000e-01 : f32
    %186 = vector.broadcast %cst_59 : f32 to vector<8x32xf32>
    %187 = arith.mulf %186, %185 : vector<8x32xf32>
    %cst_60 = arith.constant 5.000000e-01 : f32
    %188 = vector.broadcast %cst_60 : f32 to vector<8x32xf32>
    %189 = arith.addf %187, %188 : vector<8x32xf32>
    %190 = arith.mulf %179, %122 : vector<8x32xf32>
    %191 = arith.mulf %171, %181 : vector<8x32xf32>
    %192 = arith.addf %190, %191 : vector<8x32xf32>
    %193 = math.tanh %192 : vector<8x32xf32>
    %194 = arith.mulf %189, %193 : vector<8x32xf32>
    %195 = vector.extract_strided_slice %163 {offsets = [0, 0], sizes = [8, 32], strides = [1, 1]} : vector<8x128xf32> to vector<8x32xf32>
    %cst_61 = arith.constant 5.000000e-01 : f32
    %196 = vector.broadcast %cst_61 : f32 to vector<8x32xf32>
    %197 = arith.mulf %196, %195 : vector<8x32xf32>
    %198 = math.tanh %197 : vector<8x32xf32>
    %cst_62 = arith.constant 5.000000e-01 : f32
    %199 = vector.broadcast %cst_62 : f32 to vector<8x32xf32>
    %200 = arith.mulf %199, %198 : vector<8x32xf32>
    %cst_63 = arith.constant 5.000000e-01 : f32
    %201 = vector.broadcast %cst_63 : f32 to vector<8x32xf32>
    %202 = arith.addf %200, %201 : vector<8x32xf32>
    %203 = vector.extract_strided_slice %163 {offsets = [0, 32], sizes = [8, 32], strides = [1, 1]} : vector<8x128xf32> to vector<8x32xf32>
    %cst_64 = arith.constant 5.000000e-01 : f32
    %204 = vector.broadcast %cst_64 : f32 to vector<8x32xf32>
    %205 = arith.mulf %204, %203 : vector<8x32xf32>
    %206 = math.tanh %205 : vector<8x32xf32>
    %cst_65 = arith.constant 5.000000e-01 : f32
    %207 = vector.broadcast %cst_65 : f32 to vector<8x32xf32>
    %208 = arith.mulf %207, %206 : vector<8x32xf32>
    %cst_66 = arith.constant 5.000000e-01 : f32
    %209 = vector.broadcast %cst_66 : f32 to vector<8x32xf32>
    %210 = arith.addf %208, %209 : vector<8x32xf32>
    %211 = vector.extract_strided_slice %163 {offsets = [0, 64], sizes = [8, 32], strides = [1, 1]} : vector<8x128xf32> to vector<8x32xf32>
    %212 = math.tanh %211 : vector<8x32xf32>
    %213 = vector.extract_strided_slice %163 {offsets = [0, 96], sizes = [8, 32], strides = [1, 1]} : vector<8x128xf32> to vector<8x32xf32>
    %cst_67 = arith.constant 5.000000e-01 : f32
    %214 = vector.broadcast %cst_67 : f32 to vector<8x32xf32>
    %215 = arith.mulf %214, %213 : vector<8x32xf32>
    %216 = math.tanh %215 : vector<8x32xf32>
    %cst_68 = arith.constant 5.000000e-01 : f32
    %217 = vector.broadcast %cst_68 : f32 to vector<8x32xf32>
    %218 = arith.mulf %217, %216 : vector<8x32xf32>
    %cst_69 = arith.constant 5.000000e-01 : f32
    %219 = vector.broadcast %cst_69 : f32 to vector<8x32xf32>
    %220 = arith.addf %218, %219 : vector<8x32xf32>
    %221 = arith.mulf %210, %153 : vector<8x32xf32>
    %222 = arith.mulf %202, %212 : vector<8x32xf32>
    %223 = arith.addf %221, %222 : vector<8x32xf32>
    %224 = math.tanh %223 : vector<8x32xf32>
    %225 = arith.mulf %220, %224 : vector<8x32xf32>
    %226 = tpu.concatenate %194, %225 in 1 : vector<8x32xf32>, vector<8x32xf32> -> vector<8x64xf32>
    %cst_70 = arith.constant dense<0.000000e+00> : vector<8x256xf32>
    %227 = tpu.matmul %226, %13, %cst_70 {dimension_numbers = #tpu.dot_dimension_numbers<[1], [0], [0], [1], [0, 0, 1, 1], [], []>} : vector<8x64xf32>, vector<64x256xf32>, vector<8x256xf32> -> vector<8x256xf32>
    %228 = vector.extract_strided_slice %12 {offsets = [24, 0], sizes = [8, 128], strides = [1, 1]} : vector<64x256xf32> to vector<8x128xf32>
    %229 = vector.extract_strided_slice %227 {offsets = [0, 0], sizes = [8, 128], strides = [1, 1]} : vector<8x256xf32> to vector<8x128xf32>
    %230 = arith.addf %228, %229 : vector<8x128xf32>
    %231 = vector.extract_strided_slice %12 {offsets = [32, 128], sizes = [8, 128], strides = [1, 1]} : vector<64x256xf32> to vector<8x128xf32>
    %232 = vector.extract_strided_slice %227 {offsets = [0, 128], sizes = [8, 128], strides = [1, 1]} : vector<8x256xf32> to vector<8x128xf32>
    %233 = arith.addf %231, %232 : vector<8x128xf32>
    %234 = vector.extract_strided_slice %230 {offsets = [0, 0], sizes = [8, 32], strides = [1, 1]} : vector<8x128xf32> to vector<8x32xf32>
    %cst_71 = arith.constant 5.000000e-01 : f32
    %235 = vector.broadcast %cst_71 : f32 to vector<8x32xf32>
    %236 = arith.mulf %235, %234 : vector<8x32xf32>
    %237 = math.tanh %236 : vector<8x32xf32>
    %cst_72 = arith.constant 5.000000e-01 : f32
    %238 = vector.broadcast %cst_72 : f32 to vector<8x32xf32>
    %239 = arith.mulf %238, %237 : vector<8x32xf32>
    %cst_73 = arith.constant 5.000000e-01 : f32
    %240 = vector.broadcast %cst_73 : f32 to vector<8x32xf32>
    %241 = arith.addf %239, %240 : vector<8x32xf32>
    %242 = vector.extract_strided_slice %230 {offsets = [0, 32], sizes = [8, 32], strides = [1, 1]} : vector<8x128xf32> to vector<8x32xf32>
    %cst_74 = arith.constant 5.000000e-01 : f32
    %243 = vector.broadcast %cst_74 : f32 to vector<8x32xf32>
    %244 = arith.mulf %243, %242 : vector<8x32xf32>
    %245 = math.tanh %244 : vector<8x32xf32>
    %cst_75 = arith.constant 5.000000e-01 : f32
    %246 = vector.broadcast %cst_75 : f32 to vector<8x32xf32>
    %247 = arith.mulf %246, %245 : vector<8x32xf32>
    %cst_76 = arith.constant 5.000000e-01 : f32
    %248 = vector.broadcast %cst_76 : f32 to vector<8x32xf32>
    %249 = arith.addf %247, %248 : vector<8x32xf32>
    %250 = vector.extract_strided_slice %230 {offsets = [0, 64], sizes = [8, 32], strides = [1, 1]} : vector<8x128xf32> to vector<8x32xf32>
    %251 = math.tanh %250 : vector<8x32xf32>
    %252 = vector.extract_strided_slice %230 {offsets = [0, 96], sizes = [8, 32], strides = [1, 1]} : vector<8x128xf32> to vector<8x32xf32>
    %cst_77 = arith.constant 5.000000e-01 : f32
    %253 = vector.broadcast %cst_77 : f32 to vector<8x32xf32>
    %254 = arith.mulf %253, %252 : vector<8x32xf32>
    %255 = math.tanh %254 : vector<8x32xf32>
    %cst_78 = arith.constant 5.000000e-01 : f32
    %256 = vector.broadcast %cst_78 : f32 to vector<8x32xf32>
    %257 = arith.mulf %256, %255 : vector<8x32xf32>
    %cst_79 = arith.constant 5.000000e-01 : f32
    %258 = vector.broadcast %cst_79 : f32 to vector<8x32xf32>
    %259 = arith.addf %257, %258 : vector<8x32xf32>
    %260 = arith.mulf %249, %192 : vector<8x32xf32>
    %261 = arith.mulf %241, %251 : vector<8x32xf32>
    %262 = arith.addf %260, %261 : vector<8x32xf32>
    %263 = math.tanh %262 : vector<8x32xf32>
    %264 = arith.mulf %259, %263 : vector<8x32xf32>
    %265 = vector.extract_strided_slice %233 {offsets = [0, 0], sizes = [8, 32], strides = [1, 1]} : vector<8x128xf32> to vector<8x32xf32>
    %cst_80 = arith.constant 5.000000e-01 : f32
    %266 = vector.broadcast %cst_80 : f32 to vector<8x32xf32>
    %267 = arith.mulf %266, %265 : vector<8x32xf32>
    %268 = math.tanh %267 : vector<8x32xf32>
    %cst_81 = arith.constant 5.000000e-01 : f32
    %269 = vector.broadcast %cst_81 : f32 to vector<8x32xf32>
    %270 = arith.mulf %269, %268 : vector<8x32xf32>
    %cst_82 = arith.constant 5.000000e-01 : f32
    %271 = vector.broadcast %cst_82 : f32 to vector<8x32xf32>
    %272 = arith.addf %270, %271 : vector<8x32xf32>
    %273 = vector.extract_strided_slice %233 {offsets = [0, 32], sizes = [8, 32], strides = [1, 1]} : vector<8x128xf32> to vector<8x32xf32>
    %cst_83 = arith.constant 5.000000e-01 : f32
    %274 = vector.broadcast %cst_83 : f32 to vector<8x32xf32>
    %275 = arith.mulf %274, %273 : vector<8x32xf32>
    %276 = math.tanh %275 : vector<8x32xf32>
    %cst_84 = arith.constant 5.000000e-01 : f32
    %277 = vector.broadcast %cst_84 : f32 to vector<8x32xf32>
    %278 = arith.mulf %277, %276 : vector<8x32xf32>
    %cst_85 = arith.constant 5.000000e-01 : f32
    %279 = vector.broadcast %cst_85 : f32 to vector<8x32xf32>
    %280 = arith.addf %278, %279 : vector<8x32xf32>
    %281 = vector.extract_strided_slice %233 {offsets = [0, 64], sizes = [8, 32], strides = [1, 1]} : vector<8x128xf32> to vector<8x32xf32>
    %282 = math.tanh %281 : vector<8x32xf32>
    %283 = vector.extract_strided_slice %233 {offsets = [0, 96], sizes = [8, 32], strides = [1, 1]} : vector<8x128xf32> to vector<8x32xf32>
    %cst_86 = arith.constant 5.000000e-01 : f32
    %284 = vector.broadcast %cst_86 : f32 to vector<8x32xf32>
    %285 = arith.mulf %284, %283 : vector<8x32xf32>
    %286 = math.tanh %285 : vector<8x32xf32>
    %cst_87 = arith.constant 5.000000e-01 : f32
    %287 = vector.broadcast %cst_87 : f32 to vector<8x32xf32>
    %288 = arith.mulf %287, %286 : vector<8x32xf32>
    %cst_88 = arith.constant 5.000000e-01 : f32
    %289 = vector.broadcast %cst_88 : f32 to vector<8x32xf32>
    %290 = arith.addf %288, %289 : vector<8x32xf32>
    %291 = arith.mulf %280, %223 : vector<8x32xf32>
    %292 = arith.mulf %272, %282 : vector<8x32xf32>
    %293 = arith.addf %291, %292 : vector<8x32xf32>
    %294 = math.tanh %293 : vector<8x32xf32>
    %295 = arith.mulf %290, %294 : vector<8x32xf32>
    %296 = tpu.concatenate %264, %295 in 1 : vector<8x32xf32>, vector<8x32xf32> -> vector<8x64xf32>
    %cst_89 = arith.constant dense<0.000000e+00> : vector<8x256xf32>
    %297 = tpu.matmul %296, %13, %cst_89 {dimension_numbers = #tpu.dot_dimension_numbers<[1], [0], [0], [1], [0, 0, 1, 1], [], []>} : vector<8x64xf32>, vector<64x256xf32>, vector<8x256xf32> -> vector<8x256xf32>
    %298 = vector.extract_strided_slice %12 {offsets = [32, 0], sizes = [8, 128], strides = [1, 1]} : vector<64x256xf32> to vector<8x128xf32>
    %299 = vector.extract_strided_slice %297 {offsets = [0, 0], sizes = [8, 128], strides = [1, 1]} : vector<8x256xf32> to vector<8x128xf32>
    %300 = arith.addf %298, %299 : vector<8x128xf32>
    %301 = vector.extract_strided_slice %12 {offsets = [24, 128], sizes = [8, 128], strides = [1, 1]} : vector<64x256xf32> to vector<8x128xf32>
    %302 = vector.extract_strided_slice %297 {offsets = [0, 128], sizes = [8, 128], strides = [1, 1]} : vector<8x256xf32> to vector<8x128xf32>
    %303 = arith.addf %301, %302 : vector<8x128xf32>
    %304 = vector.extract_strided_slice %300 {offsets = [0, 0], sizes = [8, 32], strides = [1, 1]} : vector<8x128xf32> to vector<8x32xf32>
    %cst_90 = arith.constant 5.000000e-01 : f32
    %305 = vector.broadcast %cst_90 : f32 to vector<8x32xf32>
    %306 = arith.mulf %305, %304 : vector<8x32xf32>
    %307 = math.tanh %306 : vector<8x32xf32>
    %cst_91 = arith.constant 5.000000e-01 : f32
    %308 = vector.broadcast %cst_91 : f32 to vector<8x32xf32>
    %309 = arith.mulf %308, %307 : vector<8x32xf32>
    %cst_92 = arith.constant 5.000000e-01 : f32
    %310 = vector.broadcast %cst_92 : f32 to vector<8x32xf32>
    %311 = arith.addf %309, %310 : vector<8x32xf32>
    %312 = vector.extract_strided_slice %300 {offsets = [0, 32], sizes = [8, 32], strides = [1, 1]} : vector<8x128xf32> to vector<8x32xf32>
    %cst_93 = arith.constant 5.000000e-01 : f32
    %313 = vector.broadcast %cst_93 : f32 to vector<8x32xf32>
    %314 = arith.mulf %313, %312 : vector<8x32xf32>
    %315 = math.tanh %314 : vector<8x32xf32>
    %cst_94 = arith.constant 5.000000e-01 : f32
    %316 = vector.broadcast %cst_94 : f32 to vector<8x32xf32>
    %317 = arith.mulf %316, %315 : vector<8x32xf32>
    %cst_95 = arith.constant 5.000000e-01 : f32
    %318 = vector.broadcast %cst_95 : f32 to vector<8x32xf32>
    %319 = arith.addf %317, %318 : vector<8x32xf32>
    %320 = vector.extract_strided_slice %300 {offsets = [0, 64], sizes = [8, 32], strides = [1, 1]} : vector<8x128xf32> to vector<8x32xf32>
    %321 = math.tanh %320 : vector<8x32xf32>
    %322 = vector.extract_strided_slice %300 {offsets = [0, 96], sizes = [8, 32], strides = [1, 1]} : vector<8x128xf32> to vector<8x32xf32>
    %cst_96 = arith.constant 5.000000e-01 : f32
    %323 = vector.broadcast %cst_96 : f32 to vector<8x32xf32>
    %324 = arith.mulf %323, %322 : vector<8x32xf32>
    %325 = math.tanh %324 : vector<8x32xf32>
    %cst_97 = arith.constant 5.000000e-01 : f32
    %326 = vector.broadcast %cst_97 : f32 to vector<8x32xf32>
    %327 = arith.mulf %326, %325 : vector<8x32xf32>
    %cst_98 = arith.constant 5.000000e-01 : f32
    %328 = vector.broadcast %cst_98 : f32 to vector<8x32xf32>
    %329 = arith.addf %327, %328 : vector<8x32xf32>
    %330 = arith.mulf %319, %262 : vector<8x32xf32>
    %331 = arith.mulf %311, %321 : vector<8x32xf32>
    %332 = arith.addf %330, %331 : vector<8x32xf32>
    %333 = math.tanh %332 : vector<8x32xf32>
    %334 = arith.mulf %329, %333 : vector<8x32xf32>
    %335 = vector.extract_strided_slice %303 {offsets = [0, 0], sizes = [8, 32], strides = [1, 1]} : vector<8x128xf32> to vector<8x32xf32>
    %cst_99 = arith.constant 5.000000e-01 : f32
    %336 = vector.broadcast %cst_99 : f32 to vector<8x32xf32>
    %337 = arith.mulf %336, %335 : vector<8x32xf32>
    %338 = math.tanh %337 : vector<8x32xf32>
    %cst_100 = arith.constant 5.000000e-01 : f32
    %339 = vector.broadcast %cst_100 : f32 to vector<8x32xf32>
    %340 = arith.mulf %339, %338 : vector<8x32xf32>
    %cst_101 = arith.constant 5.000000e-01 : f32
    %341 = vector.broadcast %cst_101 : f32 to vector<8x32xf32>
    %342 = arith.addf %340, %341 : vector<8x32xf32>
    %343 = vector.extract_strided_slice %303 {offsets = [0, 32], sizes = [8, 32], strides = [1, 1]} : vector<8x128xf32> to vector<8x32xf32>
    %cst_102 = arith.constant 5.000000e-01 : f32
    %344 = vector.broadcast %cst_102 : f32 to vector<8x32xf32>
    %345 = arith.mulf %344, %343 : vector<8x32xf32>
    %346 = math.tanh %345 : vector<8x32xf32>
    %cst_103 = arith.constant 5.000000e-01 : f32
    %347 = vector.broadcast %cst_103 : f32 to vector<8x32xf32>
    %348 = arith.mulf %347, %346 : vector<8x32xf32>
    %cst_104 = arith.constant 5.000000e-01 : f32
    %349 = vector.broadcast %cst_104 : f32 to vector<8x32xf32>
    %350 = arith.addf %348, %349 : vector<8x32xf32>
    %351 = vector.extract_strided_slice %303 {offsets = [0, 64], sizes = [8, 32], strides = [1, 1]} : vector<8x128xf32> to vector<8x32xf32>
    %352 = math.tanh %351 : vector<8x32xf32>
    %353 = vector.extract_strided_slice %303 {offsets = [0, 96], sizes = [8, 32], strides = [1, 1]} : vector<8x128xf32> to vector<8x32xf32>
    %cst_105 = arith.constant 5.000000e-01 : f32
    %354 = vector.broadcast %cst_105 : f32 to vector<8x32xf32>
    %355 = arith.mulf %354, %353 : vector<8x32xf32>
    %356 = math.tanh %355 : vector<8x32xf32>
    %cst_106 = arith.constant 5.000000e-01 : f32
    %357 = vector.broadcast %cst_106 : f32 to vector<8x32xf32>
    %358 = arith.mulf %357, %356 : vector<8x32xf32>
    %cst_107 = arith.constant 5.000000e-01 : f32
    %359 = vector.broadcast %cst_107 : f32 to vector<8x32xf32>
    %360 = arith.addf %358, %359 : vector<8x32xf32>
    %361 = arith.mulf %350, %293 : vector<8x32xf32>
    %362 = arith.mulf %342, %352 : vector<8x32xf32>
    %363 = arith.addf %361, %362 : vector<8x32xf32>
    %364 = math.tanh %363 : vector<8x32xf32>
    %365 = arith.mulf %360, %364 : vector<8x32xf32>
    %366 = tpu.concatenate %334, %365 in 1 : vector<8x32xf32>, vector<8x32xf32> -> vector<8x64xf32>
    %cst_108 = arith.constant dense<0.000000e+00> : vector<8x256xf32>
    %367 = tpu.matmul %366, %13, %cst_108 {dimension_numbers = #tpu.dot_dimension_numbers<[1], [0], [0], [1], [0, 0, 1, 1], [], []>} : vector<8x64xf32>, vector<64x256xf32>, vector<8x256xf32> -> vector<8x256xf32>
    %368 = vector.extract_strided_slice %12 {offsets = [40, 0], sizes = [8, 128], strides = [1, 1]} : vector<64x256xf32> to vector<8x128xf32>
    %369 = vector.extract_strided_slice %367 {offsets = [0, 0], sizes = [8, 128], strides = [1, 1]} : vector<8x256xf32> to vector<8x128xf32>
    %370 = arith.addf %368, %369 : vector<8x128xf32>
    %371 = vector.extract_strided_slice %12 {offsets = [16, 128], sizes = [8, 128], strides = [1, 1]} : vector<64x256xf32> to vector<8x128xf32>
    %372 = vector.extract_strided_slice %367 {offsets = [0, 128], sizes = [8, 128], strides = [1, 1]} : vector<8x256xf32> to vector<8x128xf32>
    %373 = arith.addf %371, %372 : vector<8x128xf32>
    %374 = vector.extract_strided_slice %370 {offsets = [0, 0], sizes = [8, 32], strides = [1, 1]} : vector<8x128xf32> to vector<8x32xf32>
    %cst_109 = arith.constant 5.000000e-01 : f32
    %375 = vector.broadcast %cst_109 : f32 to vector<8x32xf32>
    %376 = arith.mulf %375, %374 : vector<8x32xf32>
    %377 = math.tanh %376 : vector<8x32xf32>
    %cst_110 = arith.constant 5.000000e-01 : f32
    %378 = vector.broadcast %cst_110 : f32 to vector<8x32xf32>
    %379 = arith.mulf %378, %377 : vector<8x32xf32>
    %cst_111 = arith.constant 5.000000e-01 : f32
    %380 = vector.broadcast %cst_111 : f32 to vector<8x32xf32>
    %381 = arith.addf %379, %380 : vector<8x32xf32>
    %382 = vector.extract_strided_slice %370 {offsets = [0, 32], sizes = [8, 32], strides = [1, 1]} : vector<8x128xf32> to vector<8x32xf32>
    %cst_112 = arith.constant 5.000000e-01 : f32
    %383 = vector.broadcast %cst_112 : f32 to vector<8x32xf32>
    %384 = arith.mulf %383, %382 : vector<8x32xf32>
    %385 = math.tanh %384 : vector<8x32xf32>
    %cst_113 = arith.constant 5.000000e-01 : f32
    %386 = vector.broadcast %cst_113 : f32 to vector<8x32xf32>
    %387 = arith.mulf %386, %385 : vector<8x32xf32>
    %cst_114 = arith.constant 5.000000e-01 : f32
    %388 = vector.broadcast %cst_114 : f32 to vector<8x32xf32>
    %389 = arith.addf %387, %388 : vector<8x32xf32>
    %390 = vector.extract_strided_slice %370 {offsets = [0, 64], sizes = [8, 32], strides = [1, 1]} : vector<8x128xf32> to vector<8x32xf32>
    %391 = math.tanh %390 : vector<8x32xf32>
    %392 = vector.extract_strided_slice %370 {offsets = [0, 96], sizes = [8, 32], strides = [1, 1]} : vector<8x128xf32> to vector<8x32xf32>
    %cst_115 = arith.constant 5.000000e-01 : f32
    %393 = vector.broadcast %cst_115 : f32 to vector<8x32xf32>
    %394 = arith.mulf %393, %392 : vector<8x32xf32>
    %395 = math.tanh %394 : vector<8x32xf32>
    %cst_116 = arith.constant 5.000000e-01 : f32
    %396 = vector.broadcast %cst_116 : f32 to vector<8x32xf32>
    %397 = arith.mulf %396, %395 : vector<8x32xf32>
    %cst_117 = arith.constant 5.000000e-01 : f32
    %398 = vector.broadcast %cst_117 : f32 to vector<8x32xf32>
    %399 = arith.addf %397, %398 : vector<8x32xf32>
    %400 = arith.mulf %389, %332 : vector<8x32xf32>
    %401 = arith.mulf %381, %391 : vector<8x32xf32>
    %402 = arith.addf %400, %401 : vector<8x32xf32>
    %403 = math.tanh %402 : vector<8x32xf32>
    %404 = arith.mulf %399, %403 : vector<8x32xf32>
    %405 = vector.extract_strided_slice %373 {offsets = [0, 0], sizes = [8, 32], strides = [1, 1]} : vector<8x128xf32> to vector<8x32xf32>
    %cst_118 = arith.constant 5.000000e-01 : f32
    %406 = vector.broadcast %cst_118 : f32 to vector<8x32xf32>
    %407 = arith.mulf %406, %405 : vector<8x32xf32>
    %408 = math.tanh %407 : vector<8x32xf32>
    %cst_119 = arith.constant 5.000000e-01 : f32
    %409 = vector.broadcast %cst_119 : f32 to vector<8x32xf32>
    %410 = arith.mulf %409, %408 : vector<8x32xf32>
    %cst_120 = arith.constant 5.000000e-01 : f32
    %411 = vector.broadcast %cst_120 : f32 to vector<8x32xf32>
    %412 = arith.addf %410, %411 : vector<8x32xf32>
    %413 = vector.extract_strided_slice %373 {offsets = [0, 32], sizes = [8, 32], strides = [1, 1]} : vector<8x128xf32> to vector<8x32xf32>
    %cst_121 = arith.constant 5.000000e-01 : f32
    %414 = vector.broadcast %cst_121 : f32 to vector<8x32xf32>
    %415 = arith.mulf %414, %413 : vector<8x32xf32>
    %416 = math.tanh %415 : vector<8x32xf32>
    %cst_122 = arith.constant 5.000000e-01 : f32
    %417 = vector.broadcast %cst_122 : f32 to vector<8x32xf32>
    %418 = arith.mulf %417, %416 : vector<8x32xf32>
    %cst_123 = arith.constant 5.000000e-01 : f32
    %419 = vector.broadcast %cst_123 : f32 to vector<8x32xf32>
    %420 = arith.addf %418, %419 : vector<8x32xf32>
    %421 = vector.extract_strided_slice %373 {offsets = [0, 64], sizes = [8, 32], strides = [1, 1]} : vector<8x128xf32> to vector<8x32xf32>
    %422 = math.tanh %421 : vector<8x32xf32>
    %423 = vector.extract_strided_slice %373 {offsets = [0, 96], sizes = [8, 32], strides = [1, 1]} : vector<8x128xf32> to vector<8x32xf32>
    %cst_124 = arith.constant 5.000000e-01 : f32
    %424 = vector.broadcast %cst_124 : f32 to vector<8x32xf32>
    %425 = arith.mulf %424, %423 : vector<8x32xf32>
    %426 = math.tanh %425 : vector<8x32xf32>
    %cst_125 = arith.constant 5.000000e-01 : f32
    %427 = vector.broadcast %cst_125 : f32 to vector<8x32xf32>
    %428 = arith.mulf %427, %426 : vector<8x32xf32>
    %cst_126 = arith.constant 5.000000e-01 : f32
    %429 = vector.broadcast %cst_126 : f32 to vector<8x32xf32>
    %430 = arith.addf %428, %429 : vector<8x32xf32>
    %431 = arith.mulf %420, %363 : vector<8x32xf32>
    %432 = arith.mulf %412, %422 : vector<8x32xf32>
    %433 = arith.addf %431, %432 : vector<8x32xf32>
    %434 = math.tanh %433 : vector<8x32xf32>
    %435 = arith.mulf %430, %434 : vector<8x32xf32>
    %436 = tpu.concatenate %404, %435 in 1 : vector<8x32xf32>, vector<8x32xf32> -> vector<8x64xf32>
    %cst_127 = arith.constant dense<0.000000e+00> : vector<8x256xf32>
    %437 = tpu.matmul %436, %13, %cst_127 {dimension_numbers = #tpu.dot_dimension_numbers<[1], [0], [0], [1], [0, 0, 1, 1], [], []>} : vector<8x64xf32>, vector<64x256xf32>, vector<8x256xf32> -> vector<8x256xf32>
    %438 = vector.extract_strided_slice %12 {offsets = [48, 0], sizes = [8, 128], strides = [1, 1]} : vector<64x256xf32> to vector<8x128xf32>
    %439 = vector.extract_strided_slice %437 {offsets = [0, 0], sizes = [8, 128], strides = [1, 1]} : vector<8x256xf32> to vector<8x128xf32>
    %440 = arith.addf %438, %439 : vector<8x128xf32>
    %441 = vector.extract_strided_slice %12 {offsets = [8, 128], sizes = [8, 128], strides = [1, 1]} : vector<64x256xf32> to vector<8x128xf32>
    %442 = vector.extract_strided_slice %437 {offsets = [0, 128], sizes = [8, 128], strides = [1, 1]} : vector<8x256xf32> to vector<8x128xf32>
    %443 = arith.addf %441, %442 : vector<8x128xf32>
    %444 = vector.extract_strided_slice %440 {offsets = [0, 0], sizes = [8, 32], strides = [1, 1]} : vector<8x128xf32> to vector<8x32xf32>
    %cst_128 = arith.constant 5.000000e-01 : f32
    %445 = vector.broadcast %cst_128 : f32 to vector<8x32xf32>
    %446 = arith.mulf %445, %444 : vector<8x32xf32>
    %447 = math.tanh %446 : vector<8x32xf32>
    %cst_129 = arith.constant 5.000000e-01 : f32
    %448 = vector.broadcast %cst_129 : f32 to vector<8x32xf32>
    %449 = arith.mulf %448, %447 : vector<8x32xf32>
    %cst_130 = arith.constant 5.000000e-01 : f32
    %450 = vector.broadcast %cst_130 : f32 to vector<8x32xf32>
    %451 = arith.addf %449, %450 : vector<8x32xf32>
    %452 = vector.extract_strided_slice %440 {offsets = [0, 32], sizes = [8, 32], strides = [1, 1]} : vector<8x128xf32> to vector<8x32xf32>
    %cst_131 = arith.constant 5.000000e-01 : f32
    %453 = vector.broadcast %cst_131 : f32 to vector<8x32xf32>
    %454 = arith.mulf %453, %452 : vector<8x32xf32>
    %455 = math.tanh %454 : vector<8x32xf32>
    %cst_132 = arith.constant 5.000000e-01 : f32
    %456 = vector.broadcast %cst_132 : f32 to vector<8x32xf32>
    %457 = arith.mulf %456, %455 : vector<8x32xf32>
    %cst_133 = arith.constant 5.000000e-01 : f32
    %458 = vector.broadcast %cst_133 : f32 to vector<8x32xf32>
    %459 = arith.addf %457, %458 : vector<8x32xf32>
    %460 = vector.extract_strided_slice %440 {offsets = [0, 64], sizes = [8, 32], strides = [1, 1]} : vector<8x128xf32> to vector<8x32xf32>
    %461 = math.tanh %460 : vector<8x32xf32>
    %462 = vector.extract_strided_slice %440 {offsets = [0, 96], sizes = [8, 32], strides = [1, 1]} : vector<8x128xf32> to vector<8x32xf32>
    %cst_134 = arith.constant 5.000000e-01 : f32
    %463 = vector.broadcast %cst_134 : f32 to vector<8x32xf32>
    %464 = arith.mulf %463, %462 : vector<8x32xf32>
    %465 = math.tanh %464 : vector<8x32xf32>
    %cst_135 = arith.constant 5.000000e-01 : f32
    %466 = vector.broadcast %cst_135 : f32 to vector<8x32xf32>
    %467 = arith.mulf %466, %465 : vector<8x32xf32>
    %cst_136 = arith.constant 5.000000e-01 : f32
    %468 = vector.broadcast %cst_136 : f32 to vector<8x32xf32>
    %469 = arith.addf %467, %468 : vector<8x32xf32>
    %470 = arith.mulf %459, %402 : vector<8x32xf32>
    %471 = arith.mulf %451, %461 : vector<8x32xf32>
    %472 = arith.addf %470, %471 : vector<8x32xf32>
    %473 = math.tanh %472 : vector<8x32xf32>
    %474 = arith.mulf %469, %473 : vector<8x32xf32>
    %475 = vector.extract_strided_slice %443 {offsets = [0, 0], sizes = [8, 32], strides = [1, 1]} : vector<8x128xf32> to vector<8x32xf32>
    %cst_137 = arith.constant 5.000000e-01 : f32
    %476 = vector.broadcast %cst_137 : f32 to vector<8x32xf32>
    %477 = arith.mulf %476, %475 : vector<8x32xf32>
    %478 = math.tanh %477 : vector<8x32xf32>
    %cst_138 = arith.constant 5.000000e-01 : f32
    %479 = vector.broadcast %cst_138 : f32 to vector<8x32xf32>
    %480 = arith.mulf %479, %478 : vector<8x32xf32>
    %cst_139 = arith.constant 5.000000e-01 : f32
    %481 = vector.broadcast %cst_139 : f32 to vector<8x32xf32>
    %482 = arith.addf %480, %481 : vector<8x32xf32>
    %483 = vector.extract_strided_slice %443 {offsets = [0, 32], sizes = [8, 32], strides = [1, 1]} : vector<8x128xf32> to vector<8x32xf32>
    %cst_140 = arith.constant 5.000000e-01 : f32
    %484 = vector.broadcast %cst_140 : f32 to vector<8x32xf32>
    %485 = arith.mulf %484, %483 : vector<8x32xf32>
    %486 = math.tanh %485 : vector<8x32xf32>
    %cst_141 = arith.constant 5.000000e-01 : f32
    %487 = vector.broadcast %cst_141 : f32 to vector<8x32xf32>
    %488 = arith.mulf %487, %486 : vector<8x32xf32>
    %cst_142 = arith.constant 5.000000e-01 : f32
    %489 = vector.broadcast %cst_142 : f32 to vector<8x32xf32>
    %490 = arith.addf %488, %489 : vector<8x32xf32>
    %491 = vector.extract_strided_slice %443 {offsets = [0, 64], sizes = [8, 32], strides = [1, 1]} : vector<8x128xf32> to vector<8x32xf32>
    %492 = math.tanh %491 : vector<8x32xf32>
    %493 = vector.extract_strided_slice %443 {offsets = [0, 96], sizes = [8, 32], strides = [1, 1]} : vector<8x128xf32> to vector<8x32xf32>
    %cst_143 = arith.constant 5.000000e-01 : f32
    %494 = vector.broadcast %cst_143 : f32 to vector<8x32xf32>
    %495 = arith.mulf %494, %493 : vector<8x32xf32>
    %496 = math.tanh %495 : vector<8x32xf32>
    %cst_144 = arith.constant 5.000000e-01 : f32
    %497 = vector.broadcast %cst_144 : f32 to vector<8x32xf32>
    %498 = arith.mulf %497, %496 : vector<8x32xf32>
    %cst_145 = arith.constant 5.000000e-01 : f32
    %499 = vector.broadcast %cst_145 : f32 to vector<8x32xf32>
    %500 = arith.addf %498, %499 : vector<8x32xf32>
    %501 = arith.mulf %490, %433 : vector<8x32xf32>
    %502 = arith.mulf %482, %492 : vector<8x32xf32>
    %503 = arith.addf %501, %502 : vector<8x32xf32>
    %504 = math.tanh %503 : vector<8x32xf32>
    %505 = arith.mulf %500, %504 : vector<8x32xf32>
    %506 = tpu.concatenate %474, %505 in 1 : vector<8x32xf32>, vector<8x32xf32> -> vector<8x64xf32>
    %cst_146 = arith.constant dense<0.000000e+00> : vector<8x256xf32>
    %507 = tpu.matmul %506, %13, %cst_146 {dimension_numbers = #tpu.dot_dimension_numbers<[1], [0], [0], [1], [0, 0, 1, 1], [], []>} : vector<8x64xf32>, vector<64x256xf32>, vector<8x256xf32> -> vector<8x256xf32>
    %508 = vector.extract_strided_slice %12 {offsets = [56, 0], sizes = [8, 128], strides = [1, 1]} : vector<64x256xf32> to vector<8x128xf32>
    %509 = vector.extract_strided_slice %507 {offsets = [0, 0], sizes = [8, 128], strides = [1, 1]} : vector<8x256xf32> to vector<8x128xf32>
    %510 = arith.addf %508, %509 : vector<8x128xf32>
    %511 = vector.extract_strided_slice %12 {offsets = [0, 128], sizes = [8, 128], strides = [1, 1]} : vector<64x256xf32> to vector<8x128xf32>
    %512 = vector.extract_strided_slice %507 {offsets = [0, 128], sizes = [8, 128], strides = [1, 1]} : vector<8x256xf32> to vector<8x128xf32>
    %513 = arith.addf %511, %512 : vector<8x128xf32>
    %514 = vector.extract_strided_slice %510 {offsets = [0, 0], sizes = [8, 32], strides = [1, 1]} : vector<8x128xf32> to vector<8x32xf32>
    %cst_147 = arith.constant 5.000000e-01 : f32
    %515 = vector.broadcast %cst_147 : f32 to vector<8x32xf32>
    %516 = arith.mulf %515, %514 : vector<8x32xf32>
    %517 = math.tanh %516 : vector<8x32xf32>
    %cst_148 = arith.constant 5.000000e-01 : f32
    %518 = vector.broadcast %cst_148 : f32 to vector<8x32xf32>
    %519 = arith.mulf %518, %517 : vector<8x32xf32>
    %cst_149 = arith.constant 5.000000e-01 : f32
    %520 = vector.broadcast %cst_149 : f32 to vector<8x32xf32>
    %521 = arith.addf %519, %520 : vector<8x32xf32>
    %522 = vector.extract_strided_slice %510 {offsets = [0, 32], sizes = [8, 32], strides = [1, 1]} : vector<8x128xf32> to vector<8x32xf32>
    %cst_150 = arith.constant 5.000000e-01 : f32
    %523 = vector.broadcast %cst_150 : f32 to vector<8x32xf32>
    %524 = arith.mulf %523, %522 : vector<8x32xf32>
    %525 = math.tanh %524 : vector<8x32xf32>
    %cst_151 = arith.constant 5.000000e-01 : f32
    %526 = vector.broadcast %cst_151 : f32 to vector<8x32xf32>
    %527 = arith.mulf %526, %525 : vector<8x32xf32>
    %cst_152 = arith.constant 5.000000e-01 : f32
    %528 = vector.broadcast %cst_152 : f32 to vector<8x32xf32>
    %529 = arith.addf %527, %528 : vector<8x32xf32>
    %530 = vector.extract_strided_slice %510 {offsets = [0, 64], sizes = [8, 32], strides = [1, 1]} : vector<8x128xf32> to vector<8x32xf32>
    %531 = math.tanh %530 : vector<8x32xf32>
    %532 = vector.extract_strided_slice %510 {offsets = [0, 96], sizes = [8, 32], strides = [1, 1]} : vector<8x128xf32> to vector<8x32xf32>
    %cst_153 = arith.constant 5.000000e-01 : f32
    %533 = vector.broadcast %cst_153 : f32 to vector<8x32xf32>
    %534 = arith.mulf %533, %532 : vector<8x32xf32>
    %535 = math.tanh %534 : vector<8x32xf32>
    %cst_154 = arith.constant 5.000000e-01 : f32
    %536 = vector.broadcast %cst_154 : f32 to vector<8x32xf32>
    %537 = arith.mulf %536, %535 : vector<8x32xf32>
    %cst_155 = arith.constant 5.000000e-01 : f32
    %538 = vector.broadcast %cst_155 : f32 to vector<8x32xf32>
    %539 = arith.addf %537, %538 : vector<8x32xf32>
    %540 = arith.mulf %529, %472 : vector<8x32xf32>
    %541 = arith.mulf %521, %531 : vector<8x32xf32>
    %542 = arith.addf %540, %541 : vector<8x32xf32>
    %543 = math.tanh %542 : vector<8x32xf32>
    %544 = arith.mulf %539, %543 : vector<8x32xf32>
    %545 = vector.extract_strided_slice %513 {offsets = [0, 0], sizes = [8, 32], strides = [1, 1]} : vector<8x128xf32> to vector<8x32xf32>
    %cst_156 = arith.constant 5.000000e-01 : f32
    %546 = vector.broadcast %cst_156 : f32 to vector<8x32xf32>
    %547 = arith.mulf %546, %545 : vector<8x32xf32>
    %548 = math.tanh %547 : vector<8x32xf32>
    %cst_157 = arith.constant 5.000000e-01 : f32
    %549 = vector.broadcast %cst_157 : f32 to vector<8x32xf32>
    %550 = arith.mulf %549, %548 : vector<8x32xf32>
    %cst_158 = arith.constant 5.000000e-01 : f32
    %551 = vector.broadcast %cst_158 : f32 to vector<8x32xf32>
    %552 = arith.addf %550, %551 : vector<8x32xf32>
    %553 = vector.extract_strided_slice %513 {offsets = [0, 32], sizes = [8, 32], strides = [1, 1]} : vector<8x128xf32> to vector<8x32xf32>
    %cst_159 = arith.constant 5.000000e-01 : f32
    %554 = vector.broadcast %cst_159 : f32 to vector<8x32xf32>
    %555 = arith.mulf %554, %553 : vector<8x32xf32>
    %556 = math.tanh %555 : vector<8x32xf32>
    %cst_160 = arith.constant 5.000000e-01 : f32
    %557 = vector.broadcast %cst_160 : f32 to vector<8x32xf32>
    %558 = arith.mulf %557, %556 : vector<8x32xf32>
    %cst_161 = arith.constant 5.000000e-01 : f32
    %559 = vector.broadcast %cst_161 : f32 to vector<8x32xf32>
    %560 = arith.addf %558, %559 : vector<8x32xf32>
    %561 = vector.extract_strided_slice %513 {offsets = [0, 64], sizes = [8, 32], strides = [1, 1]} : vector<8x128xf32> to vector<8x32xf32>
    %562 = math.tanh %561 : vector<8x32xf32>
    %563 = vector.extract_strided_slice %513 {offsets = [0, 96], sizes = [8, 32], strides = [1, 1]} : vector<8x128xf32> to vector<8x32xf32>
    %cst_162 = arith.constant 5.000000e-01 : f32
    %564 = vector.broadcast %cst_162 : f32 to vector<8x32xf32>
    %565 = arith.mulf %564, %563 : vector<8x32xf32>
    %566 = math.tanh %565 : vector<8x32xf32>
    %cst_163 = arith.constant 5.000000e-01 : f32
    %567 = vector.broadcast %cst_163 : f32 to vector<8x32xf32>
    %568 = arith.mulf %567, %566 : vector<8x32xf32>
    %cst_164 = arith.constant 5.000000e-01 : f32
    %569 = vector.broadcast %cst_164 : f32 to vector<8x32xf32>
    %570 = arith.addf %568, %569 : vector<8x32xf32>
    %571 = arith.mulf %560, %503 : vector<8x32xf32>
    %572 = arith.mulf %552, %562 : vector<8x32xf32>
    %573 = arith.addf %571, %572 : vector<8x32xf32>
    %574 = math.tanh %573 : vector<8x32xf32>
    %575 = arith.mulf %570, %574 : vector<8x32xf32>
    %576 = tpu.concatenate %54, %575 in 1 : vector<8x32xf32>, vector<8x32xf32> -> vector<8x64xf32>
    %577 = tpu.concatenate %124, %505 in 1 : vector<8x32xf32>, vector<8x32xf32> -> vector<8x64xf32>
    %578 = tpu.concatenate %194, %435 in 1 : vector<8x32xf32>, vector<8x32xf32> -> vector<8x64xf32>
    %579 = tpu.concatenate %264, %365 in 1 : vector<8x32xf32>, vector<8x32xf32> -> vector<8x64xf32>
    %580 = tpu.concatenate %334, %295 in 1 : vector<8x32xf32>, vector<8x32xf32> -> vector<8x64xf32>
    %581 = tpu.concatenate %404, %225 in 1 : vector<8x32xf32>, vector<8x32xf32> -> vector<8x64xf32>
    %582 = tpu.concatenate %474, %155 in 1 : vector<8x32xf32>, vector<8x32xf32> -> vector<8x64xf32>
    %583 = tpu.concatenate %544, %85 in 1 : vector<8x32xf32>, vector<8x32xf32> -> vector<8x64xf32>
    %584 = tpu.concatenate %576, %577, %578, %579, %580, %581, %582, %583 in 0 : vector<8x64xf32>, vector<8x64xf32>, vector<8x64xf32>, vector<8x64xf32>, vector<8x64xf32>, vector<8x64xf32>, vector<8x64xf32>, vector<8x64xf32> -> vector<64x64xf32>
    %c0_165 = arith.constant 0 : index
    %c0_166 = arith.constant 0 : index
    %585 = vector.load %arg6[%c0_165, %c0_166] : memref<64x128xf32, #tpu.memory_space<vmem>>, vector<64x128xf32>
    %cst_167 = arith.constant dense<0.000000e+00> : vector<64x128xf32>
    %586 = tpu.matmul %584, %585, %cst_167 {dimension_numbers = #tpu.dot_dimension_numbers<[1], [0], [0], [1], [0, 0, 1, 1], [], []>} : vector<64x64xf32>, vector<64x128xf32>, vector<64x128xf32> -> vector<64x128xf32>
    %c0_168 = arith.constant 0 : index
    %c0_169 = arith.constant 0 : index
    %587 = vector.load %arg7[%c0_168, %c0_169] : memref<1x128xf32, #tpu.memory_space<vmem>>, vector<1x128xf32>
    %588 = vector.broadcast %587 : vector<1x128xf32> to vector<64x128xf32>
    %589 = arith.addf %586, %588 : vector<64x128xf32>
    %c0_170 = arith.constant 0 : index
    %c0_171 = arith.constant 0 : index
    %590 = vector.load %arg8[%c0_170, %c0_171] : memref<32x128xf32, #tpu.memory_space<vmem>>, vector<32x128xf32>
    %cst_172 = arith.constant 0.000000e+00 : f32
    %591 = vector.broadcast %cst_172 : f32 to vector<8x32xf32>
    %cst_173 = arith.constant 0.000000e+00 : f32
    %592 = vector.broadcast %cst_173 : f32 to vector<8x16xf32>
    %cst_174 = arith.constant 0.000000e+00 : f32
    %593 = vector.broadcast %cst_174 : f32 to vector<8x16xf32>
    %cst_175 = arith.constant dense<0.000000e+00> : vector<8x128xf32>
    %594 = tpu.matmul %591, %590, %cst_175 {dimension_numbers = #tpu.dot_dimension_numbers<[1], [0], [0], [1], [0, 0, 1, 1], [], []>} : vector<8x32xf32>, vector<32x128xf32>, vector<8x128xf32> -> vector<8x128xf32>
    %595 = vector.extract_strided_slice %589 {offsets = [0, 0], sizes = [8, 64], strides = [1, 1]} : vector<64x128xf32> to vector<8x64xf32>
    %596 = vector.extract_strided_slice %594 {offsets = [0, 0], sizes = [8, 64], strides = [1, 1]} : vector<8x128xf32> to vector<8x64xf32>
    %597 = arith.addf %595, %596 : vector<8x64xf32>
    %598 = vector.extract_strided_slice %589 {offsets = [56, 64], sizes = [8, 64], strides = [1, 1]} : vector<64x128xf32> to vector<8x64xf32>
    %599 = vector.extract_strided_slice %594 {offsets = [0, 64], sizes = [8, 64], strides = [1, 1]} : vector<8x128xf32> to vector<8x64xf32>
    %600 = arith.addf %598, %599 : vector<8x64xf32>
    %601 = vector.extract_strided_slice %597 {offsets = [0, 0], sizes = [8, 16], strides = [1, 1]} : vector<8x64xf32> to vector<8x16xf32>
    %cst_176 = arith.constant 5.000000e-01 : f32
    %602 = vector.broadcast %cst_176 : f32 to vector<8x16xf32>
    %603 = arith.mulf %602, %601 : vector<8x16xf32>
    %604 = math.tanh %603 : vector<8x16xf32>
    %cst_177 = arith.constant 5.000000e-01 : f32
    %605 = vector.broadcast %cst_177 : f32 to vector<8x16xf32>
    %606 = arith.mulf %605, %604 : vector<8x16xf32>
    %cst_178 = arith.constant 5.000000e-01 : f32
    %607 = vector.broadcast %cst_178 : f32 to vector<8x16xf32>
    %608 = arith.addf %606, %607 : vector<8x16xf32>
    %609 = vector.extract_strided_slice %597 {offsets = [0, 16], sizes = [8, 16], strides = [1, 1]} : vector<8x64xf32> to vector<8x16xf32>
    %cst_179 = arith.constant 5.000000e-01 : f32
    %610 = vector.broadcast %cst_179 : f32 to vector<8x16xf32>
    %611 = arith.mulf %610, %609 : vector<8x16xf32>
    %612 = math.tanh %611 : vector<8x16xf32>
    %cst_180 = arith.constant 5.000000e-01 : f32
    %613 = vector.broadcast %cst_180 : f32 to vector<8x16xf32>
    %614 = arith.mulf %613, %612 : vector<8x16xf32>
    %cst_181 = arith.constant 5.000000e-01 : f32
    %615 = vector.broadcast %cst_181 : f32 to vector<8x16xf32>
    %616 = arith.addf %614, %615 : vector<8x16xf32>
    %617 = vector.extract_strided_slice %597 {offsets = [0, 32], sizes = [8, 16], strides = [1, 1]} : vector<8x64xf32> to vector<8x16xf32>
    %618 = math.tanh %617 : vector<8x16xf32>
    %619 = vector.extract_strided_slice %597 {offsets = [0, 48], sizes = [8, 16], strides = [1, 1]} : vector<8x64xf32> to vector<8x16xf32>
    %cst_182 = arith.constant 5.000000e-01 : f32
    %620 = vector.broadcast %cst_182 : f32 to vector<8x16xf32>
    %621 = arith.mulf %620, %619 : vector<8x16xf32>
    %622 = math.tanh %621 : vector<8x16xf32>
    %cst_183 = arith.constant 5.000000e-01 : f32
    %623 = vector.broadcast %cst_183 : f32 to vector<8x16xf32>
    %624 = arith.mulf %623, %622 : vector<8x16xf32>
    %cst_184 = arith.constant 5.000000e-01 : f32
    %625 = vector.broadcast %cst_184 : f32 to vector<8x16xf32>
    %626 = arith.addf %624, %625 : vector<8x16xf32>
    %627 = arith.mulf %616, %592 : vector<8x16xf32>
    %628 = arith.mulf %608, %618 : vector<8x16xf32>
    %629 = arith.addf %627, %628 : vector<8x16xf32>
    %630 = math.tanh %629 : vector<8x16xf32>
    %631 = arith.mulf %626, %630 : vector<8x16xf32>
    %632 = vector.extract_strided_slice %600 {offsets = [0, 0], sizes = [8, 16], strides = [1, 1]} : vector<8x64xf32> to vector<8x16xf32>
    %cst_185 = arith.constant 5.000000e-01 : f32
    %633 = vector.broadcast %cst_185 : f32 to vector<8x16xf32>
    %634 = arith.mulf %633, %632 : vector<8x16xf32>
    %635 = math.tanh %634 : vector<8x16xf32>
    %cst_186 = arith.constant 5.000000e-01 : f32
    %636 = vector.broadcast %cst_186 : f32 to vector<8x16xf32>
    %637 = arith.mulf %636, %635 : vector<8x16xf32>
    %cst_187 = arith.constant 5.000000e-01 : f32
    %638 = vector.broadcast %cst_187 : f32 to vector<8x16xf32>
    %639 = arith.addf %637, %638 : vector<8x16xf32>
    %640 = vector.extract_strided_slice %600 {offsets = [0, 16], sizes = [8, 16], strides = [1, 1]} : vector<8x64xf32> to vector<8x16xf32>
    %cst_188 = arith.constant 5.000000e-01 : f32
    %641 = vector.broadcast %cst_188 : f32 to vector<8x16xf32>
    %642 = arith.mulf %641, %640 : vector<8x16xf32>
    %643 = math.tanh %642 : vector<8x16xf32>
    %cst_189 = arith.constant 5.000000e-01 : f32
    %644 = vector.broadcast %cst_189 : f32 to vector<8x16xf32>
    %645 = arith.mulf %644, %643 : vector<8x16xf32>
    %cst_190 = arith.constant 5.000000e-01 : f32
    %646 = vector.broadcast %cst_190 : f32 to vector<8x16xf32>
    %647 = arith.addf %645, %646 : vector<8x16xf32>
    %648 = vector.extract_strided_slice %600 {offsets = [0, 32], sizes = [8, 16], strides = [1, 1]} : vector<8x64xf32> to vector<8x16xf32>
    %649 = math.tanh %648 : vector<8x16xf32>
    %650 = vector.extract_strided_slice %600 {offsets = [0, 48], sizes = [8, 16], strides = [1, 1]} : vector<8x64xf32> to vector<8x16xf32>
    %cst_191 = arith.constant 5.000000e-01 : f32
    %651 = vector.broadcast %cst_191 : f32 to vector<8x16xf32>
    %652 = arith.mulf %651, %650 : vector<8x16xf32>
    %653 = math.tanh %652 : vector<8x16xf32>
    %cst_192 = arith.constant 5.000000e-01 : f32
    %654 = vector.broadcast %cst_192 : f32 to vector<8x16xf32>
    %655 = arith.mulf %654, %653 : vector<8x16xf32>
    %cst_193 = arith.constant 5.000000e-01 : f32
    %656 = vector.broadcast %cst_193 : f32 to vector<8x16xf32>
    %657 = arith.addf %655, %656 : vector<8x16xf32>
    %658 = arith.mulf %647, %593 : vector<8x16xf32>
    %659 = arith.mulf %639, %649 : vector<8x16xf32>
    %660 = arith.addf %658, %659 : vector<8x16xf32>
    %661 = math.tanh %660 : vector<8x16xf32>
    %662 = arith.mulf %657, %661 : vector<8x16xf32>
    %663 = tpu.concatenate %631, %662 in 1 : vector<8x16xf32>, vector<8x16xf32> -> vector<8x32xf32>
    %cst_194 = arith.constant dense<0.000000e+00> : vector<8x128xf32>
    %664 = tpu.matmul %663, %590, %cst_194 {dimension_numbers = #tpu.dot_dimension_numbers<[1], [0], [0], [1], [0, 0, 1, 1], [], []>} : vector<8x32xf32>, vector<32x128xf32>, vector<8x128xf32> -> vector<8x128xf32>
    %665 = vector.extract_strided_slice %589 {offsets = [8, 0], sizes = [8, 64], strides = [1, 1]} : vector<64x128xf32> to vector<8x64xf32>
    %666 = vector.extract_strided_slice %664 {offsets = [0, 0], sizes = [8, 64], strides = [1, 1]} : vector<8x128xf32> to vector<8x64xf32>
    %667 = arith.addf %665, %666 : vector<8x64xf32>
    %668 = vector.extract_strided_slice %589 {offsets = [48, 64], sizes = [8, 64], strides = [1, 1]} : vector<64x128xf32> to vector<8x64xf32>
    %669 = vector.extract_strided_slice %664 {offsets = [0, 64], sizes = [8, 64], strides = [1, 1]} : vector<8x128xf32> to vector<8x64xf32>
    %670 = arith.addf %668, %669 : vector<8x64xf32>
    %671 = vector.extract_strided_slice %667 {offsets = [0, 0], sizes = [8, 16], strides = [1, 1]} : vector<8x64xf32> to vector<8x16xf32>
    %cst_195 = arith.constant 5.000000e-01 : f32
    %672 = vector.broadcast %cst_195 : f32 to vector<8x16xf32>
    %673 = arith.mulf %672, %671 : vector<8x16xf32>
    %674 = math.tanh %673 : vector<8x16xf32>
    %cst_196 = arith.constant 5.000000e-01 : f32
    %675 = vector.broadcast %cst_196 : f32 to vector<8x16xf32>
    %676 = arith.mulf %675, %674 : vector<8x16xf32>
    %cst_197 = arith.constant 5.000000e-01 : f32
    %677 = vector.broadcast %cst_197 : f32 to vector<8x16xf32>
    %678 = arith.addf %676, %677 : vector<8x16xf32>
    %679 = vector.extract_strided_slice %667 {offsets = [0, 16], sizes = [8, 16], strides = [1, 1]} : vector<8x64xf32> to vector<8x16xf32>
    %cst_198 = arith.constant 5.000000e-01 : f32
    %680 = vector.broadcast %cst_198 : f32 to vector<8x16xf32>
    %681 = arith.mulf %680, %679 : vector<8x16xf32>
    %682 = math.tanh %681 : vector<8x16xf32>
    %cst_199 = arith.constant 5.000000e-01 : f32
    %683 = vector.broadcast %cst_199 : f32 to vector<8x16xf32>
    %684 = arith.mulf %683, %682 : vector<8x16xf32>
    %cst_200 = arith.constant 5.000000e-01 : f32
    %685 = vector.broadcast %cst_200 : f32 to vector<8x16xf32>
    %686 = arith.addf %684, %685 : vector<8x16xf32>
    %687 = vector.extract_strided_slice %667 {offsets = [0, 32], sizes = [8, 16], strides = [1, 1]} : vector<8x64xf32> to vector<8x16xf32>
    %688 = math.tanh %687 : vector<8x16xf32>
    %689 = vector.extract_strided_slice %667 {offsets = [0, 48], sizes = [8, 16], strides = [1, 1]} : vector<8x64xf32> to vector<8x16xf32>
    %cst_201 = arith.constant 5.000000e-01 : f32
    %690 = vector.broadcast %cst_201 : f32 to vector<8x16xf32>
    %691 = arith.mulf %690, %689 : vector<8x16xf32>
    %692 = math.tanh %691 : vector<8x16xf32>
    %cst_202 = arith.constant 5.000000e-01 : f32
    %693 = vector.broadcast %cst_202 : f32 to vector<8x16xf32>
    %694 = arith.mulf %693, %692 : vector<8x16xf32>
    %cst_203 = arith.constant 5.000000e-01 : f32
    %695 = vector.broadcast %cst_203 : f32 to vector<8x16xf32>
    %696 = arith.addf %694, %695 : vector<8x16xf32>
    %697 = arith.mulf %686, %629 : vector<8x16xf32>
    %698 = arith.mulf %678, %688 : vector<8x16xf32>
    %699 = arith.addf %697, %698 : vector<8x16xf32>
    %700 = math.tanh %699 : vector<8x16xf32>
    %701 = arith.mulf %696, %700 : vector<8x16xf32>
    %702 = vector.extract_strided_slice %670 {offsets = [0, 0], sizes = [8, 16], strides = [1, 1]} : vector<8x64xf32> to vector<8x16xf32>
    %cst_204 = arith.constant 5.000000e-01 : f32
    %703 = vector.broadcast %cst_204 : f32 to vector<8x16xf32>
    %704 = arith.mulf %703, %702 : vector<8x16xf32>
    %705 = math.tanh %704 : vector<8x16xf32>
    %cst_205 = arith.constant 5.000000e-01 : f32
    %706 = vector.broadcast %cst_205 : f32 to vector<8x16xf32>
    %707 = arith.mulf %706, %705 : vector<8x16xf32>
    %cst_206 = arith.constant 5.000000e-01 : f32
    %708 = vector.broadcast %cst_206 : f32 to vector<8x16xf32>
    %709 = arith.addf %707, %708 : vector<8x16xf32>
    %710 = vector.extract_strided_slice %670 {offsets = [0, 16], sizes = [8, 16], strides = [1, 1]} : vector<8x64xf32> to vector<8x16xf32>
    %cst_207 = arith.constant 5.000000e-01 : f32
    %711 = vector.broadcast %cst_207 : f32 to vector<8x16xf32>
    %712 = arith.mulf %711, %710 : vector<8x16xf32>
    %713 = math.tanh %712 : vector<8x16xf32>
    %cst_208 = arith.constant 5.000000e-01 : f32
    %714 = vector.broadcast %cst_208 : f32 to vector<8x16xf32>
    %715 = arith.mulf %714, %713 : vector<8x16xf32>
    %cst_209 = arith.constant 5.000000e-01 : f32
    %716 = vector.broadcast %cst_209 : f32 to vector<8x16xf32>
    %717 = arith.addf %715, %716 : vector<8x16xf32>
    %718 = vector.extract_strided_slice %670 {offsets = [0, 32], sizes = [8, 16], strides = [1, 1]} : vector<8x64xf32> to vector<8x16xf32>
    %719 = math.tanh %718 : vector<8x16xf32>
    %720 = vector.extract_strided_slice %670 {offsets = [0, 48], sizes = [8, 16], strides = [1, 1]} : vector<8x64xf32> to vector<8x16xf32>
    %cst_210 = arith.constant 5.000000e-01 : f32
    %721 = vector.broadcast %cst_210 : f32 to vector<8x16xf32>
    %722 = arith.mulf %721, %720 : vector<8x16xf32>
    %723 = math.tanh %722 : vector<8x16xf32>
    %cst_211 = arith.constant 5.000000e-01 : f32
    %724 = vector.broadcast %cst_211 : f32 to vector<8x16xf32>
    %725 = arith.mulf %724, %723 : vector<8x16xf32>
    %cst_212 = arith.constant 5.000000e-01 : f32
    %726 = vector.broadcast %cst_212 : f32 to vector<8x16xf32>
    %727 = arith.addf %725, %726 : vector<8x16xf32>
    %728 = arith.mulf %717, %660 : vector<8x16xf32>
    %729 = arith.mulf %709, %719 : vector<8x16xf32>
    %730 = arith.addf %728, %729 : vector<8x16xf32>
    %731 = math.tanh %730 : vector<8x16xf32>
    %732 = arith.mulf %727, %731 : vector<8x16xf32>
    %733 = tpu.concatenate %701, %732 in 1 : vector<8x16xf32>, vector<8x16xf32> -> vector<8x32xf32>
    %cst_213 = arith.constant dense<0.000000e+00> : vector<8x128xf32>
    %734 = tpu.matmul %733, %590, %cst_213 {dimension_numbers = #tpu.dot_dimension_numbers<[1], [0], [0], [1], [0, 0, 1, 1], [], []>} : vector<8x32xf32>, vector<32x128xf32>, vector<8x128xf32> -> vector<8x128xf32>
    %735 = vector.extract_strided_slice %589 {offsets = [16, 0], sizes = [8, 64], strides = [1, 1]} : vector<64x128xf32> to vector<8x64xf32>
    %736 = vector.extract_strided_slice %734 {offsets = [0, 0], sizes = [8, 64], strides = [1, 1]} : vector<8x128xf32> to vector<8x64xf32>
    %737 = arith.addf %735, %736 : vector<8x64xf32>
    %738 = vector.extract_strided_slice %589 {offsets = [40, 64], sizes = [8, 64], strides = [1, 1]} : vector<64x128xf32> to vector<8x64xf32>
    %739 = vector.extract_strided_slice %734 {offsets = [0, 64], sizes = [8, 64], strides = [1, 1]} : vector<8x128xf32> to vector<8x64xf32>
    %740 = arith.addf %738, %739 : vector<8x64xf32>
    %741 = vector.extract_strided_slice %737 {offsets = [0, 0], sizes = [8, 16], strides = [1, 1]} : vector<8x64xf32> to vector<8x16xf32>
    %cst_214 = arith.constant 5.000000e-01 : f32
    %742 = vector.broadcast %cst_214 : f32 to vector<8x16xf32>
    %743 = arith.mulf %742, %741 : vector<8x16xf32>
    %744 = math.tanh %743 : vector<8x16xf32>
    %cst_215 = arith.constant 5.000000e-01 : f32
    %745 = vector.broadcast %cst_215 : f32 to vector<8x16xf32>
    %746 = arith.mulf %745, %744 : vector<8x16xf32>
    %cst_216 = arith.constant 5.000000e-01 : f32
    %747 = vector.broadcast %cst_216 : f32 to vector<8x16xf32>
    %748 = arith.addf %746, %747 : vector<8x16xf32>
    %749 = vector.extract_strided_slice %737 {offsets = [0, 16], sizes = [8, 16], strides = [1, 1]} : vector<8x64xf32> to vector<8x16xf32>
    %cst_217 = arith.constant 5.000000e-01 : f32
    %750 = vector.broadcast %cst_217 : f32 to vector<8x16xf32>
    %751 = arith.mulf %750, %749 : vector<8x16xf32>
    %752 = math.tanh %751 : vector<8x16xf32>
    %cst_218 = arith.constant 5.000000e-01 : f32
    %753 = vector.broadcast %cst_218 : f32 to vector<8x16xf32>
    %754 = arith.mulf %753, %752 : vector<8x16xf32>
    %cst_219 = arith.constant 5.000000e-01 : f32
    %755 = vector.broadcast %cst_219 : f32 to vector<8x16xf32>
    %756 = arith.addf %754, %755 : vector<8x16xf32>
    %757 = vector.extract_strided_slice %737 {offsets = [0, 32], sizes = [8, 16], strides = [1, 1]} : vector<8x64xf32> to vector<8x16xf32>
    %758 = math.tanh %757 : vector<8x16xf32>
    %759 = vector.extract_strided_slice %737 {offsets = [0, 48], sizes = [8, 16], strides = [1, 1]} : vector<8x64xf32> to vector<8x16xf32>
    %cst_220 = arith.constant 5.000000e-01 : f32
    %760 = vector.broadcast %cst_220 : f32 to vector<8x16xf32>
    %761 = arith.mulf %760, %759 : vector<8x16xf32>
    %762 = math.tanh %761 : vector<8x16xf32>
    %cst_221 = arith.constant 5.000000e-01 : f32
    %763 = vector.broadcast %cst_221 : f32 to vector<8x16xf32>
    %764 = arith.mulf %763, %762 : vector<8x16xf32>
    %cst_222 = arith.constant 5.000000e-01 : f32
    %765 = vector.broadcast %cst_222 : f32 to vector<8x16xf32>
    %766 = arith.addf %764, %765 : vector<8x16xf32>
    %767 = arith.mulf %756, %699 : vector<8x16xf32>
    %768 = arith.mulf %748, %758 : vector<8x16xf32>
    %769 = arith.addf %767, %768 : vector<8x16xf32>
    %770 = math.tanh %769 : vector<8x16xf32>
    %771 = arith.mulf %766, %770 : vector<8x16xf32>
    %772 = vector.extract_strided_slice %740 {offsets = [0, 0], sizes = [8, 16], strides = [1, 1]} : vector<8x64xf32> to vector<8x16xf32>
    %cst_223 = arith.constant 5.000000e-01 : f32
    %773 = vector.broadcast %cst_223 : f32 to vector<8x16xf32>
    %774 = arith.mulf %773, %772 : vector<8x16xf32>
    %775 = math.tanh %774 : vector<8x16xf32>
    %cst_224 = arith.constant 5.000000e-01 : f32
    %776 = vector.broadcast %cst_224 : f32 to vector<8x16xf32>
    %777 = arith.mulf %776, %775 : vector<8x16xf32>
    %cst_225 = arith.constant 5.000000e-01 : f32
    %778 = vector.broadcast %cst_225 : f32 to vector<8x16xf32>
    %779 = arith.addf %777, %778 : vector<8x16xf32>
    %780 = vector.extract_strided_slice %740 {offsets = [0, 16], sizes = [8, 16], strides = [1, 1]} : vector<8x64xf32> to vector<8x16xf32>
    %cst_226 = arith.constant 5.000000e-01 : f32
    %781 = vector.broadcast %cst_226 : f32 to vector<8x16xf32>
    %782 = arith.mulf %781, %780 : vector<8x16xf32>
    %783 = math.tanh %782 : vector<8x16xf32>
    %cst_227 = arith.constant 5.000000e-01 : f32
    %784 = vector.broadcast %cst_227 : f32 to vector<8x16xf32>
    %785 = arith.mulf %784, %783 : vector<8x16xf32>
    %cst_228 = arith.constant 5.000000e-01 : f32
    %786 = vector.broadcast %cst_228 : f32 to vector<8x16xf32>
    %787 = arith.addf %785, %786 : vector<8x16xf32>
    %788 = vector.extract_strided_slice %740 {offsets = [0, 32], sizes = [8, 16], strides = [1, 1]} : vector<8x64xf32> to vector<8x16xf32>
    %789 = math.tanh %788 : vector<8x16xf32>
    %790 = vector.extract_strided_slice %740 {offsets = [0, 48], sizes = [8, 16], strides = [1, 1]} : vector<8x64xf32> to vector<8x16xf32>
    %cst_229 = arith.constant 5.000000e-01 : f32
    %791 = vector.broadcast %cst_229 : f32 to vector<8x16xf32>
    %792 = arith.mulf %791, %790 : vector<8x16xf32>
    %793 = math.tanh %792 : vector<8x16xf32>
    %cst_230 = arith.constant 5.000000e-01 : f32
    %794 = vector.broadcast %cst_230 : f32 to vector<8x16xf32>
    %795 = arith.mulf %794, %793 : vector<8x16xf32>
    %cst_231 = arith.constant 5.000000e-01 : f32
    %796 = vector.broadcast %cst_231 : f32 to vector<8x16xf32>
    %797 = arith.addf %795, %796 : vector<8x16xf32>
    %798 = arith.mulf %787, %730 : vector<8x16xf32>
    %799 = arith.mulf %779, %789 : vector<8x16xf32>
    %800 = arith.addf %798, %799 : vector<8x16xf32>
    %801 = math.tanh %800 : vector<8x16xf32>
    %802 = arith.mulf %797, %801 : vector<8x16xf32>
    %803 = tpu.concatenate %771, %802 in 1 : vector<8x16xf32>, vector<8x16xf32> -> vector<8x32xf32>
    %cst_232 = arith.constant dense<0.000000e+00> : vector<8x128xf32>
    %804 = tpu.matmul %803, %590, %cst_232 {dimension_numbers = #tpu.dot_dimension_numbers<[1], [0], [0], [1], [0, 0, 1, 1], [], []>} : vector<8x32xf32>, vector<32x128xf32>, vector<8x128xf32> -> vector<8x128xf32>
    %805 = vector.extract_strided_slice %589 {offsets = [24, 0], sizes = [8, 64], strides = [1, 1]} : vector<64x128xf32> to vector<8x64xf32>
    %806 = vector.extract_strided_slice %804 {offsets = [0, 0], sizes = [8, 64], strides = [1, 1]} : vector<8x128xf32> to vector<8x64xf32>
    %807 = arith.addf %805, %806 : vector<8x64xf32>
    %808 = vector.extract_strided_slice %589 {offsets = [32, 64], sizes = [8, 64], strides = [1, 1]} : vector<64x128xf32> to vector<8x64xf32>
    %809 = vector.extract_strided_slice %804 {offsets = [0, 64], sizes = [8, 64], strides = [1, 1]} : vector<8x128xf32> to vector<8x64xf32>
    %810 = arith.addf %808, %809 : vector<8x64xf32>
    %811 = vector.extract_strided_slice %807 {offsets = [0, 0], sizes = [8, 16], strides = [1, 1]} : vector<8x64xf32> to vector<8x16xf32>
    %cst_233 = arith.constant 5.000000e-01 : f32
    %812 = vector.broadcast %cst_233 : f32 to vector<8x16xf32>
    %813 = arith.mulf %812, %811 : vector<8x16xf32>
    %814 = math.tanh %813 : vector<8x16xf32>
    %cst_234 = arith.constant 5.000000e-01 : f32
    %815 = vector.broadcast %cst_234 : f32 to vector<8x16xf32>
    %816 = arith.mulf %815, %814 : vector<8x16xf32>
    %cst_235 = arith.constant 5.000000e-01 : f32
    %817 = vector.broadcast %cst_235 : f32 to vector<8x16xf32>
    %818 = arith.addf %816, %817 : vector<8x16xf32>
    %819 = vector.extract_strided_slice %807 {offsets = [0, 16], sizes = [8, 16], strides = [1, 1]} : vector<8x64xf32> to vector<8x16xf32>
    %cst_236 = arith.constant 5.000000e-01 : f32
    %820 = vector.broadcast %cst_236 : f32 to vector<8x16xf32>
    %821 = arith.mulf %820, %819 : vector<8x16xf32>
    %822 = math.tanh %821 : vector<8x16xf32>
    %cst_237 = arith.constant 5.000000e-01 : f32
    %823 = vector.broadcast %cst_237 : f32 to vector<8x16xf32>
    %824 = arith.mulf %823, %822 : vector<8x16xf32>
    %cst_238 = arith.constant 5.000000e-01 : f32
    %825 = vector.broadcast %cst_238 : f32 to vector<8x16xf32>
    %826 = arith.addf %824, %825 : vector<8x16xf32>
    %827 = vector.extract_strided_slice %807 {offsets = [0, 32], sizes = [8, 16], strides = [1, 1]} : vector<8x64xf32> to vector<8x16xf32>
    %828 = math.tanh %827 : vector<8x16xf32>
    %829 = vector.extract_strided_slice %807 {offsets = [0, 48], sizes = [8, 16], strides = [1, 1]} : vector<8x64xf32> to vector<8x16xf32>
    %cst_239 = arith.constant 5.000000e-01 : f32
    %830 = vector.broadcast %cst_239 : f32 to vector<8x16xf32>
    %831 = arith.mulf %830, %829 : vector<8x16xf32>
    %832 = math.tanh %831 : vector<8x16xf32>
    %cst_240 = arith.constant 5.000000e-01 : f32
    %833 = vector.broadcast %cst_240 : f32 to vector<8x16xf32>
    %834 = arith.mulf %833, %832 : vector<8x16xf32>
    %cst_241 = arith.constant 5.000000e-01 : f32
    %835 = vector.broadcast %cst_241 : f32 to vector<8x16xf32>
    %836 = arith.addf %834, %835 : vector<8x16xf32>
    %837 = arith.mulf %826, %769 : vector<8x16xf32>
    %838 = arith.mulf %818, %828 : vector<8x16xf32>
    %839 = arith.addf %837, %838 : vector<8x16xf32>
    %840 = math.tanh %839 : vector<8x16xf32>
    %841 = arith.mulf %836, %840 : vector<8x16xf32>
    %842 = vector.extract_strided_slice %810 {offsets = [0, 0], sizes = [8, 16], strides = [1, 1]} : vector<8x64xf32> to vector<8x16xf32>
    %cst_242 = arith.constant 5.000000e-01 : f32
    %843 = vector.broadcast %cst_242 : f32 to vector<8x16xf32>
    %844 = arith.mulf %843, %842 : vector<8x16xf32>
    %845 = math.tanh %844 : vector<8x16xf32>
    %cst_243 = arith.constant 5.000000e-01 : f32
    %846 = vector.broadcast %cst_243 : f32 to vector<8x16xf32>
    %847 = arith.mulf %846, %845 : vector<8x16xf32>
    %cst_244 = arith.constant 5.000000e-01 : f32
    %848 = vector.broadcast %cst_244 : f32 to vector<8x16xf32>
    %849 = arith.addf %847, %848 : vector<8x16xf32>
    %850 = vector.extract_strided_slice %810 {offsets = [0, 16], sizes = [8, 16], strides = [1, 1]} : vector<8x64xf32> to vector<8x16xf32>
    %cst_245 = arith.constant 5.000000e-01 : f32
    %851 = vector.broadcast %cst_245 : f32 to vector<8x16xf32>
    %852 = arith.mulf %851, %850 : vector<8x16xf32>
    %853 = math.tanh %852 : vector<8x16xf32>
    %cst_246 = arith.constant 5.000000e-01 : f32
    %854 = vector.broadcast %cst_246 : f32 to vector<8x16xf32>
    %855 = arith.mulf %854, %853 : vector<8x16xf32>
    %cst_247 = arith.constant 5.000000e-01 : f32
    %856 = vector.broadcast %cst_247 : f32 to vector<8x16xf32>
    %857 = arith.addf %855, %856 : vector<8x16xf32>
    %858 = vector.extract_strided_slice %810 {offsets = [0, 32], sizes = [8, 16], strides = [1, 1]} : vector<8x64xf32> to vector<8x16xf32>
    %859 = math.tanh %858 : vector<8x16xf32>
    %860 = vector.extract_strided_slice %810 {offsets = [0, 48], sizes = [8, 16], strides = [1, 1]} : vector<8x64xf32> to vector<8x16xf32>
    %cst_248 = arith.constant 5.000000e-01 : f32
    %861 = vector.broadcast %cst_248 : f32 to vector<8x16xf32>
    %862 = arith.mulf %861, %860 : vector<8x16xf32>
    %863 = math.tanh %862 : vector<8x16xf32>
    %cst_249 = arith.constant 5.000000e-01 : f32
    %864 = vector.broadcast %cst_249 : f32 to vector<8x16xf32>
    %865 = arith.mulf %864, %863 : vector<8x16xf32>
    %cst_250 = arith.constant 5.000000e-01 : f32
    %866 = vector.broadcast %cst_250 : f32 to vector<8x16xf32>
    %867 = arith.addf %865, %866 : vector<8x16xf32>
    %868 = arith.mulf %857, %800 : vector<8x16xf32>
    %869 = arith.mulf %849, %859 : vector<8x16xf32>
    %870 = arith.addf %868, %869 : vector<8x16xf32>
    %871 = math.tanh %870 : vector<8x16xf32>
    %872 = arith.mulf %867, %871 : vector<8x16xf32>
    %873 = tpu.concatenate %841, %872 in 1 : vector<8x16xf32>, vector<8x16xf32> -> vector<8x32xf32>
    %cst_251 = arith.constant dense<0.000000e+00> : vector<8x128xf32>
    %874 = tpu.matmul %873, %590, %cst_251 {dimension_numbers = #tpu.dot_dimension_numbers<[1], [0], [0], [1], [0, 0, 1, 1], [], []>} : vector<8x32xf32>, vector<32x128xf32>, vector<8x128xf32> -> vector<8x128xf32>
    %875 = vector.extract_strided_slice %589 {offsets = [32, 0], sizes = [8, 64], strides = [1, 1]} : vector<64x128xf32> to vector<8x64xf32>
    %876 = vector.extract_strided_slice %874 {offsets = [0, 0], sizes = [8, 64], strides = [1, 1]} : vector<8x128xf32> to vector<8x64xf32>
    %877 = arith.addf %875, %876 : vector<8x64xf32>
    %878 = vector.extract_strided_slice %589 {offsets = [24, 64], sizes = [8, 64], strides = [1, 1]} : vector<64x128xf32> to vector<8x64xf32>
    %879 = vector.extract_strided_slice %874 {offsets = [0, 64], sizes = [8, 64], strides = [1, 1]} : vector<8x128xf32> to vector<8x64xf32>
    %880 = arith.addf %878, %879 : vector<8x64xf32>
    %881 = vector.extract_strided_slice %877 {offsets = [0, 0], sizes = [8, 16], strides = [1, 1]} : vector<8x64xf32> to vector<8x16xf32>
    %cst_252 = arith.constant 5.000000e-01 : f32
    %882 = vector.broadcast %cst_252 : f32 to vector<8x16xf32>
    %883 = arith.mulf %882, %881 : vector<8x16xf32>
    %884 = math.tanh %883 : vector<8x16xf32>
    %cst_253 = arith.constant 5.000000e-01 : f32
    %885 = vector.broadcast %cst_253 : f32 to vector<8x16xf32>
    %886 = arith.mulf %885, %884 : vector<8x16xf32>
    %cst_254 = arith.constant 5.000000e-01 : f32
    %887 = vector.broadcast %cst_254 : f32 to vector<8x16xf32>
    %888 = arith.addf %886, %887 : vector<8x16xf32>
    %889 = vector.extract_strided_slice %877 {offsets = [0, 16], sizes = [8, 16], strides = [1, 1]} : vector<8x64xf32> to vector<8x16xf32>
    %cst_255 = arith.constant 5.000000e-01 : f32
    %890 = vector.broadcast %cst_255 : f32 to vector<8x16xf32>
    %891 = arith.mulf %890, %889 : vector<8x16xf32>
    %892 = math.tanh %891 : vector<8x16xf32>
    %cst_256 = arith.constant 5.000000e-01 : f32
    %893 = vector.broadcast %cst_256 : f32 to vector<8x16xf32>
    %894 = arith.mulf %893, %892 : vector<8x16xf32>
    %cst_257 = arith.constant 5.000000e-01 : f32
    %895 = vector.broadcast %cst_257 : f32 to vector<8x16xf32>
    %896 = arith.addf %894, %895 : vector<8x16xf32>
    %897 = vector.extract_strided_slice %877 {offsets = [0, 32], sizes = [8, 16], strides = [1, 1]} : vector<8x64xf32> to vector<8x16xf32>
    %898 = math.tanh %897 : vector<8x16xf32>
    %899 = vector.extract_strided_slice %877 {offsets = [0, 48], sizes = [8, 16], strides = [1, 1]} : vector<8x64xf32> to vector<8x16xf32>
    %cst_258 = arith.constant 5.000000e-01 : f32
    %900 = vector.broadcast %cst_258 : f32 to vector<8x16xf32>
    %901 = arith.mulf %900, %899 : vector<8x16xf32>
    %902 = math.tanh %901 : vector<8x16xf32>
    %cst_259 = arith.constant 5.000000e-01 : f32
    %903 = vector.broadcast %cst_259 : f32 to vector<8x16xf32>
    %904 = arith.mulf %903, %902 : vector<8x16xf32>
    %cst_260 = arith.constant 5.000000e-01 : f32
    %905 = vector.broadcast %cst_260 : f32 to vector<8x16xf32>
    %906 = arith.addf %904, %905 : vector<8x16xf32>
    %907 = arith.mulf %896, %839 : vector<8x16xf32>
    %908 = arith.mulf %888, %898 : vector<8x16xf32>
    %909 = arith.addf %907, %908 : vector<8x16xf32>
    %910 = math.tanh %909 : vector<8x16xf32>
    %911 = arith.mulf %906, %910 : vector<8x16xf32>
    %912 = vector.extract_strided_slice %880 {offsets = [0, 0], sizes = [8, 16], strides = [1, 1]} : vector<8x64xf32> to vector<8x16xf32>
    %cst_261 = arith.constant 5.000000e-01 : f32
    %913 = vector.broadcast %cst_261 : f32 to vector<8x16xf32>
    %914 = arith.mulf %913, %912 : vector<8x16xf32>
    %915 = math.tanh %914 : vector<8x16xf32>
    %cst_262 = arith.constant 5.000000e-01 : f32
    %916 = vector.broadcast %cst_262 : f32 to vector<8x16xf32>
    %917 = arith.mulf %916, %915 : vector<8x16xf32>
    %cst_263 = arith.constant 5.000000e-01 : f32
    %918 = vector.broadcast %cst_263 : f32 to vector<8x16xf32>
    %919 = arith.addf %917, %918 : vector<8x16xf32>
    %920 = vector.extract_strided_slice %880 {offsets = [0, 16], sizes = [8, 16], strides = [1, 1]} : vector<8x64xf32> to vector<8x16xf32>
    %cst_264 = arith.constant 5.000000e-01 : f32
    %921 = vector.broadcast %cst_264 : f32 to vector<8x16xf32>
    %922 = arith.mulf %921, %920 : vector<8x16xf32>
    %923 = math.tanh %922 : vector<8x16xf32>
    %cst_265 = arith.constant 5.000000e-01 : f32
    %924 = vector.broadcast %cst_265 : f32 to vector<8x16xf32>
    %925 = arith.mulf %924, %923 : vector<8x16xf32>
    %cst_266 = arith.constant 5.000000e-01 : f32
    %926 = vector.broadcast %cst_266 : f32 to vector<8x16xf32>
    %927 = arith.addf %925, %926 : vector<8x16xf32>
    %928 = vector.extract_strided_slice %880 {offsets = [0, 32], sizes = [8, 16], strides = [1, 1]} : vector<8x64xf32> to vector<8x16xf32>
    %929 = math.tanh %928 : vector<8x16xf32>
    %930 = vector.extract_strided_slice %880 {offsets = [0, 48], sizes = [8, 16], strides = [1, 1]} : vector<8x64xf32> to vector<8x16xf32>
    %cst_267 = arith.constant 5.000000e-01 : f32
    %931 = vector.broadcast %cst_267 : f32 to vector<8x16xf32>
    %932 = arith.mulf %931, %930 : vector<8x16xf32>
    %933 = math.tanh %932 : vector<8x16xf32>
    %cst_268 = arith.constant 5.000000e-01 : f32
    %934 = vector.broadcast %cst_268 : f32 to vector<8x16xf32>
    %935 = arith.mulf %934, %933 : vector<8x16xf32>
    %cst_269 = arith.constant 5.000000e-01 : f32
    %936 = vector.broadcast %cst_269 : f32 to vector<8x16xf32>
    %937 = arith.addf %935, %936 : vector<8x16xf32>
    %938 = arith.mulf %927, %870 : vector<8x16xf32>
    %939 = arith.mulf %919, %929 : vector<8x16xf32>
    %940 = arith.addf %938, %939 : vector<8x16xf32>
    %941 = math.tanh %940 : vector<8x16xf32>
    %942 = arith.mulf %937, %941 : vector<8x16xf32>
    %943 = tpu.concatenate %911, %942 in 1 : vector<8x16xf32>, vector<8x16xf32> -> vector<8x32xf32>
    %cst_270 = arith.constant dense<0.000000e+00> : vector<8x128xf32>
    %944 = tpu.matmul %943, %590, %cst_270 {dimension_numbers = #tpu.dot_dimension_numbers<[1], [0], [0], [1], [0, 0, 1, 1], [], []>} : vector<8x32xf32>, vector<32x128xf32>, vector<8x128xf32> -> vector<8x128xf32>
    %945 = vector.extract_strided_slice %589 {offsets = [40, 0], sizes = [8, 64], strides = [1, 1]} : vector<64x128xf32> to vector<8x64xf32>
    %946 = vector.extract_strided_slice %944 {offsets = [0, 0], sizes = [8, 64], strides = [1, 1]} : vector<8x128xf32> to vector<8x64xf32>
    %947 = arith.addf %945, %946 : vector<8x64xf32>
    %948 = vector.extract_strided_slice %589 {offsets = [16, 64], sizes = [8, 64], strides = [1, 1]} : vector<64x128xf32> to vector<8x64xf32>
    %949 = vector.extract_strided_slice %944 {offsets = [0, 64], sizes = [8, 64], strides = [1, 1]} : vector<8x128xf32> to vector<8x64xf32>
    %950 = arith.addf %948, %949 : vector<8x64xf32>
    %951 = vector.extract_strided_slice %947 {offsets = [0, 0], sizes = [8, 16], strides = [1, 1]} : vector<8x64xf32> to vector<8x16xf32>
    %cst_271 = arith.constant 5.000000e-01 : f32
    %952 = vector.broadcast %cst_271 : f32 to vector<8x16xf32>
    %953 = arith.mulf %952, %951 : vector<8x16xf32>
    %954 = math.tanh %953 : vector<8x16xf32>
    %cst_272 = arith.constant 5.000000e-01 : f32
    %955 = vector.broadcast %cst_272 : f32 to vector<8x16xf32>
    %956 = arith.mulf %955, %954 : vector<8x16xf32>
    %cst_273 = arith.constant 5.000000e-01 : f32
    %957 = vector.broadcast %cst_273 : f32 to vector<8x16xf32>
    %958 = arith.addf %956, %957 : vector<8x16xf32>
    %959 = vector.extract_strided_slice %947 {offsets = [0, 16], sizes = [8, 16], strides = [1, 1]} : vector<8x64xf32> to vector<8x16xf32>
    %cst_274 = arith.constant 5.000000e-01 : f32
    %960 = vector.broadcast %cst_274 : f32 to vector<8x16xf32>
    %961 = arith.mulf %960, %959 : vector<8x16xf32>
    %962 = math.tanh %961 : vector<8x16xf32>
    %cst_275 = arith.constant 5.000000e-01 : f32
    %963 = vector.broadcast %cst_275 : f32 to vector<8x16xf32>
    %964 = arith.mulf %963, %962 : vector<8x16xf32>
    %cst_276 = arith.constant 5.000000e-01 : f32
    %965 = vector.broadcast %cst_276 : f32 to vector<8x16xf32>
    %966 = arith.addf %964, %965 : vector<8x16xf32>
    %967 = vector.extract_strided_slice %947 {offsets = [0, 32], sizes = [8, 16], strides = [1, 1]} : vector<8x64xf32> to vector<8x16xf32>
    %968 = math.tanh %967 : vector<8x16xf32>
    %969 = vector.extract_strided_slice %947 {offsets = [0, 48], sizes = [8, 16], strides = [1, 1]} : vector<8x64xf32> to vector<8x16xf32>
    %cst_277 = arith.constant 5.000000e-01 : f32
    %970 = vector.broadcast %cst_277 : f32 to vector<8x16xf32>
    %971 = arith.mulf %970, %969 : vector<8x16xf32>
    %972 = math.tanh %971 : vector<8x16xf32>
    %cst_278 = arith.constant 5.000000e-01 : f32
    %973 = vector.broadcast %cst_278 : f32 to vector<8x16xf32>
    %974 = arith.mulf %973, %972 : vector<8x16xf32>
    %cst_279 = arith.constant 5.000000e-01 : f32
    %975 = vector.broadcast %cst_279 : f32 to vector<8x16xf32>
    %976 = arith.addf %974, %975 : vector<8x16xf32>
    %977 = arith.mulf %966, %909 : vector<8x16xf32>
    %978 = arith.mulf %958, %968 : vector<8x16xf32>
    %979 = arith.addf %977, %978 : vector<8x16xf32>
    %980 = math.tanh %979 : vector<8x16xf32>
    %981 = arith.mulf %976, %980 : vector<8x16xf32>
    %982 = vector.extract_strided_slice %950 {offsets = [0, 0], sizes = [8, 16], strides = [1, 1]} : vector<8x64xf32> to vector<8x16xf32>
    %cst_280 = arith.constant 5.000000e-01 : f32
    %983 = vector.broadcast %cst_280 : f32 to vector<8x16xf32>
    %984 = arith.mulf %983, %982 : vector<8x16xf32>
    %985 = math.tanh %984 : vector<8x16xf32>
    %cst_281 = arith.constant 5.000000e-01 : f32
    %986 = vector.broadcast %cst_281 : f32 to vector<8x16xf32>
    %987 = arith.mulf %986, %985 : vector<8x16xf32>
    %cst_282 = arith.constant 5.000000e-01 : f32
    %988 = vector.broadcast %cst_282 : f32 to vector<8x16xf32>
    %989 = arith.addf %987, %988 : vector<8x16xf32>
    %990 = vector.extract_strided_slice %950 {offsets = [0, 16], sizes = [8, 16], strides = [1, 1]} : vector<8x64xf32> to vector<8x16xf32>
    %cst_283 = arith.constant 5.000000e-01 : f32
    %991 = vector.broadcast %cst_283 : f32 to vector<8x16xf32>
    %992 = arith.mulf %991, %990 : vector<8x16xf32>
    %993 = math.tanh %992 : vector<8x16xf32>
    %cst_284 = arith.constant 5.000000e-01 : f32
    %994 = vector.broadcast %cst_284 : f32 to vector<8x16xf32>
    %995 = arith.mulf %994, %993 : vector<8x16xf32>
    %cst_285 = arith.constant 5.000000e-01 : f32
    %996 = vector.broadcast %cst_285 : f32 to vector<8x16xf32>
    %997 = arith.addf %995, %996 : vector<8x16xf32>
    %998 = vector.extract_strided_slice %950 {offsets = [0, 32], sizes = [8, 16], strides = [1, 1]} : vector<8x64xf32> to vector<8x16xf32>
    %999 = math.tanh %998 : vector<8x16xf32>
    %1000 = vector.extract_strided_slice %950 {offsets = [0, 48], sizes = [8, 16], strides = [1, 1]} : vector<8x64xf32> to vector<8x16xf32>
    %cst_286 = arith.constant 5.000000e-01 : f32
    %1001 = vector.broadcast %cst_286 : f32 to vector<8x16xf32>
    %1002 = arith.mulf %1001, %1000 : vector<8x16xf32>
    %1003 = math.tanh %1002 : vector<8x16xf32>
    %cst_287 = arith.constant 5.000000e-01 : f32
    %1004 = vector.broadcast %cst_287 : f32 to vector<8x16xf32>
    %1005 = arith.mulf %1004, %1003 : vector<8x16xf32>
    %cst_288 = arith.constant 5.000000e-01 : f32
    %1006 = vector.broadcast %cst_288 : f32 to vector<8x16xf32>
    %1007 = arith.addf %1005, %1006 : vector<8x16xf32>
    %1008 = arith.mulf %997, %940 : vector<8x16xf32>
    %1009 = arith.mulf %989, %999 : vector<8x16xf32>
    %1010 = arith.addf %1008, %1009 : vector<8x16xf32>
    %1011 = math.tanh %1010 : vector<8x16xf32>
    %1012 = arith.mulf %1007, %1011 : vector<8x16xf32>
    %1013 = tpu.concatenate %981, %1012 in 1 : vector<8x16xf32>, vector<8x16xf32> -> vector<8x32xf32>
    %cst_289 = arith.constant dense<0.000000e+00> : vector<8x128xf32>
    %1014 = tpu.matmul %1013, %590, %cst_289 {dimension_numbers = #tpu.dot_dimension_numbers<[1], [0], [0], [1], [0, 0, 1, 1], [], []>} : vector<8x32xf32>, vector<32x128xf32>, vector<8x128xf32> -> vector<8x128xf32>
    %1015 = vector.extract_strided_slice %589 {offsets = [48, 0], sizes = [8, 64], strides = [1, 1]} : vector<64x128xf32> to vector<8x64xf32>
    %1016 = vector.extract_strided_slice %1014 {offsets = [0, 0], sizes = [8, 64], strides = [1, 1]} : vector<8x128xf32> to vector<8x64xf32>
    %1017 = arith.addf %1015, %1016 : vector<8x64xf32>
    %1018 = vector.extract_strided_slice %589 {offsets = [8, 64], sizes = [8, 64], strides = [1, 1]} : vector<64x128xf32> to vector<8x64xf32>
    %1019 = vector.extract_strided_slice %1014 {offsets = [0, 64], sizes = [8, 64], strides = [1, 1]} : vector<8x128xf32> to vector<8x64xf32>
    %1020 = arith.addf %1018, %1019 : vector<8x64xf32>
    %1021 = vector.extract_strided_slice %1017 {offsets = [0, 0], sizes = [8, 16], strides = [1, 1]} : vector<8x64xf32> to vector<8x16xf32>
    %cst_290 = arith.constant 5.000000e-01 : f32
    %1022 = vector.broadcast %cst_290 : f32 to vector<8x16xf32>
    %1023 = arith.mulf %1022, %1021 : vector<8x16xf32>
    %1024 = math.tanh %1023 : vector<8x16xf32>
    %cst_291 = arith.constant 5.000000e-01 : f32
    %1025 = vector.broadcast %cst_291 : f32 to vector<8x16xf32>
    %1026 = arith.mulf %1025, %1024 : vector<8x16xf32>
    %cst_292 = arith.constant 5.000000e-01 : f32
    %1027 = vector.broadcast %cst_292 : f32 to vector<8x16xf32>
    %1028 = arith.addf %1026, %1027 : vector<8x16xf32>
    %1029 = vector.extract_strided_slice %1017 {offsets = [0, 16], sizes = [8, 16], strides = [1, 1]} : vector<8x64xf32> to vector<8x16xf32>
    %cst_293 = arith.constant 5.000000e-01 : f32
    %1030 = vector.broadcast %cst_293 : f32 to vector<8x16xf32>
    %1031 = arith.mulf %1030, %1029 : vector<8x16xf32>
    %1032 = math.tanh %1031 : vector<8x16xf32>
    %cst_294 = arith.constant 5.000000e-01 : f32
    %1033 = vector.broadcast %cst_294 : f32 to vector<8x16xf32>
    %1034 = arith.mulf %1033, %1032 : vector<8x16xf32>
    %cst_295 = arith.constant 5.000000e-01 : f32
    %1035 = vector.broadcast %cst_295 : f32 to vector<8x16xf32>
    %1036 = arith.addf %1034, %1035 : vector<8x16xf32>
    %1037 = vector.extract_strided_slice %1017 {offsets = [0, 32], sizes = [8, 16], strides = [1, 1]} : vector<8x64xf32> to vector<8x16xf32>
    %1038 = math.tanh %1037 : vector<8x16xf32>
    %1039 = vector.extract_strided_slice %1017 {offsets = [0, 48], sizes = [8, 16], strides = [1, 1]} : vector<8x64xf32> to vector<8x16xf32>
    %cst_296 = arith.constant 5.000000e-01 : f32
    %1040 = vector.broadcast %cst_296 : f32 to vector<8x16xf32>
    %1041 = arith.mulf %1040, %1039 : vector<8x16xf32>
    %1042 = math.tanh %1041 : vector<8x16xf32>
    %cst_297 = arith.constant 5.000000e-01 : f32
    %1043 = vector.broadcast %cst_297 : f32 to vector<8x16xf32>
    %1044 = arith.mulf %1043, %1042 : vector<8x16xf32>
    %cst_298 = arith.constant 5.000000e-01 : f32
    %1045 = vector.broadcast %cst_298 : f32 to vector<8x16xf32>
    %1046 = arith.addf %1044, %1045 : vector<8x16xf32>
    %1047 = arith.mulf %1036, %979 : vector<8x16xf32>
    %1048 = arith.mulf %1028, %1038 : vector<8x16xf32>
    %1049 = arith.addf %1047, %1048 : vector<8x16xf32>
    %1050 = math.tanh %1049 : vector<8x16xf32>
    %1051 = arith.mulf %1046, %1050 : vector<8x16xf32>
    %1052 = vector.extract_strided_slice %1020 {offsets = [0, 0], sizes = [8, 16], strides = [1, 1]} : vector<8x64xf32> to vector<8x16xf32>
    %cst_299 = arith.constant 5.000000e-01 : f32
    %1053 = vector.broadcast %cst_299 : f32 to vector<8x16xf32>
    %1054 = arith.mulf %1053, %1052 : vector<8x16xf32>
    %1055 = math.tanh %1054 : vector<8x16xf32>
    %cst_300 = arith.constant 5.000000e-01 : f32
    %1056 = vector.broadcast %cst_300 : f32 to vector<8x16xf32>
    %1057 = arith.mulf %1056, %1055 : vector<8x16xf32>
    %cst_301 = arith.constant 5.000000e-01 : f32
    %1058 = vector.broadcast %cst_301 : f32 to vector<8x16xf32>
    %1059 = arith.addf %1057, %1058 : vector<8x16xf32>
    %1060 = vector.extract_strided_slice %1020 {offsets = [0, 16], sizes = [8, 16], strides = [1, 1]} : vector<8x64xf32> to vector<8x16xf32>
    %cst_302 = arith.constant 5.000000e-01 : f32
    %1061 = vector.broadcast %cst_302 : f32 to vector<8x16xf32>
    %1062 = arith.mulf %1061, %1060 : vector<8x16xf32>
    %1063 = math.tanh %1062 : vector<8x16xf32>
    %cst_303 = arith.constant 5.000000e-01 : f32
    %1064 = vector.broadcast %cst_303 : f32 to vector<8x16xf32>
    %1065 = arith.mulf %1064, %1063 : vector<8x16xf32>
    %cst_304 = arith.constant 5.000000e-01 : f32
    %1066 = vector.broadcast %cst_304 : f32 to vector<8x16xf32>
    %1067 = arith.addf %1065, %1066 : vector<8x16xf32>
    %1068 = vector.extract_strided_slice %1020 {offsets = [0, 32], sizes = [8, 16], strides = [1, 1]} : vector<8x64xf32> to vector<8x16xf32>
    %1069 = math.tanh %1068 : vector<8x16xf32>
    %1070 = vector.extract_strided_slice %1020 {offsets = [0, 48], sizes = [8, 16], strides = [1, 1]} : vector<8x64xf32> to vector<8x16xf32>
    %cst_305 = arith.constant 5.000000e-01 : f32
    %1071 = vector.broadcast %cst_305 : f32 to vector<8x16xf32>
    %1072 = arith.mulf %1071, %1070 : vector<8x16xf32>
    %1073 = math.tanh %1072 : vector<8x16xf32>
    %cst_306 = arith.constant 5.000000e-01 : f32
    %1074 = vector.broadcast %cst_306 : f32 to vector<8x16xf32>
    %1075 = arith.mulf %1074, %1073 : vector<8x16xf32>
    %cst_307 = arith.constant 5.000000e-01 : f32
    %1076 = vector.broadcast %cst_307 : f32 to vector<8x16xf32>
    %1077 = arith.addf %1075, %1076 : vector<8x16xf32>
    %1078 = arith.mulf %1067, %1010 : vector<8x16xf32>
    %1079 = arith.mulf %1059, %1069 : vector<8x16xf32>
    %1080 = arith.addf %1078, %1079 : vector<8x16xf32>
    %1081 = math.tanh %1080 : vector<8x16xf32>
    %1082 = arith.mulf %1077, %1081 : vector<8x16xf32>
    %1083 = tpu.concatenate %1051, %1082 in 1 : vector<8x16xf32>, vector<8x16xf32> -> vector<8x32xf32>
    %cst_308 = arith.constant dense<0.000000e+00> : vector<8x128xf32>
    %1084 = tpu.matmul %1083, %590, %cst_308 {dimension_numbers = #tpu.dot_dimension_numbers<[1], [0], [0], [1], [0, 0, 1, 1], [], []>} : vector<8x32xf32>, vector<32x128xf32>, vector<8x128xf32> -> vector<8x128xf32>
    %1085 = vector.extract_strided_slice %589 {offsets = [56, 0], sizes = [8, 64], strides = [1, 1]} : vector<64x128xf32> to vector<8x64xf32>
    %1086 = vector.extract_strided_slice %1084 {offsets = [0, 0], sizes = [8, 64], strides = [1, 1]} : vector<8x128xf32> to vector<8x64xf32>
    %1087 = arith.addf %1085, %1086 : vector<8x64xf32>
    %1088 = vector.extract_strided_slice %589 {offsets = [0, 64], sizes = [8, 64], strides = [1, 1]} : vector<64x128xf32> to vector<8x64xf32>
    %1089 = vector.extract_strided_slice %1084 {offsets = [0, 64], sizes = [8, 64], strides = [1, 1]} : vector<8x128xf32> to vector<8x64xf32>
    %1090 = arith.addf %1088, %1089 : vector<8x64xf32>
    %1091 = vector.extract_strided_slice %1087 {offsets = [0, 0], sizes = [8, 16], strides = [1, 1]} : vector<8x64xf32> to vector<8x16xf32>
    %cst_309 = arith.constant 5.000000e-01 : f32
    %1092 = vector.broadcast %cst_309 : f32 to vector<8x16xf32>
    %1093 = arith.mulf %1092, %1091 : vector<8x16xf32>
    %1094 = math.tanh %1093 : vector<8x16xf32>
    %cst_310 = arith.constant 5.000000e-01 : f32
    %1095 = vector.broadcast %cst_310 : f32 to vector<8x16xf32>
    %1096 = arith.mulf %1095, %1094 : vector<8x16xf32>
    %cst_311 = arith.constant 5.000000e-01 : f32
    %1097 = vector.broadcast %cst_311 : f32 to vector<8x16xf32>
    %1098 = arith.addf %1096, %1097 : vector<8x16xf32>
    %1099 = vector.extract_strided_slice %1087 {offsets = [0, 16], sizes = [8, 16], strides = [1, 1]} : vector<8x64xf32> to vector<8x16xf32>
    %cst_312 = arith.constant 5.000000e-01 : f32
    %1100 = vector.broadcast %cst_312 : f32 to vector<8x16xf32>
    %1101 = arith.mulf %1100, %1099 : vector<8x16xf32>
    %1102 = math.tanh %1101 : vector<8x16xf32>
    %cst_313 = arith.constant 5.000000e-01 : f32
    %1103 = vector.broadcast %cst_313 : f32 to vector<8x16xf32>
    %1104 = arith.mulf %1103, %1102 : vector<8x16xf32>
    %cst_314 = arith.constant 5.000000e-01 : f32
    %1105 = vector.broadcast %cst_314 : f32 to vector<8x16xf32>
    %1106 = arith.addf %1104, %1105 : vector<8x16xf32>
    %1107 = vector.extract_strided_slice %1087 {offsets = [0, 32], sizes = [8, 16], strides = [1, 1]} : vector<8x64xf32> to vector<8x16xf32>
    %1108 = math.tanh %1107 : vector<8x16xf32>
    %1109 = vector.extract_strided_slice %1087 {offsets = [0, 48], sizes = [8, 16], strides = [1, 1]} : vector<8x64xf32> to vector<8x16xf32>
    %cst_315 = arith.constant 5.000000e-01 : f32
    %1110 = vector.broadcast %cst_315 : f32 to vector<8x16xf32>
    %1111 = arith.mulf %1110, %1109 : vector<8x16xf32>
    %1112 = math.tanh %1111 : vector<8x16xf32>
    %cst_316 = arith.constant 5.000000e-01 : f32
    %1113 = vector.broadcast %cst_316 : f32 to vector<8x16xf32>
    %1114 = arith.mulf %1113, %1112 : vector<8x16xf32>
    %cst_317 = arith.constant 5.000000e-01 : f32
    %1115 = vector.broadcast %cst_317 : f32 to vector<8x16xf32>
    %1116 = arith.addf %1114, %1115 : vector<8x16xf32>
    %1117 = arith.mulf %1106, %1049 : vector<8x16xf32>
    %1118 = arith.mulf %1098, %1108 : vector<8x16xf32>
    %1119 = arith.addf %1117, %1118 : vector<8x16xf32>
    %1120 = math.tanh %1119 : vector<8x16xf32>
    %1121 = arith.mulf %1116, %1120 : vector<8x16xf32>
    %1122 = vector.extract_strided_slice %1090 {offsets = [0, 0], sizes = [8, 16], strides = [1, 1]} : vector<8x64xf32> to vector<8x16xf32>
    %cst_318 = arith.constant 5.000000e-01 : f32
    %1123 = vector.broadcast %cst_318 : f32 to vector<8x16xf32>
    %1124 = arith.mulf %1123, %1122 : vector<8x16xf32>
    %1125 = math.tanh %1124 : vector<8x16xf32>
    %cst_319 = arith.constant 5.000000e-01 : f32
    %1126 = vector.broadcast %cst_319 : f32 to vector<8x16xf32>
    %1127 = arith.mulf %1126, %1125 : vector<8x16xf32>
    %cst_320 = arith.constant 5.000000e-01 : f32
    %1128 = vector.broadcast %cst_320 : f32 to vector<8x16xf32>
    %1129 = arith.addf %1127, %1128 : vector<8x16xf32>
    %1130 = vector.extract_strided_slice %1090 {offsets = [0, 16], sizes = [8, 16], strides = [1, 1]} : vector<8x64xf32> to vector<8x16xf32>
    %cst_321 = arith.constant 5.000000e-01 : f32
    %1131 = vector.broadcast %cst_321 : f32 to vector<8x16xf32>
    %1132 = arith.mulf %1131, %1130 : vector<8x16xf32>
    %1133 = math.tanh %1132 : vector<8x16xf32>
    %cst_322 = arith.constant 5.000000e-01 : f32
    %1134 = vector.broadcast %cst_322 : f32 to vector<8x16xf32>
    %1135 = arith.mulf %1134, %1133 : vector<8x16xf32>
    %cst_323 = arith.constant 5.000000e-01 : f32
    %1136 = vector.broadcast %cst_323 : f32 to vector<8x16xf32>
    %1137 = arith.addf %1135, %1136 : vector<8x16xf32>
    %1138 = vector.extract_strided_slice %1090 {offsets = [0, 32], sizes = [8, 16], strides = [1, 1]} : vector<8x64xf32> to vector<8x16xf32>
    %1139 = math.tanh %1138 : vector<8x16xf32>
    %1140 = vector.extract_strided_slice %1090 {offsets = [0, 48], sizes = [8, 16], strides = [1, 1]} : vector<8x64xf32> to vector<8x16xf32>
    %cst_324 = arith.constant 5.000000e-01 : f32
    %1141 = vector.broadcast %cst_324 : f32 to vector<8x16xf32>
    %1142 = arith.mulf %1141, %1140 : vector<8x16xf32>
    %1143 = math.tanh %1142 : vector<8x16xf32>
    %cst_325 = arith.constant 5.000000e-01 : f32
    %1144 = vector.broadcast %cst_325 : f32 to vector<8x16xf32>
    %1145 = arith.mulf %1144, %1143 : vector<8x16xf32>
    %cst_326 = arith.constant 5.000000e-01 : f32
    %1146 = vector.broadcast %cst_326 : f32 to vector<8x16xf32>
    %1147 = arith.addf %1145, %1146 : vector<8x16xf32>
    %1148 = arith.mulf %1137, %1080 : vector<8x16xf32>
    %1149 = arith.mulf %1129, %1139 : vector<8x16xf32>
    %1150 = arith.addf %1148, %1149 : vector<8x16xf32>
    %1151 = math.tanh %1150 : vector<8x16xf32>
    %1152 = arith.mulf %1147, %1151 : vector<8x16xf32>
    %1153 = arith.addf %631, %701 : vector<8x16xf32>
    %1154 = arith.addf %1152, %1082 : vector<8x16xf32>
    %1155 = arith.addf %1153, %771 : vector<8x16xf32>
    %1156 = arith.addf %1154, %1012 : vector<8x16xf32>
    %1157 = arith.addf %1155, %841 : vector<8x16xf32>
    %1158 = arith.addf %1156, %942 : vector<8x16xf32>
    %1159 = arith.addf %1157, %911 : vector<8x16xf32>
    %1160 = arith.addf %1158, %872 : vector<8x16xf32>
    %1161 = arith.addf %1159, %981 : vector<8x16xf32>
    %1162 = arith.addf %1160, %802 : vector<8x16xf32>
    %1163 = arith.addf %1161, %1051 : vector<8x16xf32>
    %1164 = arith.addf %1162, %732 : vector<8x16xf32>
    %1165 = arith.addf %1163, %1121 : vector<8x16xf32>
    %1166 = arith.addf %1164, %662 : vector<8x16xf32>
    %1167 = tpu.concatenate %1165, %1166 in 1 : vector<8x16xf32>, vector<8x16xf32> -> vector<8x32xf32>
    %cst_327 = arith.constant 1.250000e-01 : f32
    %1168 = vector.broadcast %cst_327 : f32 to vector<8x32xf32>
    %1169 = arith.mulf %1167, %1168 : vector<8x32xf32>
    %c0_328 = arith.constant 0 : index
    %c0_329 = arith.constant 0 : index
    %1170 = vector.load %arg9[%c0_328, %c0_329] : memref<8x32xf32, #tpu.memory_space<vmem>>, vector<8x32xf32>
    tpu.vector_store %arg9[%c0_328, %c0_329], %1169 {strides = array<i32>} : memref<8x32xf32, #tpu.memory_space<vmem>>, vector<8x32xf32>,
    return
  }
  func.func @transform_0(%arg0: i32) -> (i32, i32) {
    %c0_i32 = arith.constant 0 : i32
    %c0_i32_0 = arith.constant 0 : i32
    %c0_i32_1 = arith.constant 0 : i32
    return %c0_i32, %c0_i32_0 : i32, i32
  }
  func.func @transform_1(%arg0: i32) -> (i32, i32) {
    %c0_i32 = arith.constant 0 : i32
    %c0_i32_0 = arith.constant 0 : i32
    %c0_i32_1 = arith.constant 0 : i32
    return %c0_i32, %c0_i32_0 : i32, i32
  }
  func.func @transform_2(%arg0: i32) -> (i32, i32) {
    %c0_i32 = arith.constant 0 : i32
    %c0_i32_0 = arith.constant 0 : i32
    %c0_i32_1 = arith.constant 0 : i32
    return %c0_i32, %c0_i32_0 : i32, i32
  }
  func.func @transform_3(%arg0: i32) -> (i32, i32) {
    %c0_i32 = arith.constant 0 : i32
    %c0_i32_0 = arith.constant 0 : i32
    %c0_i32_1 = arith.constant 0 : i32
    return %c0_i32, %c0_i32_0 : i32, i32
  }
  func.func @transform_4(%arg0: i32) -> (i32, i32) {
    %c0_i32 = arith.constant 0 : i32
    %c0_i32_0 = arith.constant 0 : i32
    %c0_i32_1 = arith.constant 0 : i32
    return %c0_i32, %c0_i32_0 : i32, i32
  }
  func.func @transform_5(%arg0: i32) -> (i32, i32) {
    %c0_i32 = arith.constant 0 : i32
    %c0_i32_0 = arith.constant 0 : i32
    %c0_i32_1 = arith.constant 0 : i32
    return %c0_i32, %c0_i32_0 : i32, i32
  }
  func.func @transform_6(%arg0: i32) -> (i32, i32) {
    %c0_i32 = arith.constant 0 : i32
    %c0_i32_0 = arith.constant 0 : i32
    %c0_i32_1 = arith.constant 0 : i32
    return %c0_i32, %c0_i32_0 : i32, i32
  }
  func.func @transform_7(%arg0: i32) -> (i32, i32) {
    %c0_i32 = arith.constant 0 : i32
    %c0_i32_0 = arith.constant 0 : i32
    %c0_i32_1 = arith.constant 0 : i32
    return %c0_i32, %c0_i32_0 : i32, i32
  }
  func.func @transform_8(%arg0: i32) -> (i32, i32) {
    %c0_i32 = arith.constant 0 : i32
    %c0_i32_0 = arith.constant 0 : i32
    %c0_i32_1 = arith.constant 0 : i32
    return %c0_i32, %c0_i32_0 : i32, i32
  }
}

</mosaic_0001>

<bundles_post_ra>
// kernel: tpu_custom_call.1
= control target key start
LH: loop header
LB: loop body
LE: loop exit
PB: predicated region body
PF: predicated region fallthrough
CT: control target
= control target key end

     0   :  { %13 = vsyncpa [#allocation3], 0  ;;  %s4057_s0 = inlined_call_operand.vmem [shape: s32[64,1], index: 0, kind: input, shape index: {}]   ;;  %s4058_s1 = inlined_call_operand.vmem [shape: f32[16,8], index: 1, kind: input, shape index: {}]   ;;  %s4059_s2 = inlined_call_operand.hbm [shape: f32[8,256], index: 2, kind: input, shape index: {}]   ;;  %s4060_s3 = inlined_call_operand.vmem [shape: f32[1,256], index: 3, kind: input, shape index: {}]   ;;  %s4061_s4 = inlined_call_operand.hbm [shape: f32[64,256], index: 4, kind: input, shape index: {}]   ;;  %s4062_s5 = inlined_call_operand.vmem [shape: f32[64,128], index: 5, kind: input, shape index: {}]   ;;  %s4063_s6 = inlined_call_operand.vmem [shape: f32[1,128], index: 6, kind: input, shape index: {}]   ;;  %s4064_s7 = inlined_call_operand.vmem [shape: f32[32,128], index: 7, kind: input, shape index: {}]   ;;  %s4065_s8 = inlined_call_operand.hbm [shape: f32[8,32], index: 8, kind: output, shape index: {}]  }
   0x1   :  { %14 = vsyncpa [#allocation6], 0 }
   0x2   :  { %15 = vsyncpa [#allocation4], 0  ;;  %s3378_s27 = smov [#allocation2]   ;;  %s3379_s29 = smov [#allocation5]  }
   0x3   :  { %s26_s28 = sshll.u32 %s3378_s27, 4  ;;  %s37_s30 = sshll.u32 %s3379_s29, 4  ;;  %s27_s28 = int_to_ptr.vmem [resolvable:$true] %s26_s28  ;;  %s3436_s30 = int_to_ptr.vmem [resolvable:$true] %s37_s30 }
   0x4   :  { %s3306_s11 = scalar_lea.hbm %s4059_s2, 256 }
   0x5   :  { %p3307_p0 = scmp.ne.s32.totalorder %s4059_s2, %s3306_s11  ;;  %p3310_p1 = scmp.lt.u32.totalorder %s3306_s11, %s4059_s2 }
   0x7   :  { %p3312_p2 = pnand %p3310_p1, %p3307_p0 }
   0x9   :  { %3315 = shalt.err (!%p3312_p2)
}
   0xa   :  { %s3316_s16 = scalar_lea.vmem %s27_s28, 256  ;;  %p3321_p4 = scmp.lt.s32.totalorder %s27_s28, %s27_s28 }
   0xb   :  { %p3317_p3 = scmp.ne.s32.totalorder %s27_s28, %s3316_s16  ;;  %p3322_p5 = scmp.lt.s32.totalorder %s3316_s16, %s3316_s16 }
   0xd   :  { %p3323_p6 = por %p3322_p5, %p3321_p4 }
   0xf   :  { %p3324_p7 = pnand %p3323_p6, %p3317_p3 }
  0x11   :  { %3327 = shalt.err (!%p3324_p7)
}
  0x12   :  { %29 = dma.hbm_to_vmem [thread:$0]  %s4059_s2, 256, %s27_s28, [#allocation3]  }
  0x13   :  { %s3328_s21 = scalar_lea.hbm %s4061_s4, 2048 }
  0x14   :  { %p3329_p8 = scmp.ne.s32.totalorder %s4061_s4, %s3328_s21  ;;  %p3332_p9 = scmp.lt.u32.totalorder %s3328_s21, %s4061_s4 }
  0x16   :  { %p3334_p10 = pnand %p3332_p9, %p3329_p8 }
  0x18   :  { %3337 = shalt.err (!%p3334_p10)
}
  0x19   :  { %s3338_s26 = scalar_lea.vmem %s3436_s30, 2048  ;;  %p3343_p12 = scmp.lt.s32.totalorder %s3436_s30, %s3436_s30 }
  0x1a   :  { %p3339_p11 = scmp.ne.s32.totalorder %s3436_s30, %s3338_s26  ;;  %p3344_p13 = scmp.lt.s32.totalorder %s3338_s26, %s3338_s26 }
  0x1c   :  { %p3345_p0 = por %p3344_p13, %p3343_p12 }
  0x1e   :  { %p3346_p1 = pnand %p3345_p0, %p3339_p11 }
  0x20   :  { %3349 = shalt.err (!%p3346_p1)
}
  0x21   :  { %s3380_s2 = smov 256   ;;  %s3381_s27 = smov 16  }
  0x22   :  { %43 = dma.hbm_to_vmem [thread:$0]  %s4061_s4, 2048, %s3436_s30, [#allocation6], %s3380_s2, %s3380_s2, %s3381_s27  }
  0x23   :  { %3372 = dma.done.wait [#allocation3], 256  }
  0x24   :  { %3373 = vsyncadd [#allocation3], 4294967040 }
  0x25   :  { %3374 = dma.done.wait [#allocation6], 2048  }
  0x26   :  { %3375 = vsyncadd [#allocation6], 4294965248  ;;  %v3382_v0 = vmov 0   ;;  %v3383_v1 = vmov 0.0   ;;  %v58_v2 = vld [vmem:[%s4057_s0 + $0x10] sm:$0xff]  ;;  %v56_v3 = vld [vmem:[%s4057_s0] sm:$0xff]  ;;  %v64_v16 = vlaneseq }
  0x27   :  { %3113 = vset.pattern.permute.xlu1 %v3382_v0  ;;  %3112 = vset.pattern.permute.xlu0 %v3382_v0  ;;  %v59_v4 = vld [vmem:[%s4057_s0 + $0x18] sm:$0xff]  ;;  %v57_v5 = vld [vmem:[%s4057_s0 + $0x8] sm:$0xff]  ;;  %v114_v6 = vld [vmem:[%s4058_s1] sm:$0xff]  ;;  %vm116_vm0 = vcmask 130048   ;;  %vm260_vm9 = vcmask 64512   ;;  %s3385_s2 = smov 32  }
  0x28   :  { %349 = vmatprep.mubr.f32.mxu1 %v3383_v1  ;;  %73 = vperm.xlu1 %3113, %v58_v2   ;;  %v115_v7 = vld [vmem:[%s4058_s1 + $0x8] sm:$0xff]  ;;  %v60_v10 = vld [vmem:[%s4057_s0 + $0x20] sm:$0xff]  ;;  %v63_v11 = vld [vmem:[%s4057_s0 + $0x38] sm:$0xff]  ;;  %v65_v17 = vand.u32 127, %v64_v16  ;;  %vm543_vm10 = vcmask 261120   ;;  %vm414_vm11 = vcmask 523264  }
  0x29   :  { %67 = vperm.xlu0 %3112, %v56_v3   ;;  %v2903_v8 = vpack.c.bf16 %v115_v7, %v114_v6  ;;  %v61_v9 = vld [vmem:[%s4057_s0 + $0x28] sm:$0xff]  ;;  %v62_v12 = vld [vmem:[%s4057_s0 + $0x30] sm:$0xff]  ;;  %v399_v13 = vld [vmem:[#allocation5 + $0x8] sm:$0xff]  ;;  %vm3387_vm12 = vmmov 0  }
  0x2a   :  { %v401_v14 = vld [vmem:[#allocation5 + $0x18] sm:$0xff]  ;;  %v398_v20 = vld [vmem:[#allocation5] sm:$0xff]  ;;  %v400_v21 = vld [vmem:[#allocation5 + $0x10] sm:$0xff] }
  0x2b   :  { %2904 = vmatprep.subr.bf16.mxu0 %v2903_v8  ;;  %v3499_v15 = vpack.c.bf16 %v401_v14, %v399_v13  ;;  %v403_v23 = vld [vmem:[#allocation5 + $0x28] sm:$0xff]  ;;  %v405_v24 = vld [vmem:[#allocation5 + $0x38] sm:$0xff]  ;;  %v3505_v27 = vpack.c.bf16 %v400_v21, %v398_v20  ;;  %v402_v30 = vld [vmem:[#allocation5 + $0x20] sm:$0xff] }
  0x2c   :  { %76 = vperm.xlu1 %3113, %v59_v4   ;;  %2906 = vmatpush3.bf16.msra.mxu0 %v2903_v8  ;;  %v3508_v29 = vpack.c.bf16 %v405_v24, %v403_v23  ;;  %v404_v31 = vld [vmem:[#allocation5 + $0x30] sm:$0xff]  ;;  %v407_v33 = vld [vmem:[#allocation5 + $0x48] sm:$0xff]  ;;  %v409_v34 = vld [vmem:[#allocation5 + $0x58] sm:$0xff]  ;;  %v251_v4 = vshrl.u32 %v64_v16, 7 }
  0x2d   :  { %70 = vperm.xlu0 %3112, %v57_v5   ;;  %2908 = vmatprep.subr.bf16.mxu0 %v3499_v15  ;;  %v3515_v38 = vpack.c.bf16 %v404_v31, %v402_v30  ;;  %v3518_v39 = vpack.c.bf16 %v409_v34, %v407_v33  ;;  %v406_v40 = vld [vmem:[#allocation5 + $0x40] sm:$0xff]  ;;  %v408_v41 = vld [vmem:[#allocation5 + $0x50] sm:$0xff]  ;;  %v411_v49 = vld [vmem:[#allocation5 + $0x68] sm:$0xff] }
  0x2e   :  { %v3524_v45 = vpack.c.bf16 %v408_v41, %v406_v40  ;;  %v413_v50 = vld [vmem:[#allocation5 + $0x78] sm:$0xff]  ;;  %v410_v52 = vld [vmem:[#allocation5 + $0x60] sm:$0xff]  ;;  %v412_v53 = vld [vmem:[#allocation5 + $0x70] sm:$0xff]  ;;  %v252_v5 = vsub.s32 0, %v251_v4  ;;  %v256_v7 = vsub.s32 1, %v251_v4 }
  0x2f   :  { %v3535_v51 = vpack.c.bf16 %v413_v50, %v411_v49  ;;  %v247_v54 = vld [vmem:[#allocation2 + $0x8] sm:$0xff]  ;;  %v3537_v55 = vpack.c.bf16 %v412_v53, %v410_v52  ;;  %v246_v56 = vld [vmem:[#allocation2] sm:$0xff] }
  0x30   :  { %82 = vperm.xlu1 %3113, %v61_v9   ;;  %285 = vmatprep.subr.mxu1 %v247_v54  ;;  %v248_v6 = vld [vmem:[%s4060_s3] sm:$0x3]  ;;  %s3384_s3 = smov 64  }
  0x31   :  { %79 = vperm.xlu0 %3112, %v60_v10   ;;  %286 = vmatpush1.msra.mxu1 %v246_v56  ;;  %v253_v8 = vrot.slane %v248_v6, %v252_v5  ;;  %v257_v9 = vrot.slane %v248_v6, %v256_v7 }
  0x32   :  { %2924 = vmatprep.subr.bf16.mxu1 %v3499_v15 }
  0x34   :  { %88 = vperm.xlu1 %3113, %v63_v11  }
  0x35   :  { %85 = vperm.xlu0 %3112, %v62_v12  }
  0xa7   :  { %v74_v18 = vpop.permute.xlu1 %73 }
  0xa8   :  { %v68_v19 = vpop.permute.xlu0 %67  ;;  %vm92_vm2 = vcmp.eq.s32.totalorder %v65_v17, %v74_v18 }
  0xa9   :  { %vm90_vm1 = vcmp.eq.s32.totalorder %v65_v17, %v68_v19  ;;  %v2660_v28 = vsel %vm92_vm2, 1.0, %v3383_v1 }
  0xaa   :  { %v2658_v22 = vsel %vm90_vm1, 1.0, %v3383_v1 }
  0xab   :  { %2775 = vmatprep.mubr.msk.f32.mxu0 %vm116_vm0, %v2658_v22  ;;  %v77_v25 = vpop.permute.xlu1 %76 }
  0xac   :  { %v71_v26 = vpop.permute.xlu0 %70  ;;  %vm93_vm3 = vcmp.eq.s32.totalorder %v65_v17, %v77_v25 }
  0xad   :  { %vm91_vm4 = vcmp.eq.s32.totalorder %v65_v17, %v71_v26  ;;  %v2661_v35 = vsel %vm93_vm3, 1.0, %v3383_v1 }
  0xae   :  { %v2659_v32 = vsel %vm91_vm4, 1.0, %v3383_v1 }
  0xaf   :  { %2776 = vmatmul.mubr.msk.f32.vlgmr.msra.gmra.mrb[0].mxu0 %vm116_vm0, %v2659_v32  ;;  %v83_v36 = vpop.permute.xlu1 %82 }
  0xb0   :  { %v80_v37 = vpop.permute.xlu0 %79  ;;  %2778 = vmatprep.mubr.msk.f32.mxu0 %vm116_vm0, %v2660_v28  ;;  %2910 = vmatpush1.bf16.msra.mxu0 %v3505_v27  ;;  %vm95_vm6 = vcmp.eq.s32.totalorder %v65_v17, %v83_v36 }
  0xb1   :  { %vm94_vm5 = vcmp.eq.s32.totalorder %v65_v17, %v80_v37  ;;  %2912 = vmatprep.subr.bf16.mxu0 %v3508_v29  ;;  %v2663_v46 = vsel %vm95_vm6, 1.0, %v3383_v1 }
  0xb2   :  { %v2662_v42 = vsel %vm94_vm5, 1.0, %v3383_v1 }
  0xb3   :  { %2779 = vmatmul.mubr.msk.f32.gmra.mrb[2].mxu0 %vm116_vm0, %v2661_v35  ;;  %v89_v43 = vpop.permute.xlu1 %88 }
  0xb4   :  { %2781 = vmatprep.mubr.msk.f32.mxu0 %vm116_vm0, %v2662_v42  ;;  %v86_v44 = vpop.permute.xlu0 %85  ;;  %2914 = vmatpush1.bf16.msra.mxu0 %v3515_v38  ;;  %vm97_vm8 = vcmp.eq.s32.totalorder %v65_v17, %v89_v43 }
  0xb5   :  { %vm96_vm7 = vcmp.eq.s32.totalorder %v65_v17, %v86_v44  ;;  %2916 = vmatprep.subr.bf16.mxu0 %v3518_v39  ;;  %v2665_v48 = vsel %vm97_vm8, 1.0, %v3383_v1 }
  0xb6   :  { %v2664_v47 = vsel %vm96_vm7, 1.0, %v3383_v1 }
  0xb7   :  { %2782 = vmatmul.mubr.msk.f32.gmra.mrb[4].mxu0 %vm116_vm0, %v2663_v46 }
  0xb8   :  { %2784 = vmatprep.mubr.msk.f32.mxu0 %vm116_vm0, %v2664_v47  ;;  %2918 = vmatpush1.bf16.msra.mxu0 %v3524_v45 }
  0xb9   :  { %2920 = vmatprep.subr.bf16.mxu0 %v3535_v51 }
  0xbb   :  { %2785 = vmatmul.mubr.msk.f32.gmra.mrb[6].mxu0 %vm116_vm0, %v2665_v48 }
  0xbc   :  { %482 = vmatprep.mubr.f32.mxu0 %v3383_v1  ;;  %2922 = vmatpush1.bf16.msra.mxu0 %v3537_v55 }
  0xbd   :  { %2940 = vmatprep.subr.bf16.mxu0 %v3499_v15 }
  0xbf   :  { %483 = vmatmul.mubr.f32.vlgmr.msra.gmra.mrb[8].mxu0 %v3383_v1 }
  0xc0   :  { %2942 = vmatpush1.bf16.msra.mxu0 %v3505_v27  ;;  %741 = vmatprep.mubr.f32.mxu0 %v3383_v1 }
  0xc1   :  { %2944 = vmatprep.subr.bf16.mxu0 %v3508_v29 }
  0xc4   :  { %2946 = vmatpush1.bf16.msra.mxu0 %v3515_v38 }
  0xc5   :  { %2948 = vmatprep.subr.bf16.mxu0 %v3518_v39 }
  0xc8   :  { %2950 = vmatpush1.bf16.msra.mxu0 %v3524_v45 }
  0xc9   :  { %2952 = vmatprep.subr.bf16.mxu0 %v3535_v51 }
  0xcc   :  { %2954 = vmatpush1.bf16.msra.mxu0 %v3537_v55 }
  0xcd   :  { %2972 = vmatprep.subr.bf16.mxu0 %v3499_v15 }
 0x182   :  { %v2777_v57 = vpop.f32.mrb[0].mxu0 }
 0x183   :  { %v207_v58 = vpop.f32.mrb[1].mxu0 }
 0x184   :  { %2674 = vmatmul.mubr.msk.f32.vlgmr.msra.gmra.mrb[0].mxu1 %vm260_vm9, %v207_v58 }
 0x185   :  { %355 = vmatprep.mubr.f32.mxu1 %v3383_v1  ;;  %2926 = vmatpush1.bf16.msra.mxu1 %v3505_v27 }
 0x186   :  { %v2780_v59 = vpop.f32.mrb[2].mxu0  ;;  %2928 = vmatprep.subr.bf16.mxu1 %v3508_v29 }
 0x187   :  { %v217_v60 = vpop.f32.mrb[3].mxu0 }
 0x188   :  { %2675 = vmatmul.mubr.msk.f32.gmra.mrb[2].mxu1 %vm260_vm9, %v2777_v57 }
 0x189   :  { %361 = vmatprep.mubr.f32.mxu1 %v3383_v1  ;;  %2930 = vmatpush1.bf16.msra.mxu1 %v3515_v38 }
 0x18a   :  { %v2783_v61 = vpop.f32.mrb[4].mxu0  ;;  %2932 = vmatprep.subr.bf16.mxu1 %v3518_v39 }
 0x18b   :  { %v227_v62 = vpop.f32.mrb[5].mxu0 }
 0x18c   :  { %2676 = vmatmul.mubr.msk.f32.gmra.mrb[4].mxu1 %vm260_vm9, %v217_v60 }
 0x18d   :  { %367 = vmatprep.mubr.f32.mxu1 %v3383_v1  ;;  %2934 = vmatpush1.bf16.msra.mxu1 %v3524_v45 }
 0x18e   :  { %v2786_v63 = vpop.f32.mrb[6].mxu0  ;;  %2936 = vmatprep.subr.bf16.mxu1 %v3535_v51 }
 0x18f   :  { %v237_v0 = vpop.f32.mrb[7].mxu0 }
 0x190   :  { %2677 = vmatmul.mubr.msk.f32.gmra.mrb[6].mxu1 %vm260_vm9, %v2780_v59 }
 0x191   :  { %373 = vmatprep.mubr.f32.mxu1 %v3383_v1  ;;  %2938 = vmatpush1.bf16.msra.mxu1 %v3537_v55 }
 0x192   :  { %2956 = vmatprep.subr.bf16.mxu1 %v3499_v15  ;;  %v484_v2 = vpop.f32.mrb[8].mxu0 }
 0x193   :  { %v486_v3 = vpop.f32.mrb[9].mxu0 }
 0x194   :  { %2678 = vmatmul.mubr.msk.f32.gmra.mrb[8].mxu1 %vm260_vm9, %v227_v62 }
 0x195   :  { %379 = vmatprep.mubr.f32.mxu1 %v3383_v1 }
 0x198   :  { %2679 = vmatmul.mubr.msk.f32.gmra.mrb[10].mxu1 %vm260_vm9, %v2783_v61 }
 0x199   :  { %385 = vmatprep.mubr.f32.mxu1 %v3383_v1 }
 0x19c   :  { %2680 = vmatmul.mubr.msk.f32.gmra.mrb[12].mxu1 %vm260_vm9, %v237_v0 }
 0x19d   :  { %391 = vmatprep.mubr.f32.mxu1 %v3383_v1 }
 0x1a0   :  { %2681 = vmatmul.mubr.msk.f32.gmra.mrb[14].mxu1 %vm260_vm9, %v2786_v63 }
 0x1a1   :  { %612 = vmatprep.mubr.f32.mxu1 %v3383_v1 }
 0x257   :  { %v351_v10 = vpop.f32.mrb[0].mxu1 }
 0x258   :  { %v352_v11 = vadd.f32 %v351_v10, %v253_v8  ;;  %v353_v12 = vpop.f32.mrb[1].mxu1 }
 0x259   :  { %v3581_v13 = vadd.f32 %v353_v12, %v257_v9 }
 0x25a   :  { %v489_v14 = vadd.f32 %v484_v2, %v352_v11 }
 0x25b   :  { %v357_v17 = vpop.f32.mrb[2].mxu1 }
 0x25c   :  { %3114 = vtanh.f32 %v489_v14  ;;  %v3583_v18 = vadd.f32 %v357_v17, %v253_v8  ;;  %v359_v19 = vpop.f32.mrb[3].mxu1  ;;  %v491_v53 = vmul.f32 0.5, %v489_v14 }
 0x25d   :  { %v3585_v16 = vadd.f32 %v359_v19, %v257_v9 }
 0x25f   :  { %v363_v20 = vpop.f32.mrb[4].mxu1 }
 0x260   :  { %v3587_v21 = vadd.f32 %v363_v20, %v253_v8  ;;  %v365_v22 = vpop.f32.mrb[5].mxu1 }
 0x261   :  { %v3589_v23 = vadd.f32 %v365_v22, %v257_v9 }
 0x263   :  { %v369_v24 = vpop.f32.mrb[6].mxu1 }
 0x264   :  { %v3591_v25 = vadd.f32 %v369_v24, %v253_v8  ;;  %v371_v26 = vpop.f32.mrb[7].mxu1 }
 0x265   :  { %v3593_v28 = vadd.f32 %v371_v26, %v257_v9 }
 0x266   :  { %v3115_v30 = vpop.eup %3114 }
 0x267   :  { %v375_v31 = vpop.f32.mrb[8].mxu1  ;;  %498 = vrot.lane.b32.xlu0 %v3115_v30, %s3384_s3 }
 0x268   :  { %v3596_v32 = vadd.f32 %v375_v31, %v253_v8  ;;  %v377_v33 = vpop.f32.mrb[9].mxu1 }
 0x269   :  { %v3598_v34 = vadd.f32 %v377_v33, %v257_v9 }
 0x26b   :  { %v381_v35 = vpop.f32.mrb[10].mxu1 }
 0x26c   :  { %v3600_v36 = vadd.f32 %v381_v35, %v253_v8  ;;  %v383_v37 = vpop.f32.mrb[11].mxu1 }
 0x26d   :  { %v3602_v40 = vadd.f32 %v383_v37, %v257_v9 }
 0x26f   :  { %v387_v41 = vpop.f32.mrb[12].mxu1 }
 0x270   :  { %v3604_v42 = vadd.f32 %v387_v41, %v253_v8  ;;  %v389_v43 = vpop.f32.mrb[13].mxu1 }
 0x271   :  { %v390_v44 = vadd.f32 %v389_v43, %v257_v9 }
 0x273   :  { %v393_v46 = vpop.f32.mrb[14].mxu1 }
 0x274   :  { %v3606_v47 = vadd.f32 %v393_v46, %v253_v8  ;;  %v395_v48 = vpop.f32.mrb[15].mxu1 }
 0x275   :  { %v396_v49 = vadd.f32 %v395_v48, %v257_v9 }
 0x277   :  { %v490_v50 = vadd.f32 %v486_v3, %v396_v49 }
 0x279   :  { %3116 = vtanh.f32 %v490_v50  ;;  %v513_v60 = vmul.f32 0.5, %v490_v50 }
 0x27a   :  { %3118 = vtanh.f32 %v491_v53 }
 0x27b   :  { %3120 = vtanh.f32 %v513_v60 }
 0x283   :  { %v3117_v52 = vpop.eup %3116 }
 0x284   :  { %520 = vrot.lane.b32.xlu1 %v3117_v52, %s3384_s3  ;;  %v3119_v54 = vpop.eup %3118 }
 0x285   :  { %v493_v56 = vmul.f32 0.5, %v3119_v54  ;;  %v3121_v61 = vpop.eup %3120 }
 0x286   :  { %v515_v62 = vmul.f32 0.5, %v3121_v61 }
 0x287   :  { %v494_v57 = vadd.f32 0.5, %v493_v56 }
 0x288   :  { %v516_v63 = vadd.f32 0.5, %v515_v62 }
 0x289   :  { %v496_v3 = vmul.f32 0.0, %v494_v57 }
 0x28a   :  { %v518_v7 = vmul.f32 0.0, %v516_v63 }
 0x2d9   :  { %v499_v58 = vpop.permute.xlu0 %498 }
 0x2da   :  { %v501_v59 = vmul.f32 %v499_v58, %v494_v57 }
 0x2dc   :  { %503 = vrot.lane.b32.xlu0 %v501_v59, %s3385_s2 }
 0x2f6   :  { %v521_v0 = vpop.permute.xlu1 %520 }
 0x2f7   :  { %v523_v2 = vmul.f32 %v521_v0, %v516_v63 }
 0x2f9   :  { %525 = vrot.lane.b32.xlu1 %v523_v2, %s3385_s2 }
 0x34e   :  { %v504_v4 = vpop.permute.xlu0 %503 }
 0x34f   :  { %v506_v5 = vadd.f32 %v504_v4, %v496_v3 }
 0x351   :  { %3122 = vtanh.f32 %v506_v5 }
 0x35b   :  { %v3123_v6 = vpop.eup %3122 }
 0x35c   :  { %509 = vrot.lane.b32.xlu0 %v3123_v6, %s3384_s3 }
 0x36b   :  { %v526_v8 = vpop.permute.xlu1 %525 }
 0x36c   :  { %v528_v9 = vadd.f32 %v526_v8, %v518_v7 }
 0x36e   :  { %3124 = vtanh.f32 %v528_v9 }
 0x378   :  { %v3125_v10 = vpop.eup %3124 }
 0x379   :  { %531 = vrot.lane.b32.xlu1 %v3125_v10, %s3384_s3 }
 0x3ce   :  { %v510_v11 = vpop.permute.xlu0 %509 }
 0x3cf   :  { %v512_v12 = vmul.f32 %v510_v11, %v494_v57 }
 0x3d1   :  { %536 = vrot.lane.b32.xlu0 %v512_v12, %s3385_s2 }
 0x3eb   :  { %v532_v14 = vpop.permute.xlu1 %531 }
 0x3ec   :  { %v534_v17 = vmul.f32 %v532_v14, %v516_v63 }
 0x3ee   :  { %540 = vrot.lane.b32.xlu1 %v534_v17, %s3384_s3 }
 0x443   :  { %v3615_v19 = vpop.permute.xlu0 %536 }
 0x460   :  { %v3617_v20 = vpop.permute.xlu1 %540 }
 0x461   :  { %v544_v22 = vsel %vm543_vm10, %v3615_v19, %v3617_v20 }
 0x462   :  { %2682 = vmatmul.mubr.msk.f32.vlgmr.msra.gmra.mrb[16].mxu1 %vm414_vm11, %v544_v22 }
 0x463   :  { %2958 = vmatpush1.bf16.msra.mxu1 %v3505_v27  ;;  %870 = vmatprep.mubr.f32.mxu1 %v3383_v1 }
 0x464   :  { %2960 = vmatprep.subr.bf16.mxu1 %v3508_v29 }
 0x467   :  { %2962 = vmatpush1.bf16.msra.mxu1 %v3515_v38 }
 0x468   :  { %2964 = vmatprep.subr.bf16.mxu1 %v3518_v39 }
 0x46b   :  { %2966 = vmatpush1.bf16.msra.mxu1 %v3524_v45 }
 0x46c   :  { %2968 = vmatprep.subr.bf16.mxu1 %v3535_v51 }
 0x46f   :  { %2970 = vmatpush1.bf16.msra.mxu1 %v3537_v55 }
 0x470   :  { %2988 = vmatprep.subr.bf16.mxu1 %v3499_v15 }
 0x535   :  { %v614_v24 = vpop.f32.mrb[16].mxu1 }
 0x536   :  { %v619_v26 = vadd.f32 %v614_v24, %v3583_v18  ;;  %v616_v30 = vpop.f32.mrb[17].mxu1 }
 0x537   :  { %v620_v31 = vadd.f32 %v616_v30, %v390_v44 }
 0x538   :  { %3126 = vtanh.f32 %v619_v26  ;;  %v621_v37 = vmul.f32 0.5, %v619_v26 }
 0x539   :  { %3128 = vtanh.f32 %v620_v31  ;;  %v643_v41 = vmul.f32 0.5, %v620_v31 }
 0x53a   :  { %3130 = vtanh.f32 %v621_v37 }
 0x53b   :  { %3132 = vtanh.f32 %v643_v41 }
 0x542   :  { %v3127_v33 = vpop.eup %3126 }
 0x543   :  { %v3129_v35 = vpop.eup %3128  ;;  %628 = vrot.lane.b32.xlu0 %v3127_v33, %s3384_s3 }
 0x544   :  { %650 = vrot.lane.b32.xlu1 %v3129_v35, %s3384_s3  ;;  %v3131_v43 = vpop.eup %3130 }
 0x545   :  { %v3133_v46 = vpop.eup %3132  ;;  %v623_v48 = vmul.f32 0.5, %v3131_v43 }
 0x546   :  { %v645_v49 = vmul.f32 0.5, %v3133_v46 }
 0x547   :  { %v624_v50 = vadd.f32 0.5, %v623_v48 }
 0x548   :  { %v646_v52 = vadd.f32 0.5, %v645_v49 }
 0x549   :  { %v626_v56 = vmul.f32 %v624_v50, %v506_v5 }
 0x54a   :  { %v648_v58 = vmul.f32 %v646_v52, %v528_v9 }
 0x5b5   :  { %v629_v18 = vpop.permute.xlu0 %628 }
 0x5b6   :  { %v631_v44 = vmul.f32 %v629_v18, %v624_v50  ;;  %v651_v53 = vpop.permute.xlu1 %650 }
 0x5b7   :  { %v653_v54 = vmul.f32 %v651_v53, %v646_v52 }
 0x5b8   :  { %633 = vrot.lane.b32.xlu0 %v631_v44, %s3385_s2 }
 0x5b9   :  { %655 = vrot.lane.b32.xlu1 %v653_v54, %s3385_s2 }
 0x62a   :  { %v634_v57 = vpop.permute.xlu0 %633 }
 0x62b   :  { %v636_v59 = vadd.f32 %v634_v57, %v626_v56  ;;  %v656_v60 = vpop.permute.xlu1 %655 }
 0x62c   :  { %v658_v61 = vadd.f32 %v656_v60, %v648_v58 }
 0x62d   :  { %3134 = vtanh.f32 %v636_v59 }
 0x62e   :  { %3136 = vtanh.f32 %v658_v61 }
 0x637   :  { %v3135_v62 = vpop.eup %3134 }
 0x638   :  { %v3137_v63 = vpop.eup %3136  ;;  %639 = vrot.lane.b32.xlu0 %v3135_v62, %s3384_s3 }
 0x639   :  { %661 = vrot.lane.b32.xlu1 %v3137_v63, %s3384_s3 }
 0x6aa   :  { %v640_v0 = vpop.permute.xlu0 %639 }
 0x6ab   :  { %v642_v2 = vmul.f32 %v640_v0, %v624_v50  ;;  %v662_v3 = vpop.permute.xlu1 %661 }
 0x6ac   :  { %v664_v4 = vmul.f32 %v662_v3, %v646_v52 }
 0x6ad   :  { %666 = vrot.lane.b32.xlu0 %v642_v2, %s3385_s2 }
 0x6ae   :  { %670 = vrot.lane.b32.xlu1 %v664_v4, %s3384_s3 }
 0x71f   :  { %v3641_v5 = vpop.permute.xlu0 %666 }
 0x720   :  { %v3643_v6 = vpop.permute.xlu1 %670 }
 0x721   :  { %v673_v7 = vsel %vm543_vm10, %v3641_v5, %v3643_v6 }
 0x722   :  { %2683 = vmatmul.mubr.msk.f32.vlgmr.msra.gmra.mrb[10].mxu0 %vm414_vm11, %v673_v7 }
 0x723   :  { %2974 = vmatpush1.bf16.msra.mxu0 %v3505_v27  ;;  %999 = vmatprep.mubr.f32.mxu0 %v3383_v1 }
 0x724   :  { %2976 = vmatprep.subr.bf16.mxu0 %v3508_v29 }
 0x727   :  { %2978 = vmatpush1.bf16.msra.mxu0 %v3515_v38 }
 0x728   :  { %2980 = vmatprep.subr.bf16.mxu0 %v3518_v39 }
 0x72b   :  { %2982 = vmatpush1.bf16.msra.mxu0 %v3524_v45 }
 0x72c   :  { %2984 = vmatprep.subr.bf16.mxu0 %v3535_v51 }
 0x72f   :  { %2986 = vmatpush1.bf16.msra.mxu0 %v3537_v55 }
 0x730   :  { %3004 = vmatprep.subr.bf16.mxu0 %v3499_v15 }
 0x7f5   :  { %v743_v8 = vpop.f32.mrb[10].mxu0 }
 0x7f6   :  { %v748_v9 = vadd.f32 %v743_v8, %v3587_v21  ;;  %v745_v10 = vpop.f32.mrb[11].mxu0 }
 0x7f7   :  { %v749_v11 = vadd.f32 %v745_v10, %v3602_v40 }
 0x7f8   :  { %3138 = vtanh.f32 %v748_v9  ;;  %v750_v17 = vmul.f32 0.5, %v748_v9 }
 0x7f9   :  { %3140 = vtanh.f32 %v749_v11  ;;  %v772_v22 = vmul.f32 0.5, %v749_v11 }
 0x7fa   :  { %3142 = vtanh.f32 %v750_v17 }
 0x7fb   :  { %3144 = vtanh.f32 %v772_v22 }
 0x802   :  { %v3139_v12 = vpop.eup %3138 }
 0x803   :  { %v3141_v14 = vpop.eup %3140  ;;  %757 = vrot.lane.b32.xlu0 %v3139_v12, %s3384_s3 }
 0x804   :  { %779 = vrot.lane.b32.xlu1 %v3141_v14, %s3384_s3  ;;  %v3143_v24 = vpop.eup %3142 }
 0x805   :  { %v3145_v26 = vpop.eup %3144  ;;  %v752_v30 = vmul.f32 0.5, %v3143_v24 }
 0x806   :  { %v774_v31 = vmul.f32 0.5, %v3145_v26 }
 0x807   :  { %v753_v21 = vadd.f32 0.5, %v752_v30 }
 0x808   :  { %v775_v35 = vadd.f32 0.5, %v774_v31 }
 0x809   :  { %v755_v43 = vmul.f32 %v753_v21, %v636_v59 }
 0x80a   :  { %v777_v48 = vmul.f32 %v775_v35, %v658_v61 }
 0x875   :  { %v758_v33 = vpop.permute.xlu0 %757 }
 0x876   :  { %v760_v40 = vmul.f32 %v758_v33, %v753_v21  ;;  %v780_v37 = vpop.permute.xlu1 %779 }
 0x877   :  { %v782_v41 = vmul.f32 %v780_v37, %v775_v35 }
 0x878   :  { %762 = vrot.lane.b32.xlu0 %v760_v40, %s3385_s2 }
 0x879   :  { %784 = vrot.lane.b32.xlu1 %v782_v41, %s3385_s2 }
 0x8ea   :  { %v763_v46 = vpop.permute.xlu0 %762 }
 0x8eb   :  { %v765_v49 = vadd.f32 %v763_v46, %v755_v43  ;;  %v785_v50 = vpop.permute.xlu1 %784 }
 0x8ec   :  { %v787_v18 = vadd.f32 %v785_v50, %v777_v48 }
 0x8ed   :  { %3146 = vtanh.f32 %v765_v49 }
 0x8ee   :  { %3148 = vtanh.f32 %v787_v18 }
 0x8f7   :  { %v3147_v52 = vpop.eup %3146 }
 0x8f8   :  { %v3149_v44 = vpop.eup %3148  ;;  %768 = vrot.lane.b32.xlu0 %v3147_v52, %s3384_s3 }
 0x8f9   :  { %790 = vrot.lane.b32.xlu1 %v3149_v44, %s3384_s3 }
 0x96a   :  { %v769_v53 = vpop.permute.xlu0 %768 }
 0x96b   :  { %v771_v54 = vmul.f32 %v769_v53, %v753_v21  ;;  %v791_v56 = vpop.permute.xlu1 %790 }
 0x96c   :  { %v793_v57 = vmul.f32 %v791_v56, %v775_v35 }
 0x96d   :  { %795 = vrot.lane.b32.xlu0 %v771_v54, %s3385_s2 }
 0x96e   :  { %799 = vrot.lane.b32.xlu1 %v793_v57, %s3384_s3 }
 0x9df   :  { %v3668_v58 = vpop.permute.xlu0 %795 }
 0x9e0   :  { %v3670_v59 = vpop.permute.xlu1 %799 }
 0x9e1   :  { %v802_v60 = vsel %vm543_vm10, %v3668_v58, %v3670_v59 }
 0x9e2   :  { %2684 = vmatmul.mubr.msk.f32.vlgmr.msra.gmra.mrb[18].mxu1 %vm414_vm11, %v802_v60 }
 0x9e3   :  { %2990 = vmatpush1.bf16.msra.mxu1 %v3505_v27  ;;  %1128 = vmatprep.mubr.f32.mxu1 %v3383_v1 }
 0x9e4   :  { %2992 = vmatprep.subr.bf16.mxu1 %v3508_v29 }
 0x9e7   :  { %2994 = vmatpush1.bf16.msra.mxu1 %v3515_v38 }
 0x9e8   :  { %2996 = vmatprep.subr.bf16.mxu1 %v3518_v39 }
 0x9eb   :  { %2998 = vmatpush1.bf16.msra.mxu1 %v3524_v45 }
 0x9ec   :  { %3000 = vmatprep.subr.bf16.mxu1 %v3535_v51 }
 0x9ef   :  { %3002 = vmatpush1.bf16.msra.mxu1 %v3537_v55 }
 0x9f0   :  { %3020 = vmatprep.subr.bf16.mxu1 %v3499_v15 }
 0xab5   :  { %v872_v61 = vpop.f32.mrb[18].mxu1 }
 0xab6   :  { %v877_v62 = vadd.f32 %v872_v61, %v3591_v25  ;;  %v874_v63 = vpop.f32.mrb[19].mxu1 }
 0xab7   :  { %v878_v0 = vadd.f32 %v874_v63, %v3598_v34 }
 0xab8   :  { %3150 = vtanh.f32 %v877_v62  ;;  %v879_v4 = vmul.f32 0.5, %v877_v62 }
 0xab9   :  { %3152 = vtanh.f32 %v878_v0  ;;  %v901_v7 = vmul.f32 0.5, %v878_v0 }
 0xaba   :  { %3154 = vtanh.f32 %v879_v4 }
 0xabb   :  { %3156 = vtanh.f32 %v901_v7 }
 0xac2   :  { %v3151_v2 = vpop.eup %3150 }
 0xac3   :  { %v3153_v3 = vpop.eup %3152  ;;  %886 = vrot.lane.b32.xlu0 %v3151_v2, %s3384_s3 }
 0xac4   :  { %908 = vrot.lane.b32.xlu1 %v3153_v3, %s3384_s3  ;;  %v3155_v8 = vpop.eup %3154 }
 0xac5   :  { %v3157_v15 = vpop.eup %3156  ;;  %v881_v9 = vmul.f32 0.5, %v3155_v8 }
 0xac6   :  { %v903_v10 = vmul.f32 0.5, %v3157_v15 }
 0xac7   :  { %v882_v25 = vadd.f32 0.5, %v881_v9 }
 0xac8   :  { %v904_v12 = vadd.f32 0.5, %v903_v10 }
 0xac9   :  { %v884_v22 = vmul.f32 %v882_v25, %v765_v49 }
 0xaca   :  { %v906_v26 = vmul.f32 %v904_v12, %v787_v18 }
 0xb35   :  { %v887_v11 = vpop.permute.xlu0 %886 }
 0xb36   :  { %v889_v34 = vmul.f32 %v887_v11, %v882_v25  ;;  %v909_v14 = vpop.permute.xlu1 %908 }
 0xb37   :  { %v911_v17 = vmul.f32 %v909_v14, %v904_v12 }
 0xb38   :  { %891 = vrot.lane.b32.xlu0 %v889_v34, %s3385_s2 }
 0xb39   :  { %913 = vrot.lane.b32.xlu1 %v911_v17, %s3385_s2 }
 0xbaa   :  { %v892_v24 = vpop.permute.xlu0 %891 }
 0xbab   :  { %v894_v30 = vadd.f32 %v892_v24, %v884_v22  ;;  %v914_v31 = vpop.permute.xlu1 %913 }
 0xbac   :  { %v916_v21 = vadd.f32 %v914_v31, %v906_v26 }
 0xbad   :  { %3158 = vtanh.f32 %v894_v30 }
 0xbae   :  { %3160 = vtanh.f32 %v916_v21 }
 0xbb7   :  { %v3159_v33 = vpop.eup %3158 }
 0xbb8   :  { %v3161_v35 = vpop.eup %3160  ;;  %897 = vrot.lane.b32.xlu0 %v3159_v33, %s3384_s3 }
 0xbb9   :  { %919 = vrot.lane.b32.xlu1 %v3161_v35, %s3384_s3 }
 0xc2a   :  { %v898_v40 = vpop.permute.xlu0 %897 }
 0xc2b   :  { %v900_v37 = vmul.f32 %v898_v40, %v882_v25  ;;  %v920_v41 = vpop.permute.xlu1 %919 }
 0xc2c   :  { %v922_v43 = vmul.f32 %v920_v41, %v904_v12 }
 0xc2d   :  { %924 = vrot.lane.b32.xlu0 %v900_v37, %s3385_s2 }
 0xc2e   :  { %928 = vrot.lane.b32.xlu1 %v922_v43, %s3384_s3 }
 0xc9f   :  { %v3695_v46 = vpop.permute.xlu0 %924 }
 0xca0   :  { %v3697_v48 = vpop.permute.xlu1 %928 }
 0xca1   :  { %v931_v49 = vsel %vm543_vm10, %v3695_v46, %v3697_v48 }
 0xca2   :  { %2685 = vmatmul.mubr.msk.f32.vlgmr.msra.gmra.mrb[12].mxu0 %vm414_vm11, %v931_v49 }
 0xca3   :  { %3006 = vmatpush1.bf16.msra.mxu0 %v3505_v27  ;;  %1257 = vmatprep.mubr.f32.mxu0 %v3383_v1 }
 0xca4   :  { %3008 = vmatprep.subr.bf16.mxu0 %v3508_v29 }
 0xca7   :  { %3010 = vmatpush1.bf16.msra.mxu0 %v3515_v38 }
 0xca8   :  { %3012 = vmatprep.subr.bf16.mxu0 %v3518_v39 }
 0xcab   :  { %3014 = vmatpush1.bf16.msra.mxu0 %v3524_v45 }
 0xcac   :  { %3016 = vmatprep.subr.bf16.mxu0 %v3535_v51 }
 0xcaf   :  { %3018 = vmatpush1.bf16.msra.mxu0 %v3537_v55 }
 0xd75   :  { %v1001_v50 = vpop.f32.mrb[12].mxu0 }
 0xd76   :  { %v1006_v18 = vadd.f32 %v1001_v50, %v3596_v32  ;;  %v1003_v52 = vpop.f32.mrb[13].mxu0 }
 0xd77   :  { %v1007_v44 = vadd.f32 %v1003_v52, %v3593_v28 }
 0xd78   :  { %3162 = vtanh.f32 %v1006_v18  ;;  %v1008_v56 = vmul.f32 0.5, %v1006_v18 }
 0xd79   :  { %3164 = vtanh.f32 %v1007_v44  ;;  %v1030_v57 = vmul.f32 0.5, %v1007_v44 }
 0xd7a   :  { %3166 = vtanh.f32 %v1008_v56 }
 0xd7b   :  { %3168 = vtanh.f32 %v1030_v57 }
 0xd82   :  { %v3163_v53 = vpop.eup %3162 }
 0xd83   :  { %v3165_v54 = vpop.eup %3164  ;;  %1015 = vrot.lane.b32.xlu0 %v3163_v53, %s3384_s3 }
 0xd84   :  { %1037 = vrot.lane.b32.xlu1 %v3165_v54, %s3384_s3  ;;  %v3167_v60 = vpop.eup %3166 }
 0xd85   :  { %v3169_v61 = vpop.eup %3168  ;;  %v1010_v62 = vmul.f32 0.5, %v3167_v60 }
 0xd86   :  { %v1032_v63 = vmul.f32 0.5, %v3169_v61 }
 0xd87   :  { %v1011_v32 = vadd.f32 0.5, %v1010_v62 }
 0xd88   :  { %v1033_v2 = vadd.f32 0.5, %v1032_v63 }
 0xd89   :  { %v1013_v7 = vmul.f32 %v1011_v32, %v894_v30 }
 0xd8a   :  { %v1035_v15 = vmul.f32 %v1033_v2, %v916_v21 }
 0xdf5   :  { %v1016_v0 = vpop.permute.xlu0 %1015 }
 0xdf6   :  { %v1018_v28 = vmul.f32 %v1016_v0, %v1011_v32  ;;  %v1038_v3 = vpop.permute.xlu1 %1037 }
 0xdf7   :  { %v1040_v4 = vmul.f32 %v1038_v3, %v1033_v2 }
 0xdf8   :  { %1020 = vrot.lane.b32.xlu0 %v1018_v28, %s3385_s2 }
 0xdf9   :  { %1042 = vrot.lane.b32.xlu1 %v1040_v4, %s3385_s2 }
 0xe6a   :  { %v1021_v8 = vpop.permute.xlu0 %1020 }
 0xe6b   :  { %v1023_v9 = vadd.f32 %v1021_v8, %v1013_v7  ;;  %v1043_v10 = vpop.permute.xlu1 %1042 }
 0xe6c   :  { %v1045_v25 = vadd.f32 %v1043_v10, %v1035_v15 }
 0xe6d   :  { %3170 = vtanh.f32 %v1023_v9 }
 0xe6e   :  { %3172 = vtanh.f32 %v1045_v25 }
 0xe77   :  { %v3171_v11 = vpop.eup %3170 }
 0xe78   :  { %v3173_v12 = vpop.eup %3172  ;;  %1026 = vrot.lane.b32.xlu0 %v3171_v11, %s3384_s3 }
 0xe79   :  { %1048 = vrot.lane.b32.xlu1 %v3173_v12, %s3384_s3 }
 0xeea   :  { %v1027_v34 = vpop.permute.xlu0 %1026 }
 0xeeb   :  { %v1029_v14 = vmul.f32 %v1027_v34, %v1011_v32  ;;  %v1049_v17 = vpop.permute.xlu1 %1048 }
 0xeec   :  { %v1051_v22 = vmul.f32 %v1049_v17, %v1033_v2 }
 0xeed   :  { %1053 = vrot.lane.b32.xlu0 %v1029_v14, %s3385_s2 }
 0xeee   :  { %1057 = vrot.lane.b32.xlu1 %v1051_v22, %s3384_s3 }
 0xf5f   :  { %v3721_v24 = vpop.permute.xlu0 %1053 }
 0xf60   :  { %v3723_v26 = vpop.permute.xlu1 %1057 }
 0xf61   :  { %v1060_v30 = vsel %vm543_vm10, %v3721_v24, %v3723_v26 }
 0xf62   :  { %2686 = vmatmul.mubr.msk.f32.vlgmr.msra.gmra.mrb[20].mxu1 %vm414_vm11, %v1060_v30 }
 0xf63   :  { %3022 = vmatpush1.bf16.msra.mxu1 %v3505_v27  ;;  %1386 = vmatprep.mubr.f32.mxu1 %v3383_v1 }
 0xf64   :  { %3024 = vmatprep.subr.bf16.mxu1 %v3508_v29 }
 0xf67   :  { %3026 = vmatpush1.bf16.msra.mxu1 %v3515_v38 }
 0xf68   :  { %3028 = vmatprep.subr.bf16.mxu1 %v3518_v39 }
 0xf6b   :  { %3030 = vmatpush1.bf16.msra.mxu1 %v3524_v45 }
 0xf6c   :  { %3032 = vmatprep.subr.bf16.mxu1 %v3535_v51 }
 0xf6f   :  { %3034 = vmatpush1.bf16.msra.mxu1 %v3537_v55 }
0x1035   :  { %v1130_v31 = vpop.f32.mrb[20].mxu1 }
0x1036   :  { %v1135_v21 = vadd.f32 %v1130_v31, %v3600_v36  ;;  %v1132_v33 = vpop.f32.mrb[21].mxu1 }
0x1037   :  { %v1136_v27 = vadd.f32 %v1132_v33, %v3589_v23 }
0x1038   :  { %3174 = vtanh.f32 %v1135_v21  ;;  %v1137_v38 = vmul.f32 0.5, %v1135_v21 }
0x1039   :  { %3176 = vtanh.f32 %v1136_v27  ;;  %v1159_v39 = vmul.f32 0.5, %v1136_v27 }
0x103a   :  { %3178 = vtanh.f32 %v1137_v38 }
0x103b   :  { %3180 = vtanh.f32 %v1159_v39 }
0x1042   :  { %v3175_v35 = vpop.eup %3174 }
0x1043   :  { %v3177_v29 = vpop.eup %3176  ;;  %1144 = vrot.lane.b32.xlu0 %v3175_v35, %s3384_s3 }
0x1044   :  { %1166 = vrot.lane.b32.xlu1 %v3177_v29, %s3384_s3  ;;  %v3179_v45 = vpop.eup %3178 }
0x1045   :  { %v3181_v51 = vpop.eup %3180  ;;  %v1139_v55 = vmul.f32 0.5, %v3179_v45 }
0x1046   :  { %v1161_v40 = vmul.f32 0.5, %v3181_v51 }
0x1047   :  { %v1140_v36 = vadd.f32 0.5, %v1139_v55 }
0x1048   :  { %v1162_v41 = vadd.f32 0.5, %v1161_v40 }
0x1049   :  { %v1142_v50 = vmul.f32 %v1140_v36, %v1023_v9 }
0x104a   :  { %v1164_v52 = vmul.f32 %v1162_v41, %v1045_v25 }
0x10b5   :  { %v1145_v37 = vpop.permute.xlu0 %1144 }
0x10b6   :  { %v1147_v23 = vmul.f32 %v1145_v37, %v1140_v36  ;;  %v1167_v43 = vpop.permute.xlu1 %1166 }
0x10b7   :  { %v1169_v49 = vmul.f32 %v1167_v43, %v1162_v41 }
0x10b8   :  { %1149 = vrot.lane.b32.xlu0 %v1147_v23, %s3385_s2 }
0x10b9   :  { %1171 = vrot.lane.b32.xlu1 %v1169_v49, %s3385_s2 }
0x112a   :  { %v1150_v18 = vpop.permute.xlu0 %1149 }
0x112b   :  { %v1152_v44 = vadd.f32 %v1150_v18, %v1142_v50  ;;  %v1172_v53 = vpop.permute.xlu1 %1171 }
0x112c   :  { %v1174_v54 = vadd.f32 %v1172_v53, %v1164_v52 }
0x112d   :  { %3182 = vtanh.f32 %v1152_v44 }
0x112e   :  { %3184 = vtanh.f32 %v1174_v54 }
0x1137   :  { %v3183_v56 = vpop.eup %3182 }
0x1138   :  { %v3185_v57 = vpop.eup %3184  ;;  %1155 = vrot.lane.b32.xlu0 %v3183_v56, %s3384_s3 }
0x1139   :  { %1177 = vrot.lane.b32.xlu1 %v3185_v57, %s3384_s3 }
0x11aa   :  { %v1156_v60 = vpop.permute.xlu0 %1155 }
0x11ab   :  { %v1158_v61 = vmul.f32 %v1156_v60, %v1140_v36  ;;  %v1178_v62 = vpop.permute.xlu1 %1177 }
0x11ac   :  { %v1180_v63 = vmul.f32 %v1178_v62, %v1162_v41 }
0x11ad   :  { %1182 = vrot.lane.b32.xlu0 %v1158_v61, %s3385_s2 }
0x11ae   :  { %1186 = vrot.lane.b32.xlu1 %v1180_v63, %s3384_s3 }
0x121f   :  { %v3747_v32 = vpop.permute.xlu0 %1182 }
0x1220   :  { %v3749_v0 = vpop.permute.xlu1 %1186 }
0x1221   :  { %v1189_v2 = vsel %vm543_vm10, %v3747_v32, %v3749_v0 }
0x1222   :  { %2687 = vmatmul.mubr.msk.f32.vlgmr.msra.gmra.mrb[14].mxu0 %vm414_vm11, %v1189_v2 }
0x12f5   :  { %v1259_v28 = vpop.f32.mrb[14].mxu0 }
0x12f6   :  { %v1264_v3 = vadd.f32 %v1259_v28, %v3604_v42  ;;  %v1261_v4 = vpop.f32.mrb[15].mxu0 }
0x12f7   :  { %v1265_v7 = vadd.f32 %v1261_v4, %v3585_v16 }
0x12f8   :  { %3186 = vtanh.f32 %v1264_v3  ;;  %v1266_v9 = vmul.f32 0.5, %v1264_v3 }
0x12f9   :  { %3188 = vtanh.f32 %v1265_v7  ;;  %v1288_v10 = vmul.f32 0.5, %v1265_v7 }
0x12fa   :  { %3190 = vtanh.f32 %v1266_v9  ;;  %v1455_v9 = vld [vmem:[%s4062_s5] sm:$0xff] }
0x12fb   :  { %3192 = vtanh.f32 %v1288_v10  ;;  %v1456_v10 = vld [vmem:[%s4062_s5 + $0x8] sm:$0xff] }
0x1302   :  { %v3187_v8 = vpop.eup %3186 }
0x1303   :  { %v3189_v15 = vpop.eup %3188  ;;  %1273 = vrot.lane.b32.xlu0 %v3187_v8, %s3384_s3 }
0x1304   :  { %1295 = vrot.lane.b32.xlu1 %v3189_v15, %s3384_s3  ;;  %v3191_v25 = vpop.eup %3190 }
0x1305   :  { %v3193_v11 = vpop.eup %3192  ;;  %v1268_v12 = vmul.f32 0.5, %v3191_v25  ;;  %v1457_v25 = vld [vmem:[%s4062_s5 + $0x10] sm:$0xff] }
0x1306   :  { %v1290_v34 = vmul.f32 0.5, %v3193_v11  ;;  %v3035_v11 = vpack.c.bf16 %v1456_v10, %v1455_v9 }
0x1307   :  { %v1269_v42 = vadd.f32 0.5, %v1268_v12  ;;  %v1458_v12 = vld [vmem:[%s4062_s5 + $0x18] sm:$0xff] }
0x1308   :  { %v1291_v17 = vadd.f32 0.5, %v1290_v34  ;;  %v3386_v34 = vmov 0.0|0.0   ;;  %3036 = vmatprep.subr.bf16.mxu0 %v3035_v11 }
0x1309   :  { %v1271_v31 = vmul.f32 %v1269_v42, %v1152_v44  ;;  %3051 = vmatprep.subr.bf16.mxu1 %v3386_v34  ;;  %3038 = vmatpush3.bf16.msra.mxu0 %v3035_v11 }
0x130a   :  { %v1293_v33 = vmul.f32 %v1291_v17, %v1174_v54 }
0x1375   :  { %v1274_v14 = vpop.permute.xlu0 %1273 }
0x1376   :  { %v1276_v16 = vmul.f32 %v1274_v14, %v1269_v42  ;;  %v1296_v22 = vpop.permute.xlu1 %1295  ;;  %v1459_v14 = vld [vmem:[%s4062_s5 + $0x20] sm:$0xff] }
0x1377   :  { %v1298_v30 = vmul.f32 %v1296_v22, %v1291_v17  ;;  %v1600_v22 = vld [vmem:[%s4064_s7 + $0x8] sm:$0xff] }
0x1378   :  { %1278 = vrot.lane.b32.xlu0 %v1276_v16, %s3385_s2  ;;  %v1599_v16 = vld [vmem:[%s4064_s7] sm:$0xff] }
0x1379   :  { %1300 = vrot.lane.b32.xlu1 %v1298_v30, %s3385_s2  ;;  %v3804_v30 = vpack.c.bf16 %v1600_v22, %v1599_v16 }
0x13ea   :  { %v1279_v21 = vpop.permute.xlu0 %1278 }
0x13eb   :  { %v1281_v27 = vadd.f32 %v1279_v21, %v1271_v31  ;;  %v1301_v35 = vpop.permute.xlu1 %1300  ;;  %v1461_v21 = vld [vmem:[%s4062_s5 + $0x30] sm:$0xff] }
0x13ec   :  { %v1303_v29 = vadd.f32 %v1301_v35, %v1293_v33  ;;  %v1462_v33 = vld [vmem:[%s4062_s5 + $0x38] sm:$0xff] }
0x13ed   :  { %3194 = vtanh.f32 %v1281_v27  ;;  %v3047_v35 = vpack.c.bf16 %v1462_v33, %v1461_v21 }
0x13ee   :  { %3196 = vtanh.f32 %v1303_v29 }
0x13f7   :  { %v3195_v38 = vpop.eup %3194 }
0x13f8   :  { %v3197_v39 = vpop.eup %3196  ;;  %1284 = vrot.lane.b32.xlu0 %v3195_v38, %s3384_s3  ;;  %v1601_v38 = vld [vmem:[%s4064_s7 + $0x10] sm:$0xff] }
0x13f9   :  { %1306 = vrot.lane.b32.xlu1 %v3197_v39, %s3384_s3  ;;  %v1602_v39 = vld [vmem:[%s4064_s7 + $0x18] sm:$0xff] }
0x146a   :  { %v1285_v45 = vpop.permute.xlu0 %1284 }
0x146b   :  { %v1287_v51 = vmul.f32 %v1285_v45, %v1269_v42  ;;  %v1307_v55 = vpop.permute.xlu1 %1306  ;;  %v3039_v42 = vpack.c.bf16 %v1458_v12, %v1457_v25  ;;  %v3823_v45 = vpack.c.bf16 %v1602_v39, %v1601_v38 }
0x146c   :  { %v1309_v40 = vmul.f32 %v1307_v55, %v1291_v17  ;;  %v1460_v17 = vld [vmem:[%s4062_s5 + $0x28] sm:$0xff] }
0x146d   :  { %1311 = vrot.lane.b32.xlu0 %v1287_v51, %s3385_s2  ;;  %3040 = vmatprep.subr.bf16.mxu0 %v3039_v42  ;;  %v3043_v31 = vpack.c.bf16 %v1460_v17, %v1459_v14 }
0x146e   :  { %1315 = vrot.lane.b32.xlu1 %v1309_v40, %s3384_s3  ;;  %3042 = vmatpush3.bf16.msra.mxu0 %v3039_v42 }
0x146f   :  { %3044 = vmatprep.subr.bf16.mxu0 %v3043_v31 }
0x1472   :  { %3046 = vmatpush3.bf16.msra.mxu0 %v3043_v31 }
0x1473   :  { %3048 = vmatprep.subr.bf16.mxu0 %v3047_v35 }
0x1476   :  { %3050 = vmatpush3.bf16.msra.mxu0 %v3047_v35 }
0x1477   :  { %3063 = vmatprep.subr.bf16.mxu0 %v3386_v34 }
0x14df   :  { %v3765_v36 = vpop.permute.xlu0 %1311 }
0x14e0   :  { %v3767_v37 = vpop.permute.xlu1 %1315 }
0x14e1   :  { %v1318_v41 = vsel %vm543_vm10, %v3765_v36, %v3767_v37 }
0x14e2   :  { %2688 = vmatmul.mubr.msk.f32.vlgmr.msra.gmra.mrb[22].mxu1 %vm414_vm11, %v1318_v41 }
0x14e3   :  { %3053 = vmatpush3.bf16.msra.mxu1 %v3804_v30  ;;  %2823 = vmatprep.mubr.msk.f32.mxu1 %vm3387_vm12, %v3383_v1 }
0x14e4   :  { %3054 = vmatprep.subr.bf16.mxu1 %v3386_v34 }
0x14e7   :  { %3056 = vmatpush3.bf16.msra.mxu1 %v3823_v45 }
0x14e8   :  { %3057 = vmatprep.subr.bf16.mxu1 %v3386_v34 }
0x14ea   :  { %2824 = vmatmul.mubr.f32.vlgmr.msra.gmra.mrb[24].mxu1 %v3383_v1 }
0x14eb   :  { %3059 = vmatpush3.bf16.msra.mxu1 %v3804_v30  ;;  %2834 = vmatprep.mubr.msk.f32.mxu1 %vm3387_vm12, %v3383_v1 }
0x14ec   :  { %3060 = vmatprep.subr.bf16.mxu1 %v3386_v34 }
0x14ef   :  { %3062 = vmatpush3.bf16.msra.mxu1 %v3823_v45 }
0x14f0   :  { %3069 = vmatprep.subr.bf16.mxu1 %v3386_v34 }
0x15b5   :  { %v1388_v23 = vpop.f32.mrb[22].mxu1 }
0x15b6   :  { %v1393_v43 = vadd.f32 %v1388_v23, %v3606_v47  ;;  %v1390_v49 = vpop.f32.mrb[23].mxu1 }
0x15b7   :  { %v1394_v50 = vadd.f32 %v1390_v49, %v3581_v13  ;;  %v1444_v49 = vsel %vm543_vm10, %v3641_v5, %v3767_v37  ;;  %v1447_v5 = vsel %vm543_vm10, %v3721_v24, %v3697_v48 }
0x15b8   :  { %3198 = vtanh.f32 %v1393_v43  ;;  %v1395_v44 = vmul.f32 0.5, %v1393_v43 }
0x15b9   :  { %3200 = vtanh.f32 %v1394_v50  ;;  %v1417_v53 = vmul.f32 0.5, %v1394_v50  ;;  %v1445_v50 = vsel %vm543_vm10, %v3668_v58, %v3749_v0  ;;  %v1448_v58 = vsel %vm543_vm10, %v3747_v32, %v3670_v59  ;;  %v2689_v59 = vld [vmem:[%s4063_s6] ss:$0 sm:$0xff]  ;;  %s3388_s6 = smov 96  }
0x15ba   :  { %3202 = vtanh.f32 %v1395_v44 }
0x15bb   :  { %3204 = vtanh.f32 %v1417_v53 }
0x15bd   :  { %v1671_v24 = vpop.f32.mrb[24].mxu1 }
0x15be   :  { %v2825_v0 = vpop.f32.mrb[25].mxu1 }
0x15c2   :  { %v3199_v18 = vpop.eup %3198 }
0x15c3   :  { %v3201_v52 = vpop.eup %3200  ;;  %1402 = vrot.lane.b32.xlu1 %v3199_v18, %s3384_s3 }
0x15c4   :  { %1424 = vrot.lane.b32.xlu0 %v3201_v52, %s3384_s3  ;;  %v3203_v54 = vpop.eup %3202 }
0x15c5   :  { %v3205_v56 = vpop.eup %3204  ;;  %v1397_v57 = vmul.f32 0.5, %v3203_v54 }
0x15c6   :  { %v1419_v60 = vmul.f32 0.5, %v3205_v56 }
0x15c7   :  { %v1398_v47 = vadd.f32 0.5, %v1397_v57 }
0x15c8   :  { %v1420_v62 = vadd.f32 0.5, %v1419_v60 }
0x15c9   :  { %v1400_v28 = vmul.f32 %v1398_v47, %v1281_v27 }
0x15ca   :  { %v1422_v4 = vmul.f32 %v1420_v62, %v1303_v29 }
0x1635   :  { %v1403_v61 = vpop.permute.xlu1 %1402 }
0x1636   :  { %v1405_v13 = vmul.f32 %v1403_v61, %v1398_v47  ;;  %v1425_v63 = vpop.permute.xlu0 %1424 }
0x1637   :  { %v1427_v2 = vmul.f32 %v1425_v63, %v1420_v62 }
0x1638   :  { %1407 = vrot.lane.b32.xlu1 %v1405_v13, %s3385_s2 }
0x1639   :  { %1429 = vrot.lane.b32.xlu0 %v1427_v2, %s3385_s2 }
0x16aa   :  { %v1408_v3 = vpop.permute.xlu1 %1407 }
0x16ab   :  { %v1410_v7 = vadd.f32 %v1408_v3, %v1400_v28  ;;  %v1430_v8 = vpop.permute.xlu0 %1429 }
0x16ac   :  { %v1432_v15 = vadd.f32 %v1430_v8, %v1422_v4 }
0x16ad   :  { %3206 = vtanh.f32 %v1410_v7 }
0x16ae   :  { %3208 = vtanh.f32 %v1432_v15 }
0x16b7   :  { %v3207_v27 = vpop.eup %3206 }
0x16b8   :  { %v3209_v29 = vpop.eup %3208  ;;  %1413 = vrot.lane.b32.xlu1 %v3207_v27, %s3384_s3 }
0x16b9   :  { %1435 = vrot.lane.b32.xlu0 %v3209_v29, %s3384_s3 }
0x172a   :  { %v1414_v51 = vpop.permute.xlu1 %1413 }
0x172b   :  { %v1416_v55 = vmul.f32 %v1414_v51, %v1398_v47  ;;  %v1436_v40 = vpop.permute.xlu0 %1435 }
0x172c   :  { %v1438_v41 = vmul.f32 %v1436_v40, %v1420_v62 }
0x172d   :  { %1451 = vrot.lane.b32.xlu1 %v1416_v55, %s3385_s2 }
0x172e   :  { %1440 = vrot.lane.b32.xlu0 %v1438_v41, %s3384_s3  ;;  %s3389_s3 = smov 80  }
0x17a0   :  { %v1441_v23 = vpop.permute.xlu0 %1440 }
0x17a1   :  { %v1443_v43 = vsel %vm543_vm10, %v3615_v19, %v1441_v23  ;;  %v1446_v19 = vsel %vm543_vm10, %v3695_v46, %v3723_v26  ;;  %v1449_v46 = vsel %vm543_vm10, %v3765_v36, %v3643_v6  ;;  %v1452_v26 = vpop.permute.xlu1 %1451 }
0x17a2   :  { %2803 = vmatprep.mubr.msk.f32.mxu0 %vm414_vm11, %v1443_v43  ;;  %v1454_v48 = vsel %vm543_vm10, %v1452_v26, %v3617_v20 }
0x17a3   :  { %2804 = vmatmul.mubr.msk.f32.vlgmr.msra.gmra.mrb[16].mxu0 %vm414_vm11, %v1444_v49 }
0x17a4   :  { %2806 = vmatprep.mubr.msk.f32.mxu0 %vm414_vm11, %v1445_v50  ;;  %3065 = vmatpush3.bf16.msra.mxu0 %v3804_v30 }
0x17a5   :  { %3066 = vmatprep.subr.bf16.mxu0 %v3386_v34 }
0x17a7   :  { %2807 = vmatmul.mubr.msk.f32.gmra.mrb[18].mxu0 %vm414_vm11, %v1446_v19 }
0x17a8   :  { %2809 = vmatprep.mubr.msk.f32.mxu0 %vm414_vm11, %v1447_v5  ;;  %3068 = vmatpush3.bf16.msra.mxu0 %v3823_v45 }
0x17a9   :  { %3075 = vmatprep.subr.bf16.mxu0 %v3386_v34 }
0x17ab   :  { %2810 = vmatmul.mubr.msk.f32.gmra.mrb[20].mxu0 %vm414_vm11, %v1448_v58 }
0x17ac   :  { %2812 = vmatprep.mubr.msk.f32.mxu0 %vm414_vm11, %v1449_v46 }
0x17af   :  { %2813 = vmatmul.mubr.msk.f32.gmra.mrb[22].mxu0 %vm414_vm11, %v1454_v48 }
0x17b0   :  { %2845 = vmatprep.mubr.msk.f32.mxu0 %vm3387_vm12, %v3383_v1 }
0x1876   :  { %v2805_v6 = vpop.f32.mrb[16].mxu0 }
0x1877   :  { %v3877_v32 = vadd.f32 %v2805_v6, %v2689_v59  ;;  %v1560_v36 = vpop.f32.mrb[17].mxu0 }
0x1878   :  { %v3879_v37 = vadd.f32 %v2689_v59, %v1560_v36 }
0x187a   :  { %v1675_v18 = vadd.f32 %v1671_v24, %v3879_v37  ;;  %v2808_v20 = vpop.f32.mrb[18].mxu0 }
0x187b   :  { %v3882_v52 = vadd.f32 %v2808_v20, %v2689_v59  ;;  %v1570_v44 = vpop.f32.mrb[19].mxu0 }
0x187c   :  { %3210 = vtanh.f32 %v1675_v18  ;;  %v3884_v53 = vadd.f32 %v2689_v59, %v1570_v44  ;;  %v1677_v3 = vmul.f32 0.5, %v1675_v18 }
0x187e   :  { %v2811_v54 = vpop.f32.mrb[20].mxu0 }
0x187f   :  { %v3886_v56 = vadd.f32 %v2811_v54, %v2689_v59  ;;  %v1580_v57 = vpop.f32.mrb[21].mxu0 }
0x1880   :  { %v3888_v60 = vadd.f32 %v2689_v59, %v1580_v57 }
0x1882   :  { %v2814_v47 = vpop.f32.mrb[22].mxu0 }
0x1883   :  { %v3890_v61 = vadd.f32 %v2814_v47, %v2689_v59  ;;  %v1590_v62 = vpop.f32.mrb[23].mxu0 }
0x1884   :  { %v3892_v13 = vadd.f32 %v2689_v59, %v1590_v62 }
0x1885   :  { %v1676_v63 = vadd.f32 %v1671_v24, %v3890_v61 }
0x1886   :  { %v3211_v2 = vpop.eup %3210 }
0x1887   :  { %3212 = vtanh.f32 %v1676_v63  ;;  %1684 = vrot.lane.b32.xlu0 %v3211_v2, %s3388_s6  ;;  %v1699_v4 = vmul.f32 0.5, %v1676_v63 }
0x1888   :  { %3214 = vtanh.f32 %v1677_v3 }
0x1889   :  { %3216 = vtanh.f32 %v1699_v4 }
0x1891   :  { %v3213_v28 = vpop.eup %3212 }
0x1892   :  { %1706 = vrot.lane.b32.xlu1 %v3213_v28, %s3388_s6  ;;  %v3215_v7 = vpop.eup %3214 }
0x1893   :  { %v1679_v8 = vmul.f32 0.5, %v3215_v7  ;;  %v3217_v25 = vpop.eup %3216 }
0x1894   :  { %v1701_v11 = vmul.f32 0.5, %v3217_v25 }
0x1895   :  { %v1680_v15 = vadd.f32 0.5, %v1679_v8 }
0x1896   :  { %v1702_v12 = vadd.f32 0.5, %v1701_v11 }
0x1897   :  { %v1682_v17 = vmul.f32 0.0, %v1680_v15 }
0x1898   :  { %v1704_v31 = vmul.f32 0.0, %v1702_v12 }
0x18f9   :  { %v1685_v9 = vpop.permute.xlu0 %1684 }
0x18fa   :  { %v1687_v10 = vmul.f32 %v1685_v9, %v1680_v15 }
0x18fc   :  { %1689 = vrot.lane.b32.xlu0 %v1687_v10, %s3381_s27 }
0x1904   :  { %v1707_v42 = vpop.permute.xlu1 %1706 }
0x1905   :  { %v1709_v14 = vmul.f32 %v1707_v42, %v1702_v12 }
0x1907   :  { %1711 = vrot.lane.b32.xlu1 %v1709_v14, %s3381_s27 }
0x196e   :  { %v1690_v16 = vpop.permute.xlu0 %1689 }
0x196f   :  { %v1692_v22 = vadd.f32 %v1690_v16, %v1682_v17 }
0x1971   :  { %3218 = vtanh.f32 %v1692_v22 }
0x1979   :  { %v1712_v21 = vpop.permute.xlu1 %1711 }
0x197a   :  { %v1714_v33 = vadd.f32 %v1712_v21, %v1704_v31 }
0x197b   :  { %v3219_v27 = vpop.eup %3218 }
0x197c   :  { %3220 = vtanh.f32 %v1714_v33  ;;  %1695 = vrot.lane.b32.xlu0 %v3219_v27, %s3385_s2 }
0x1986   :  { %v3221_v35 = vpop.eup %3220 }
0x1987   :  { %1717 = vrot.lane.b32.xlu1 %v3221_v35, %s3385_s2 }
0x19ee   :  { %v1696_v29 = vpop.permute.xlu0 %1695 }
0x19ef   :  { %v3901_v38 = vmul.f32 %v1696_v29, %v1680_v15 }
0x19f1   :  { %1722 = vrot.lane.b32.xlu0 %v3901_v38, %s3389_s3 }
0x19f9   :  { %v1718_v39 = vpop.permute.xlu1 %1717 }
0x19fa   :  { %v3905_v51 = vmul.f32 %v1718_v39, %v1702_v12 }
0x19fc   :  { %1726 = vrot.lane.b32.xlu1 %v3905_v51, %s3385_s2 }
0x1a63   :  { %v1723_v55 = vpop.permute.xlu0 %1722 }
0x1a6e   :  { %v1727_v40 = vpop.permute.xlu1 %1726 }
0x1a6f   :  { %v1729_v41 = vsel %vm116_vm0, %v1723_v55, %v1727_v40 }
0x1a70   :  { %2835 = vmatmul.mubr.msk.f32.vlgmr.msra.gmra.mrb[26].mxu1 %vm543_vm10, %v1729_v41 }
0x1a71   :  { %3071 = vmatpush3.bf16.msra.mxu1 %v3804_v30  ;;  %2856 = vmatprep.mubr.msk.f32.mxu1 %vm3387_vm12, %v3383_v1 }
0x1a72   :  { %3072 = vmatprep.subr.bf16.mxu1 %v3386_v34 }
0x1a75   :  { %3074 = vmatpush3.bf16.msra.mxu1 %v3823_v45 }
0x1a76   :  { %3081 = vmatprep.subr.bf16.mxu1 %v3386_v34 }
0x1b43   :  { %v1799_v23 = vpop.f32.mrb[26].mxu1 }
0x1b44   :  { %v1803_v43 = vadd.f32 %v1799_v23, %v3877_v32  ;;  %v1804_v49 = vadd.f32 %v1799_v23, %v3892_v13  ;;  %v2836_v50 = vpop.f32.mrb[27].mxu1 }
0x1b46   :  { %3222 = vtanh.f32 %v1803_v43  ;;  %v1805_v58 = vmul.f32 0.5, %v1803_v43  ;;  %v1827_v46 = vmul.f32 0.5, %v1804_v49 }
0x1b47   :  { %3224 = vtanh.f32 %v1804_v49 }
0x1b48   :  { %3226 = vtanh.f32 %v1805_v58 }
0x1b49   :  { %3228 = vtanh.f32 %v1827_v46 }
0x1b50   :  { %v3223_v19 = vpop.eup %3222 }
0x1b51   :  { %v3225_v5 = vpop.eup %3224  ;;  %1812 = vrot.lane.b32.xlu0 %v3223_v19, %s3388_s6 }
0x1b52   :  { %1834 = vrot.lane.b32.xlu1 %v3225_v5, %s3388_s6  ;;  %v3227_v26 = vpop.eup %3226 }
0x1b53   :  { %v3229_v48 = vpop.eup %3228  ;;  %v1807_v24 = vmul.f32 0.5, %v3227_v26 }
0x1b54   :  { %v1829_v0 = vmul.f32 0.5, %v3229_v48 }
0x1b55   :  { %v1808_v59 = vadd.f32 0.5, %v1807_v24 }
0x1b56   :  { %v1830_v6 = vadd.f32 0.5, %v1829_v0 }
0x1b57   :  { %v1810_v54 = vmul.f32 %v1808_v59, %v1692_v22 }
0x1b58   :  { %v1832_v57 = vmul.f32 %v1830_v6, %v1714_v33 }
0x1bc3   :  { %v1813_v36 = vpop.permute.xlu0 %1812 }
0x1bc4   :  { %v1835_v18 = vpop.permute.xlu1 %1834  ;;  %v1815_v20 = vmul.f32 %v1813_v36, %v1808_v59 }
0x1bc5   :  { %v1837_v44 = vmul.f32 %v1835_v18, %v1830_v6 }
0x1bc6   :  { %1817 = vrot.lane.b32.xlu0 %v1815_v20, %s3381_s27 }
0x1bc7   :  { %1839 = vrot.lane.b32.xlu1 %v1837_v44, %s3381_s27 }
0x1c38   :  { %v1818_v47 = vpop.permute.xlu0 %1817 }
0x1c39   :  { %v1840_v62 = vpop.permute.xlu1 %1839  ;;  %v1820_v63 = vadd.f32 %v1818_v47, %v1810_v54 }
0x1c3a   :  { %v1842_v2 = vadd.f32 %v1840_v62, %v1832_v57 }
0x1c3b   :  { %3230 = vtanh.f32 %v1820_v63 }
0x1c3c   :  { %3232 = vtanh.f32 %v1842_v2 }
0x1c45   :  { %v3231_v28 = vpop.eup %3230 }
0x1c46   :  { %v3233_v3 = vpop.eup %3232  ;;  %1823 = vrot.lane.b32.xlu0 %v3231_v28, %s3385_s2 }
0x1c47   :  { %1845 = vrot.lane.b32.xlu1 %v3233_v3, %s3385_s2 }
0x1cb8   :  { %v1824_v4 = vpop.permute.xlu0 %1823 }
0x1cb9   :  { %v1846_v7 = vpop.permute.xlu1 %1845  ;;  %v1826_v8 = vmul.f32 %v1824_v4, %v1808_v59 }
0x1cba   :  { %v3925_v15 = vmul.f32 %v1846_v7, %v1830_v6 }
0x1cbb   :  { %1850 = vrot.lane.b32.xlu0 %v1826_v8, %s3389_s3  ;;  %v2617_v24 = vadd.f32 %v1826_v8, %v3901_v38 }
0x1cbc   :  { %1854 = vrot.lane.b32.xlu1 %v3925_v15, %s3385_s2 }
0x1d2d   :  { %v1851_v9 = vpop.permute.xlu0 %1850 }
0x1d2e   :  { %v1855_v10 = vpop.permute.xlu1 %1854 }
0x1d2f   :  { %v1857_v25 = vsel %vm116_vm0, %v1851_v9, %v1855_v10 }
0x1d30   :  { %2846 = vmatmul.mubr.msk.f32.vlgmr.msra.gmra.mrb[24].mxu0 %vm543_vm10, %v1857_v25 }
0x1d31   :  { %3077 = vmatpush3.bf16.msra.mxu0 %v3804_v30  ;;  %2867 = vmatprep.mubr.msk.f32.mxu0 %vm3387_vm12, %v3383_v1 }
0x1d32   :  { %3078 = vmatprep.subr.bf16.mxu0 %v3386_v34 }
0x1d35   :  { %3080 = vmatpush3.bf16.msra.mxu0 %v3823_v45 }
0x1d36   :  { %3087 = vmatprep.subr.bf16.mxu0 %v3386_v34 }
0x1e03   :  { %v1927_v11 = vpop.f32.mrb[24].mxu0 }
0x1e04   :  { %v1931_v12 = vadd.f32 %v1927_v11, %v3884_v53  ;;  %v1932_v42 = vadd.f32 %v1927_v11, %v3886_v56  ;;  %v2847_v14 = vpop.f32.mrb[25].mxu0 }
0x1e06   :  { %3234 = vtanh.f32 %v1931_v12  ;;  %v1933_v22 = vmul.f32 0.5, %v1931_v12  ;;  %v1955_v31 = vmul.f32 0.5, %v1932_v42 }
0x1e07   :  { %3236 = vtanh.f32 %v1932_v42 }
0x1e08   :  { %3238 = vtanh.f32 %v1933_v22 }
0x1e09   :  { %3240 = vtanh.f32 %v1955_v31 }
0x1e10   :  { %v3235_v17 = vpop.eup %3234 }
0x1e11   :  { %v3237_v16 = vpop.eup %3236  ;;  %1940 = vrot.lane.b32.xlu0 %v3235_v17, %s3388_s6 }
0x1e12   :  { %1962 = vrot.lane.b32.xlu1 %v3237_v16, %s3388_s6  ;;  %v3239_v21 = vpop.eup %3238 }
0x1e13   :  { %v3241_v33 = vpop.eup %3240  ;;  %v1935_v27 = vmul.f32 0.5, %v3239_v21 }
0x1e14   :  { %v1957_v35 = vmul.f32 0.5, %v3241_v33 }
0x1e15   :  { %v1936_v29 = vadd.f32 0.5, %v1935_v27 }
0x1e16   :  { %v1958_v39 = vadd.f32 0.5, %v1957_v35 }
0x1e17   :  { %v1938_v43 = vmul.f32 %v1936_v29, %v1820_v63 }
0x1e18   :  { %v1960_v49 = vmul.f32 %v1958_v39, %v1842_v2 }
0x1e83   :  { %v1941_v55 = vpop.permute.xlu0 %1940 }
0x1e84   :  { %v1963_v40 = vpop.permute.xlu1 %1962  ;;  %v1943_v41 = vmul.f32 %v1941_v55, %v1936_v29 }
0x1e85   :  { %v1965_v23 = vmul.f32 %v1963_v40, %v1958_v39 }
0x1e86   :  { %1945 = vrot.lane.b32.xlu0 %v1943_v41, %s3381_s27 }
0x1e87   :  { %1967 = vrot.lane.b32.xlu1 %v1965_v23, %s3381_s27 }
0x1ef8   :  { %v1946_v50 = vpop.permute.xlu0 %1945 }
0x1ef9   :  { %v1968_v19 = vpop.permute.xlu1 %1967  ;;  %v1948_v5 = vadd.f32 %v1946_v50, %v1938_v43 }
0x1efa   :  { %v1970_v58 = vadd.f32 %v1968_v19, %v1960_v49 }
0x1efb   :  { %3242 = vtanh.f32 %v1948_v5 }
0x1efc   :  { %3244 = vtanh.f32 %v1970_v58 }
0x1f05   :  { %v3243_v46 = vpop.eup %3242 }
0x1f06   :  { %v3245_v26 = vpop.eup %3244  ;;  %1951 = vrot.lane.b32.xlu0 %v3243_v46, %s3385_s2 }
0x1f07   :  { %1973 = vrot.lane.b32.xlu1 %v3245_v26, %s3385_s2 }
0x1f78   :  { %v1952_v48 = vpop.permute.xlu0 %1951 }
0x1f79   :  { %v1974_v0 = vpop.permute.xlu1 %1973  ;;  %v1954_v59 = vmul.f32 %v1952_v48, %v1936_v29 }
0x1f7a   :  { %v3947_v6 = vmul.f32 %v1974_v0, %v1958_v39 }
0x1f7b   :  { %v2619_v36 = vadd.f32 %v2617_v24, %v1954_v59  ;;  %1978 = vrot.lane.b32.xlu0 %v1954_v59, %s3389_s3 }
0x1f7c   :  { %1982 = vrot.lane.b32.xlu1 %v3947_v6, %s3385_s2 }
0x1fed   :  { %v1979_v18 = vpop.permute.xlu0 %1978 }
0x1fee   :  { %v1983_v20 = vpop.permute.xlu1 %1982 }
0x1fef   :  { %v1985_v44 = vsel %vm116_vm0, %v1979_v18, %v1983_v20 }
0x1ff0   :  { %2857 = vmatmul.mubr.msk.f32.vlgmr.msra.gmra.mrb[28].mxu1 %vm543_vm10, %v1985_v44 }
0x1ff1   :  { %3083 = vmatpush3.bf16.msra.mxu1 %v3804_v30  ;;  %2878 = vmatprep.mubr.msk.f32.mxu1 %vm3387_vm12, %v3383_v1 }
0x1ff2   :  { %3084 = vmatprep.subr.bf16.mxu1 %v3386_v34 }
0x1ff5   :  { %3086 = vmatpush3.bf16.msra.mxu1 %v3823_v45 }
0x1ff6   :  { %3093 = vmatprep.subr.bf16.mxu1 %v3386_v34 }
0x20c3   :  { %v2055_v38 = vpop.f32.mrb[28].mxu1 }
0x20c4   :  { %v2059_v54 = vadd.f32 %v2055_v38, %v3882_v52  ;;  %v2060_v57 = vadd.f32 %v2055_v38, %v3888_v60  ;;  %v2858_v47 = vpop.f32.mrb[29].mxu1 }
0x20c6   :  { %3246 = vtanh.f32 %v2059_v54  ;;  %v2061_v2 = vmul.f32 0.5, %v2059_v54  ;;  %v2083_v28 = vmul.f32 0.5, %v2060_v57 }
0x20c7   :  { %3248 = vtanh.f32 %v2060_v57 }
0x20c8   :  { %3250 = vtanh.f32 %v2061_v2 }
0x20c9   :  { %3252 = vtanh.f32 %v2083_v28 }
0x20d0   :  { %v3247_v62 = vpop.eup %3246 }
0x20d1   :  { %v3249_v63 = vpop.eup %3248  ;;  %2068 = vrot.lane.b32.xlu0 %v3247_v62, %s3388_s6 }
0x20d2   :  { %2090 = vrot.lane.b32.xlu1 %v3249_v63, %s3388_s6  ;;  %v3251_v3 = vpop.eup %3250 }
0x20d3   :  { %v3253_v4 = vpop.eup %3252  ;;  %v2063_v7 = vmul.f32 0.5, %v3251_v3 }
0x20d4   :  { %v2085_v8 = vmul.f32 0.5, %v3253_v4 }
0x20d5   :  { %v2064_v9 = vadd.f32 0.5, %v2063_v7 }
0x20d6   :  { %v2086_v10 = vadd.f32 0.5, %v2085_v8 }
0x20d7   :  { %v2066_v14 = vmul.f32 %v2064_v9, %v1948_v5 }
0x20d8   :  { %v2088_v17 = vmul.f32 %v2086_v10, %v1970_v58 }
0x2143   :  { %v2069_v25 = vpop.permute.xlu0 %2068 }
0x2144   :  { %v2091_v11 = vpop.permute.xlu1 %2090  ;;  %v2071_v12 = vmul.f32 %v2069_v25, %v2064_v9 }
0x2145   :  { %v2093_v42 = vmul.f32 %v2091_v11, %v2086_v10 }
0x2146   :  { %2073 = vrot.lane.b32.xlu0 %v2071_v12, %s3381_s27 }
0x2147   :  { %2095 = vrot.lane.b32.xlu1 %v2093_v42, %s3381_s27 }
0x21b8   :  { %v2074_v16 = vpop.permute.xlu0 %2073 }
0x21b9   :  { %v2096_v22 = vpop.permute.xlu1 %2095  ;;  %v2076_v31 = vadd.f32 %v2074_v16, %v2066_v14 }
0x21ba   :  { %v2098_v21 = vadd.f32 %v2096_v22, %v2088_v17 }
0x21bb   :  { %3254 = vtanh.f32 %v2076_v31 }
0x21bc   :  { %3256 = vtanh.f32 %v2098_v21 }
0x21c5   :  { %v3255_v33 = vpop.eup %3254 }
0x21c6   :  { %v3257_v27 = vpop.eup %3256  ;;  %2079 = vrot.lane.b32.xlu0 %v3255_v33, %s3385_s2 }
0x21c7   :  { %2101 = vrot.lane.b32.xlu1 %v3257_v27, %s3385_s2 }
0x2238   :  { %v2080_v35 = vpop.permute.xlu0 %2079 }
0x2239   :  { %v2102_v29 = vpop.permute.xlu1 %2101  ;;  %v2082_v39 = vmul.f32 %v2080_v35, %v2064_v9 }
0x223a   :  { %v3968_v55 = vmul.f32 %v2102_v29, %v2086_v10 }
0x223b   :  { %v2621_v40 = vadd.f32 %v2619_v36, %v2082_v39  ;;  %2106 = vrot.lane.b32.xlu0 %v2082_v39, %s3389_s3 }
0x223c   :  { %2110 = vrot.lane.b32.xlu1 %v3968_v55, %s3385_s2 }
0x22ad   :  { %v2107_v41 = vpop.permute.xlu0 %2106 }
0x22ae   :  { %v2111_v23 = vpop.permute.xlu1 %2110 }
0x22af   :  { %v2113_v43 = vsel %vm116_vm0, %v2107_v41, %v2111_v23 }
0x22b0   :  { %2868 = vmatmul.mubr.msk.f32.vlgmr.msra.gmra.mrb[26].mxu0 %vm543_vm10, %v2113_v43 }
0x22b1   :  { %3089 = vmatpush3.bf16.msra.mxu0 %v3804_v30  ;;  %2889 = vmatprep.mubr.msk.f32.mxu0 %vm3387_vm12, %v3383_v1 }
0x22b2   :  { %3090 = vmatprep.subr.bf16.mxu0 %v3386_v34 }
0x22b5   :  { %3092 = vmatpush3.bf16.msra.mxu0 %v3823_v45 }
0x2383   :  { %v2183_v49 = vpop.f32.mrb[26].mxu0 }
0x2384   :  { %v2187_v50 = vadd.f32 %v2183_v49, %v3888_v60  ;;  %v2188_v19 = vadd.f32 %v2183_v49, %v3882_v52  ;;  %v2869_v5 = vpop.f32.mrb[27].mxu0 }
0x2386   :  { %3258 = vtanh.f32 %v2187_v50  ;;  %v2189_v26 = vmul.f32 0.5, %v2187_v50  ;;  %v2211_v48 = vmul.f32 0.5, %v2188_v19 }
0x2387   :  { %3260 = vtanh.f32 %v2188_v19 }
0x2388   :  { %3262 = vtanh.f32 %v2189_v26 }
0x2389   :  { %3264 = vtanh.f32 %v2211_v48 }
0x2390   :  { %v3259_v58 = vpop.eup %3258 }
0x2391   :  { %v3261_v46 = vpop.eup %3260  ;;  %2196 = vrot.lane.b32.xlu0 %v3259_v58, %s3388_s6 }
0x2392   :  { %2218 = vrot.lane.b32.xlu1 %v3261_v46, %s3388_s6  ;;  %v3263_v24 = vpop.eup %3262 }
0x2393   :  { %v3265_v0 = vpop.eup %3264  ;;  %v2191_v59 = vmul.f32 0.5, %v3263_v24 }
0x2394   :  { %v2213_v36 = vmul.f32 0.5, %v3265_v0 }
0x2395   :  { %v2192_v60 = vadd.f32 0.5, %v2191_v59 }
0x2396   :  { %v2214_v18 = vadd.f32 0.5, %v2213_v36 }
0x2397   :  { %v2194_v54 = vmul.f32 %v2192_v60, %v2076_v31 }
0x2398   :  { %v2216_v57 = vmul.f32 %v2214_v18, %v2098_v21 }
0x2403   :  { %v2197_v52 = vpop.permute.xlu0 %2196 }
0x2404   :  { %v2219_v20 = vpop.permute.xlu1 %2218  ;;  %v2199_v44 = vmul.f32 %v2197_v52, %v2192_v60 }
0x2405   :  { %v2221_v38 = vmul.f32 %v2219_v20, %v2214_v18 }
0x2406   :  { %2201 = vrot.lane.b32.xlu0 %v2199_v44, %s3381_s27 }
0x2407   :  { %2223 = vrot.lane.b32.xlu1 %v2221_v38, %s3381_s27 }
0x2478   :  { %v2202_v47 = vpop.permute.xlu0 %2201 }
0x2479   :  { %v2224_v62 = vpop.permute.xlu1 %2223  ;;  %v2204_v63 = vadd.f32 %v2202_v47, %v2194_v54 }
0x247a   :  { %v2226_v2 = vadd.f32 %v2224_v62, %v2216_v57 }
0x247b   :  { %3266 = vtanh.f32 %v2204_v63 }
0x247c   :  { %3268 = vtanh.f32 %v2226_v2 }
0x2485   :  { %v3267_v28 = vpop.eup %3266 }
0x2486   :  { %v3269_v3 = vpop.eup %3268  ;;  %2207 = vrot.lane.b32.xlu0 %v3267_v28, %s3385_s2 }
0x2487   :  { %2229 = vrot.lane.b32.xlu1 %v3269_v3, %s3385_s2 }
0x24f8   :  { %v2208_v4 = vpop.permute.xlu0 %2207 }
0x24f9   :  { %v2230_v7 = vpop.permute.xlu1 %2229  ;;  %v2210_v8 = vmul.f32 %v2208_v4, %v2192_v60 }
0x24fa   :  { %v3988_v9 = vmul.f32 %v2230_v7, %v2214_v18 }
0x24fb   :  { %v2623_v10 = vadd.f32 %v2621_v40, %v2210_v8  ;;  %2234 = vrot.lane.b32.xlu0 %v2210_v8, %s3389_s3 }
0x24fc   :  { %2238 = vrot.lane.b32.xlu1 %v3988_v9, %s3385_s2 }
0x256d   :  { %v2235_v25 = vpop.permute.xlu0 %2234 }
0x256e   :  { %v2239_v11 = vpop.permute.xlu1 %2238 }
0x256f   :  { %v2241_v12 = vsel %vm116_vm0, %v2235_v25, %v2239_v11 }
0x2570   :  { %2879 = vmatmul.mubr.msk.f32.vlgmr.msra.gmra.mrb[30].mxu1 %vm543_vm10, %v2241_v12 }
0x2571   :  { %3095 = vmatpush3.bf16.msra.mxu1 %v3804_v30  ;;  %2900 = vmatprep.mubr.msk.f32.mxu1 %vm3387_vm12, %v3383_v1 }
0x2572   :  { %3096 = vmatprep.subr.bf16.mxu1 %v3386_v34 }
0x2575   :  { %3098 = vmatpush3.bf16.msra.mxu1 %v3823_v45 }
0x2643   :  { %v2311_v42 = vpop.f32.mrb[30].mxu1 }
0x2644   :  { %v2315_v14 = vadd.f32 %v2311_v42, %v3886_v56  ;;  %v2316_v17 = vadd.f32 %v2311_v42, %v3884_v53  ;;  %v2880_v16 = vpop.f32.mrb[31].mxu1 }
0x2646   :  { %3270 = vtanh.f32 %v2315_v14  ;;  %v2317_v30 = vmul.f32 0.5, %v2315_v14  ;;  %v2339_v1 = vmul.f32 0.5, %v2316_v17 }
0x2647   :  { %3272 = vtanh.f32 %v2316_v17 }
0x2648   :  { %3274 = vtanh.f32 %v2317_v30 }
0x2649   :  { %3276 = vtanh.f32 %v2339_v1 }
0x2650   :  { %v3271_v22 = vpop.eup %3270 }
0x2651   :  { %v3273_v31 = vpop.eup %3272  ;;  %2324 = vrot.lane.b32.xlu0 %v3271_v22, %s3388_s6 }
0x2652   :  { %2346 = vrot.lane.b32.xlu1 %v3273_v31, %s3388_s6  ;;  %v3275_v34 = vpop.eup %3274 }
0x2653   :  { %v3277_v45 = vpop.eup %3276  ;;  %v2319_v21 = vmul.f32 0.5, %v3275_v34 }
0x2654   :  { %v2341_v33 = vmul.f32 0.5, %v3277_v45 }
0x2655   :  { %v2320_v56 = vadd.f32 0.5, %v2319_v21 }
0x2656   :  { %v2342_v27 = vadd.f32 0.5, %v2341_v33 }
0x2657   :  { %v2322_v40 = vmul.f32 %v2320_v56, %v2204_v63 }
0x2658   :  { %v2344_v41 = vmul.f32 %v2342_v27, %v2226_v2 }
0x26c3   :  { %v2325_v53 = vpop.permute.xlu0 %2324 }
0x26c4   :  { %v2347_v35 = vpop.permute.xlu1 %2346  ;;  %v2327_v29 = vmul.f32 %v2325_v53, %v2320_v56 }
0x26c5   :  { %v2349_v39 = vmul.f32 %v2347_v35, %v2342_v27 }
0x26c6   :  { %2329 = vrot.lane.b32.xlu0 %v2327_v29, %s3381_s27 }
0x26c7   :  { %2351 = vrot.lane.b32.xlu1 %v2349_v39, %s3381_s27 }
0x2738   :  { %v2330_v23 = vpop.permute.xlu0 %2329 }
0x2739   :  { %v2352_v43 = vpop.permute.xlu1 %2351  ;;  %v2332_v49 = vadd.f32 %v2330_v23, %v2322_v40 }
0x273a   :  { %v2354_v50 = vadd.f32 %v2352_v43, %v2344_v41 }
0x273b   :  { %3278 = vtanh.f32 %v2332_v49 }
0x273c   :  { %3280 = vtanh.f32 %v2354_v50 }
0x2745   :  { %v3279_v19 = vpop.eup %3278 }
0x2746   :  { %v3281_v5 = vpop.eup %3280  ;;  %2335 = vrot.lane.b32.xlu0 %v3279_v19, %s3385_s2 }
0x2747   :  { %2357 = vrot.lane.b32.xlu1 %v3281_v5, %s3385_s2 }
0x27b8   :  { %v2336_v58 = vpop.permute.xlu0 %2335 }
0x27b9   :  { %v2358_v46 = vpop.permute.xlu1 %2357  ;;  %v2338_v26 = vmul.f32 %v2336_v58, %v2320_v56 }
0x27ba   :  { %v4008_v48 = vmul.f32 %v2358_v46, %v2342_v27 }
0x27bb   :  { %v2625_v24 = vadd.f32 %v2623_v10, %v2338_v26  ;;  %2362 = vrot.lane.b32.xlu0 %v2338_v26, %s3389_s3 }
0x27bc   :  { %2366 = vrot.lane.b32.xlu1 %v4008_v48, %s3385_s2 }
0x282d   :  { %v2363_v0 = vpop.permute.xlu0 %2362 }
0x282e   :  { %v2367_v59 = vpop.permute.xlu1 %2366 }
0x282f   :  { %v2369_v36 = vsel %vm116_vm0, %v2363_v0, %v2367_v59 }
0x2830   :  { %2890 = vmatmul.mubr.msk.f32.vlgmr.msra.gmra.mrb[28].mxu0 %vm543_vm10, %v2369_v36 }
0x2903   :  { %v2439_v60 = vpop.f32.mrb[28].mxu0 }
0x2904   :  { %v2443_v18 = vadd.f32 %v2439_v60, %v3892_v13  ;;  %v2444_v52 = vadd.f32 %v2439_v60, %v3877_v32  ;;  %v2891_v20 = vpop.f32.mrb[29].mxu0 }
0x2906   :  { %3282 = vtanh.f32 %v2443_v18  ;;  %v2445_v54 = vmul.f32 0.5, %v2443_v18  ;;  %v2467_v57 = vmul.f32 0.5, %v2444_v52 }
0x2907   :  { %3284 = vtanh.f32 %v2444_v52 }
0x2908   :  { %3286 = vtanh.f32 %v2445_v54 }
0x2909   :  { %3288 = vtanh.f32 %v2467_v57 }
0x2910   :  { %v3283_v44 = vpop.eup %3282 }
0x2911   :  { %v3285_v38 = vpop.eup %3284  ;;  %2452 = vrot.lane.b32.xlu0 %v3283_v44, %s3388_s6 }
0x2912   :  { %2474 = vrot.lane.b32.xlu1 %v3285_v38, %s3388_s6  ;;  %v3287_v47 = vpop.eup %3286 }
0x2913   :  { %v3289_v62 = vpop.eup %3288  ;;  %v2447_v63 = vmul.f32 0.5, %v3287_v47 }
0x2914   :  { %v2469_v2 = vmul.f32 0.5, %v3289_v62 }
0x2915   :  { %v2448_v13 = vadd.f32 0.5, %v2447_v63 }
0x2916   :  { %v2470_v28 = vadd.f32 0.5, %v2469_v2 }
0x2917   :  { %v2450_v8 = vmul.f32 %v2448_v13, %v2332_v49 }
0x2918   :  { %v2472_v10 = vmul.f32 %v2470_v28, %v2354_v50 }
0x2983   :  { %v2453_v32 = vpop.permute.xlu0 %2452 }
0x2984   :  { %v2475_v3 = vpop.permute.xlu1 %2474  ;;  %v2455_v4 = vmul.f32 %v2453_v32, %v2448_v13 }
0x2985   :  { %v2477_v7 = vmul.f32 %v2475_v3, %v2470_v28 }
0x2986   :  { %2457 = vrot.lane.b32.xlu0 %v2455_v4, %s3381_s27 }
0x2987   :  { %2479 = vrot.lane.b32.xlu1 %v2477_v7, %s3381_s27 }
0x29f8   :  { %v2458_v25 = vpop.permute.xlu0 %2457 }
0x29f9   :  { %v2480_v11 = vpop.permute.xlu1 %2479  ;;  %v2460_v12 = vadd.f32 %v2458_v25, %v2450_v8 }
0x29fa   :  { %v2482_v42 = vadd.f32 %v2480_v11, %v2472_v10 }
0x29fb   :  { %3290 = vtanh.f32 %v2460_v12 }
0x29fc   :  { %3292 = vtanh.f32 %v2482_v42 }
0x2a05   :  { %v3291_v14 = vpop.eup %3290 }
0x2a06   :  { %v3293_v17 = vpop.eup %3292  ;;  %2463 = vrot.lane.b32.xlu0 %v3291_v14, %s3385_s2 }
0x2a07   :  { %2485 = vrot.lane.b32.xlu1 %v3293_v17, %s3385_s2 }
0x2a78   :  { %v2464_v16 = vpop.permute.xlu0 %2463 }
0x2a79   :  { %v2486_v22 = vpop.permute.xlu1 %2485  ;;  %v2466_v31 = vmul.f32 %v2464_v16, %v2448_v13 }
0x2a7a   :  { %v2488_v30 = vmul.f32 %v2486_v22, %v2470_v28 }
0x2a7b   :  { %v2627_v1 = vadd.f32 %v2625_v24, %v2466_v31  ;;  %2490 = vrot.lane.b32.xlu0 %v2466_v31, %s3389_s3 }
0x2a7c   :  { %2494 = vrot.lane.b32.xlu1 %v2488_v30, %s3385_s2 }
0x2aed   :  { %v2491_v34 = vpop.permute.xlu0 %2490 }
0x2aee   :  { %v2495_v45 = vpop.permute.xlu1 %2494 }
0x2aef   :  { %v2497_v21 = vsel %vm116_vm0, %v2491_v34, %v2495_v45 }
0x2af0   :  { %2901 = vmatmul.mubr.msk.f32.vlgmr.msra.gmra.mrb[32].mxu1 %vm543_vm10, %v2497_v21 }
0x2bc3   :  { %v2567_v33 = vpop.f32.mrb[32].mxu1 }
0x2bc4   :  { %v2571_v56 = vadd.f32 %v2567_v33, %v3890_v61  ;;  %v2572_v27 = vadd.f32 %v2567_v33, %v3879_v37  ;;  %v2902_v53 = vpop.f32.mrb[33].mxu1 }
0x2bc6   :  { %3294 = vtanh.f32 %v2571_v56  ;;  %v2573_v39 = vmul.f32 0.5, %v2571_v56  ;;  %v2595_v40 = vmul.f32 0.5, %v2572_v27 }
0x2bc7   :  { %3296 = vtanh.f32 %v2572_v27 }
0x2bc8   :  { %3298 = vtanh.f32 %v2573_v39 }
0x2bc9   :  { %3300 = vtanh.f32 %v2595_v40 }
0x2bd0   :  { %v3295_v35 = vpop.eup %3294 }
0x2bd1   :  { %v3297_v29 = vpop.eup %3296  ;;  %2580 = vrot.lane.b32.xlu1 %v3295_v35, %s3388_s6 }
0x2bd2   :  { %2602 = vrot.lane.b32.xlu0 %v3297_v29, %s3388_s6  ;;  %v3299_v41 = vpop.eup %3298 }
0x2bd3   :  { %v3301_v23 = vpop.eup %3300  ;;  %v2575_v43 = vmul.f32 0.5, %v3299_v41 }
0x2bd4   :  { %v2597_v49 = vmul.f32 0.5, %v3301_v23 }
0x2bd5   :  { %v2576_v61 = vadd.f32 0.5, %v2575_v43 }
0x2bd6   :  { %v2598_v50 = vadd.f32 0.5, %v2597_v49 }
0x2bd7   :  { %v2578_v46 = vmul.f32 %v2576_v61, %v2460_v12 }
0x2bd8   :  { %v2600_v26 = vmul.f32 %v2598_v50, %v2482_v42 }
0x2c43   :  { %v2581_v37 = vpop.permute.xlu1 %2580 }
0x2c44   :  { %v2603_v19 = vpop.permute.xlu0 %2602  ;;  %v2583_v5 = vmul.f32 %v2581_v37, %v2576_v61 }
0x2c45   :  { %v2605_v58 = vmul.f32 %v2603_v19, %v2598_v50 }
0x2c46   :  { %2585 = vrot.lane.b32.xlu1 %v2583_v5, %s3381_s27 }
0x2c47   :  { %2607 = vrot.lane.b32.xlu0 %v2605_v58, %s3381_s27  ;;  %s3390_s27 = smov [#allocation7]  }
0x2c48   :  { %s2648_s28 = sshll.u32 %s3390_s27, 4  ;;  %s2649_s28 = int_to_ptr.vmem [resolvable:$true] %s2648_s28 }
0x2c49   :  { %s3350_s29 = scalar_lea.vmem %s2649_s28, 128  ;;  %p3355_p3 = scmp.lt.s32.totalorder %s2649_s28, %s2649_s28 }
0x2c4a   :  { %p3351_p2 = scmp.ne.s32.totalorder %s2649_s28, %s3350_s29  ;;  %p3356_p4 = scmp.lt.s32.totalorder %s3350_s29, %s3350_s29 }
0x2c4c   :  { %p3357_p5 = por %p3356_p4, %p3355_p3 }
0x2c4e   :  { %p3358_p6 = pnand %p3357_p5, %p3351_p2 }
0x2cb8   :  { %v2586_v24 = vpop.permute.xlu1 %2585 }
0x2cb9   :  { %v2608_v0 = vpop.permute.xlu0 %2607  ;;  %v2588_v59 = vadd.f32 %v2586_v24, %v2578_v46 }
0x2cba   :  { %v2610_v36 = vadd.f32 %v2608_v0, %v2600_v26 }
0x2cbb   :  { %3302 = vtanh.f32 %v2588_v59 }
0x2cbc   :  { %3304 = vtanh.f32 %v2610_v36 }
0x2cc5   :  { %v3303_v60 = vpop.eup %3302 }
0x2cc6   :  { %v3305_v18 = vpop.eup %3304  ;;  %2591 = vrot.lane.b32.xlu1 %v3303_v60, %s3385_s2 }
0x2cc7   :  { %2613 = vrot.lane.b32.xlu0 %v3305_v18, %s3385_s2 }
0x2d38   :  { %v2592_v52 = vpop.permute.xlu1 %2591 }
0x2d39   :  { %v2614_v20 = vpop.permute.xlu0 %2613  ;;  %v2594_v44 = vmul.f32 %v2592_v52, %v2576_v61 }
0x2d3a   :  { %v2616_v38 = vmul.f32 %v2614_v20, %v2598_v50 }
0x2d3b   :  { %v2629_v54 = vadd.f32 %v2627_v1, %v2594_v44 }
0x2d3c   :  { %v2618_v57 = vadd.f32 %v2616_v38, %v2488_v30 }
0x2d3d   :  { %2632 = vrot.lane.b32.xlu0 %v2629_v54, %s3389_s3 }
0x2d3e   :  { %v2620_v47 = vadd.f32 %v2618_v57, %v4008_v48 }
0x2d40   :  { %v2622_v62 = vadd.f32 %v2620_v47, %v3988_v9 }
0x2d42   :  { %v2624_v63 = vadd.f32 %v2622_v62, %v3968_v55 }
0x2d44   :  { %v2626_v2 = vadd.f32 %v2624_v63, %v3947_v6 }
0x2d46   :  { %v2628_v13 = vadd.f32 %v2626_v2, %v3925_v15 }
0x2d48   :  { %v2630_v28 = vadd.f32 %v2628_v13, %v3905_v51 }
0x2d4a   :  { %2636 = vrot.lane.b32.xlu1 %v2630_v28, %s3385_s2 }
0x2daf   :  { %v2633_v32 = vpop.permute.xlu0 %2632 }
0x2dbc   :  { %v2637_v3 = vpop.permute.xlu1 %2636 }
0x2dbd   :  { %v2639_v4 = vsel %vm116_vm0, %v2633_v32, %v2637_v3 }
0x2dbe   :  { %v2640_v7 = vmul.f32 0.125, %v2639_v4 }
0x2dc0   :  { %2641 = vst.msk [vmem:[#allocation7] sm:$0xff] %vm543_vm10, %v2640_v7 }
0x2dc1   :  { %3361 = shalt.err (!%p3358_p6)
}
0x2dc2   :  { %s3362_s2 = scalar_lea.hbm %s4065_s8, 128 }
0x2dc3   :  { %p3363_p7 = scmp.ne.s32.totalorder %s4065_s8, %s3362_s2  ;;  %p3366_p8 = scmp.lt.u32.totalorder %s3362_s2, %s4065_s8 }
0x2dc5   :  { %p3368_p9 = pnand %p3366_p8, %p3363_p7 }
0x2dc7   :  { %3371 = shalt.err (!%p3368_p9)
}
0x2dc8   :  { %2651 = dma.vmem_to_hbm [thread:$0]  %s2649_s28, 128, %s4065_s8, [#allocation4]  }
0x2dc9   :  { %3376 = dma.done.wait [#allocation4], 128  }
0x2dca   :  { %3377 = vsyncadd [#allocation4], 4294967168 }
0x2dcb   :  { %2655 = vsyncpa [#allocation3], 1 }
0x2dcc   :  { %2656 = vsyncpa [#allocation6], 1 }
0x2dcd   :  { %2657 = vsyncpa [#allocation4], 1 }

</bundles_post_ra>
